<compile_context>
chip_gen: v6e
topology: v6e:2x2x1
jax: 0.10.0
libtpu: 0.0.40
codegen_flags: <defaults>
</compile_context>

<pallas_src>
import math

import jax
import jax.numpy as jnp
from jax.experimental import pallas as pl
from jax.experimental.pallas import tpu as pltpu


# ------------------------------ tiled linear (MXU) -----------------------------

def _linear_kernel_acc(x_ref, w_ref, b_ref, o_ref, acc_ref):
    """One (tm, tn) output tile; grid axis 2 is the K reduction (f32 accumulator in VMEM)."""
    @pl.when(pl.program_id(2) == 0)
    def _():
        acc_ref[...] = jnp.zeros_like(acc_ref)

    acc_ref[...] += jnp.dot(x_ref[...].astype(jnp.bfloat16),
                            w_ref[...].astype(jnp.bfloat16),
                            preferred_element_type=jnp.float32)

    @pl.when(pl.program_id(2) == pl.num_programs(2) - 1)
    def _():
        o_ref[...] = (acc_ref[...] + b_ref[...]).astype(o_ref.dtype)


def _linear_kernel_single(x_ref, w_ref, b_ref, o_ref):
    """Single reduction step (K fits one tile): no scratch accumulator, no pl.when phases."""
    o_ref[...] = (jnp.dot(x_ref[...].astype(jnp.bfloat16),
                          w_ref[...].astype(jnp.bfloat16),
                          preferred_element_type=jnp.float32)
                  + b_ref[...]).astype(o_ref.dtype)


def _round_up(v, a):
    return ((v + a - 1) // a) * a


def _pick_tile(dim, target, align):
    """Largest tile <= target that divides dim and is a multiple of `align`.
    Small dims become one full-extent block; large awkward dims fail loudly instead of
    silently becoming a single (VMEM-busting) block."""
    if dim <= target:
        return dim
    for t in range(target, align - 1, -1):
        if dim % t == 0 and t % align == 0:
            return t
    if dim <= 4 * target:
        return dim
    raise ValueError(f"no {align}-aligned tile <= {target} divides dim={dim}; pad this axis")


def pallas_linear(x2d, w, b, *, tm=512, tn=256, tk=512, out_dtype=None):
    """o = x2d @ w + b. Tiled, double-buffered, bf16 MXU operands, f32 accumulate."""
    m, k = x2d.shape
    k2, n = w.shape
    assert k == k2, (x2d.shape, w.shape)
    out_dtype = out_dtype if out_dtype is not None else x2d.dtype

    tn = _pick_tile(n, tn, 128)   # lane axis of w / bias / out blocks (lane-dense stores)
    tk = _pick_tile(k, tk, 128)   # lane axis of x blocks, sublane axis of w blocks

    # Sublane (M) tiling: pad M up to a tile multiple instead of falling back to a
    # full-axis block.  bf16 operands -> 16-row sublane alignment.
    tm = max(16, (tm // 16) * 16)
    tm_eff = tm if m >= tm else _round_up(m, 16)
    m_pad = _round_up(m, tm_eff)
    x_p = x2d if m_pad == m else jnp.pad(x2d, ((0, m_pad - m), (0, 0)))

    nk = k // tk
    cost = pl.CostEstimate(
        flops=2 * m_pad * k * n,
        transcendentals=0,
        bytes_accessed=(m_pad * k * x_p.dtype.itemsize + k * n * w.dtype.itemsize
                        + m_pad * n * jnp.dtype(out_dtype).itemsize + n * 4))

    if nk == 1:
        call = pl.pallas_call(
            _linear_kernel_single,
            out_shape=jax.ShapeDtypeStruct((m_pad, n), out_dtype),
            grid_spec=pltpu.PrefetchScalarGridSpec(
                num_scalar_prefetch=0,
                grid=(m_pad // tm_eff, n // tn),
                in_specs=[
                    pl.BlockSpec((tm_eff, k), lambda i, j: (i, 0)),
                    pl.BlockSpec((k, tn), lambda i, j: (0, j)),
                    pl.BlockSpec((1, tn), lambda i, j: (0, j)),
                ],
                out_specs=pl.BlockSpec((tm_eff, tn), lambda i, j: (i, j)),
            ),
            compiler_params=pltpu.CompilerParams(
                dimension_semantics=("parallel", "parallel"),
                vmem_limit_bytes=48 * 1024 * 1024),
            cost_estimate=cost,
        )
    else:
        call = pl.pallas_call(
            _linear_kernel_acc,
            out_shape=jax.ShapeDtypeStruct((m_pad, n), out_dtype),
            grid_spec=pltpu.PrefetchScalarGridSpec(
                num_scalar_prefetch=0,
                grid=(m_pad // tm_eff, n // tn, nk),          # reduction axis last
                in_specs=[
                    pl.BlockSpec((tm_eff, tk), lambda i, j, kk: (i, kk)),
                    pl.BlockSpec((tk, tn), lambda i, j, kk: (kk, j)),
                    pl.BlockSpec((1, tn), lambda i, j, kk: (0, j)),
                ],
                out_specs=pl.BlockSpec((tm_eff, tn), lambda i, j, kk: (i, j)),
                scratch_shapes=[pltpu.VMEM((tm_eff, tn), jnp.float32)],
            ),
            compiler_params=pltpu.CompilerParams(
                dimension_semantics=("parallel", "parallel", "arbitrary"),
                vmem_limit_bytes=48 * 1024 * 1024),
            cost_estimate=cost,
        )

    out = call(x_p, w, b.reshape(1, n))
    return out if m_pad == m else out[:m]


# ---------------------- fused linear-angular attention core --------------------

def _lin_angular_attn_kernel(qkv_ref, taps_ref, seg_ref, o_ref, vpad_ref):
    # qkv_ref: (1, N, 2C) bf16 -- [qk | v] of ALL heads of one batch element (lane-dense)
    # taps_ref: (ksz, C) f32  -- depthwise-conv taps expanded across each head's d columns
    # seg_ref:  (C, C)  f32  -- block-diagonal "same head" ones mask (d x d blocks)
    # o_ref:    (1, N, C)    -- y written directly in (B, N, C) layout (lane-dense store)
    # vpad_ref: (N + 2*halo, C) f32 scratch -- zero-halo'd buffer for the token-axis conv
    n_tok, c = o_ref.shape[1], o_ref.shape[2]
    ksz = taps_ref.shape[0]
    half = ksz // 2
    halo = (vpad_ref.shape[0] - n_tok) // 2

    qk = qkv_ref[0, :, :c].astype(jnp.float32)          # (N, C)
    v = qkv_ref[0, :, c:].astype(jnp.float32)           # (N, C)
    seg = seg_ref[...]                                   # (C, C)

    # Depthwise (ksz, 1) conv along tokens: copy v once into the halo'd scratch (halo rows
    # zeroed), then accumulate ksz shifted row-windows -- plain vld + FMA passes, no rolls.
    vpad_ref[:halo, :] = jnp.zeros((halo, c), jnp.float32)
    vpad_ref[halo + n_tok:, :] = jnp.zeros((halo, c), jnp.float32)
    vpad_ref[pl.ds(halo, n_tok), :] = v                  # sublane-aligned store (halo % 8 == 0)
    dconv = jnp.zeros((n_tok, c), jnp.float32)
    for k in range(ksz):
        win = vpad_ref[pl.ds(halo - half + k, n_tok), :]
        dconv = dconv + taps_ref[k:k + 1, :] * win

    eps = 1e-12  # reference / PyTorch has no eps; kept tiny purely for robustness

    # qk <- qk / ||qk||_2 over each head's d columns: segmented sum-of-squares via the
    # block-diagonal ones matrix (lane-dense MXU matmul, no per-head lane slicing).
    qk_ss = jnp.dot(qk * qk, seg, preferred_element_type=jnp.float32)
    qk = qk * jax.lax.rsqrt(qk_ss + eps)
    # TODO(synk): EcoformerQuant (kernelized-hashing binarization of qk) has no definition /
    # parameters in the spec; treated as identity.

    # Per-head attn = qk_h^T @ v_h and z_h = qk_h @ attn_h, expressed as full-(C) matmuls
    # with cross-head blocks masked out by `seg` (stays lane-dense on the MXU).
    attn = jax.lax.dot_general(qk, v, (((0,), (0,)), ((), ())),
                               preferred_element_type=jnp.float32)     # (C, C)
    attn = attn * seg
    z = jnp.dot(qk, attn, preferred_element_type=jnp.float32)          # (N, C)

    y = 0.5 * v + (1.0 / math.pi) * z
    y_ss = jnp.dot(y * y, seg, preferred_element_type=jnp.float32)
    y = y * jax.lax.rsqrt(y_ss + eps)

    o_ref[0] = (y + dconv).astype(o_ref.dtype)


def pallas_lin_angular_attention(qkv3, taps, seg):
    """qkv3: (B, N, 2C) = [qk | v]; taps: (ksz, C); seg: (C, C). Returns y: (B, N, C)."""
    b, n, twoc = qkv3.shape
    c = twoc // 2
    ksz = taps.shape[0]
    halo = _round_up(ksz // 2, 8)   # keep the in-kernel v copy sublane-aligned

    cost = pl.CostEstimate(
        flops=b * (8 * n * c * c + 2 * ksz * n * c + 12 * n * c),
        transcendentals=2 * b * n * c,
        bytes_accessed=(b * (n * twoc + n * c) * qkv3.dtype.itemsize
                        + ksz * c * 4 + c * c * 4))

    return pl.pallas_call(
        _lin_angular_attn_kernel,
        out_shape=jax.ShapeDtypeStruct((b, n, c), qkv3.dtype),
        grid_spec=pltpu.PrefetchScalarGridSpec(
            num_scalar_prefetch=0,
            grid=(b,),
            in_specs=[
                pl.BlockSpec((1, n, twoc), lambda i: (i, 0, 0)),
                pl.BlockSpec((ksz, c), lambda i: (0, 0)),
                pl.BlockSpec((c, c), lambda i: (0, 0)),
            ],
            out_specs=pl.BlockSpec((1, n, c), lambda i: (i, 0, 0)),
            scratch_shapes=[pltpu.VMEM((n + 2 * halo, c), jnp.float32)],
        ),
        compiler_params=pltpu.CompilerParams(
            dimension_semantics=("parallel",),
            vmem_limit_bytes=48 * 1024 * 1024),
        cost_estimate=cost,
    )(qkv3, taps, seg)


# ------------------------------------ forward ----------------------------------

def lin_angular_attention_forward(x, H, W, params, num_heads, *, tm=512, tn=256, tk=512):
    """Forward of LinAngularAttention_ksh. H, W are unused on this path (signature parity)."""
    B, N, C = x.shape
    d = C // num_heads

    # Fused to_qk / to_v projection: one bf16 MXU pass over x (qkv_bias=False -> zero bias).
    w_cat = jnp.concatenate([params["to_qk_w"], params["to_v_w"]],
                            axis=1).astype(jnp.bfloat16)                     # (C, 2C)
    b_cat = jnp.concatenate([params["to_qk_b"], params["to_v_b"]], axis=0)   # (2C,)
    qkv = pallas_linear(x.reshape(B * N, C), w_cat, b_cat,
                        tm=tm, tn=tn, tk=tk, out_dtype=jnp.bfloat16)         # (B*N, 2C) bf16
    qkv3 = qkv.reshape(B, N, 2 * C)   # free reshape -- no head transpose, no qkv slices

    # Depthwise-conv taps expanded to one row per tap across all C columns (column c belongs
    # to head c // d), and the block-diagonal same-head mask for segmented norms / masking.
    taps = jnp.repeat(params["dconv_w"][:, 0, :].T, d, axis=1)               # (ksz, C) f32
    lane_head = jnp.arange(C) // d
    seg = (lane_head[:, None] == lane_head[None, :]).astype(jnp.float32)     # (C, C)

    y = pallas_lin_angular_attention(qkv3, taps, seg)                        # (B, N, C) bf16

    out = pallas_linear(y.reshape(B * N, C), params["proj_w"].astype(jnp.bfloat16),
                        params["proj_b"], tm=tm, tn=tn, tk=tk, out_dtype=x.dtype)
    return out.reshape(B, N, C)   # attn_drop / proj_drop (p=0.0) -> identity


def init_params(key, dim, num_heads, res_kernel_size=9):
    k1, k2, k3, k4 = jax.random.split(key, 4)
    # Linear weights stored as (in, out) so the kernels compute x @ w.
    to_qk_w = 0.02 * jax.random.truncated_normal(k1, -2.0, 2.0, (dim, dim), jnp.float32)
    to_v_w = 0.02 * jax.random.truncated_normal(k2, -2.0, 2.0, (dim, dim), jnp.float32)
    proj_w = 0.02 * jax.random.truncated_normal(k3, -2.0, 2.0, (dim, dim), jnp.float32)
    # qkv_bias=False -> zero biases (numerically identical to "no bias")
    to_qk_b = jnp.zeros((dim,), jnp.float32)
    to_v_b = jnp.zeros((dim,), jnp.float32)
    proj_b = jnp.zeros((dim,), jnp.float32)
    # Conv2d(h, h, (K,1), groups=h, bias=False): fan_out = K -> std sqrt(2/K)
    dconv_w = math.sqrt(2.0 / res_kernel_size) * jax.random.normal(
        k4, (num_heads, 1, res_kernel_size), jnp.float32)
    return dict(to_qk_w=to_qk_w, to_qk_b=to_qk_b, to_v_w=to_v_w, to_v_b=to_v_b,
                proj_w=proj_w, proj_b=proj_b, dconv_w=dconv_w)


# ------------------------------ reference (pure JAX) ----------------------------

def lin_angular_attention_reference(x, params, num_heads):
    with jax.default_matmul_precision("float32"):   # true f32 reference
        B, N, C = x.shape
        d = C // num_heads
        qk = x.reshape(B * N, C) @ params["to_qk_w"] + params["to_qk_b"]
        v = x.reshape(B * N, C) @ params["to_v_w"] + params["to_v_b"]
        qk = qk.reshape(B, N, num_heads, d).transpose(0, 2, 1, 3)
        v = v.reshape(B, N, num_heads, d).transpose(0, 2, 1, 3)

        qk = qk / jnp.linalg.norm(qk, axis=-1, keepdims=True)  # EcoformerQuant == identity

        w = params["dconv_w"].reshape(num_heads, -1)
        ksz = w.shape[1]
        half = ksz // 2
        vp = jnp.pad(v, ((0, 0), (0, 0), (half, half), (0, 0)))
        dconv_v = jnp.zeros_like(v)
        for k in range(ksz):
            dconv_v = dconv_v + w[:, k][None, :, None, None] * vp[:, :, k:k + N, :]

        attn = jnp.einsum("bhnd,bhne->bhde", qk, v)
        y = 0.5 * v + (1.0 / math.pi) * jnp.einsum("bhnd,bhde->bhne", qk, attn)
        y = y / jnp.linalg.norm(y, axis=-1, keepdims=True)
        y = y + dconv_v
        y = y.transpose(0, 2, 1, 3).reshape(B * N, C)
        out = y @ params["proj_w"] + params["proj_b"]
        return out.reshape(B, N, C)


if __name__ == "__main__":
    B, H, W = 2, 8, 8               # tokens N = H*W = 64
    N = H * W
    dim, num_heads = 256, 8         # head_dim d = 32
    res_kernel_size = 9

    key = jax.random.PRNGKey(0)
    kx, kp = jax.random.split(key)
    x = jax.random.normal(kx, (B, N, dim), jnp.float32)
    params = init_params(kp, dim, num_heads, res_kernel_size)

    ref = lin_angular_attention_reference(x, params, num_heads)

    # First config: default tiles (single-K fast path).  Second: small tiles so the
    # K-accumulation path and multi-tile grids are exercised at these toy shapes.
    for tiles in (dict(tm=512, tn=256, tk=512), dict(tm=64, tn=128, tk=128)):
        fwd = jax.jit(lambda inp, t=tiles: lin_angular_attention_forward(
            inp, H, W, params, num_heads, **t))
        out = jax.block_until_ready(fwd(x))
        assert out.shape == (B, N, dim)
        max_err = float(jnp.max(jnp.abs(out - ref)))
        # bf16 matmul operands + bf16 qkv / y intermediates vs a pure-f32 reference:
        # typical error ~1e-3; 1e-2 keeps margin while still catching real bugs.
        assert max_err < 1e-2, f"mismatch vs reference, max|diff|={max_err}"

    print("KERNEL_OK")
</pallas_src>

<mosaic_0001>
module attributes {stable_mosaic.version = 11 : i64} {
  func.func @_linear_kernel_single(%arg0: i32, %arg1: i32, %arg2: memref<128x256xf32, #tpu.memory_space<vmem>>, %arg3: memref<256x256xbf16, #tpu.memory_space<vmem>>, %arg4: memref<1x256xf32, #tpu.memory_space<vmem>>, %arg5: memref<128x256xbf16, #tpu.memory_space<vmem>>) attributes {dimension_semantics = [#tpu.dimension_semantics<parallel>, #tpu.dimension_semantics<parallel>], iteration_bounds = array<i64: 1, 2>, scalar_prefetch = 0 : i64, scratch_operands = 0 : i64, tpu.core_type = #tpu.core_type<tc>, window_params = [{transform_indices = @transform_0, window_bounds = array<i64: 128, 256>}, {transform_indices = @transform_1, window_bounds = array<i64: 256, 256>}, {transform_indices = @transform_2, window_bounds = array<i64: 1, 256>}, {transform_indices = @transform_3, window_bounds = array<i64: 128, 256>}]} {
    %c0 = arith.constant 0 : index
    %c0_0 = arith.constant 0 : index
    %0 = vector.load %arg2[%c0, %c0_0] : memref<128x256xf32, #tpu.memory_space<vmem>>, vector<128x256xf32>
    %1 = arith.truncf %0 : vector<128x256xf32> to vector<128x256xbf16>
    %c0_1 = arith.constant 0 : index
    %c0_2 = arith.constant 0 : index
    %2 = vector.load %arg3[%c0_1, %c0_2] : memref<256x256xbf16, #tpu.memory_space<vmem>>, vector<256x256xbf16>
    %cst = arith.constant dense<0.000000e+00> : vector<128x256xf32>
    %3 = tpu.matmul %1, %2, %cst {dimension_numbers = #tpu.dot_dimension_numbers<[1], [0], [0], [1], [0, 0, 1, 1], [], []>} : vector<128x256xbf16>, vector<256x256xbf16>, vector<128x256xf32> -> vector<128x256xf32>
    %c0_3 = arith.constant 0 : index
    %c0_4 = arith.constant 0 : index
    %4 = vector.load %arg4[%c0_3, %c0_4] : memref<1x256xf32, #tpu.memory_space<vmem>>, vector<1x256xf32>
    %5 = vector.broadcast %4 : vector<1x256xf32> to vector<128x256xf32>
    %6 = arith.addf %3, %5 : vector<128x256xf32>
    %7 = arith.truncf %6 : vector<128x256xf32> to vector<128x256xbf16>
    %c0_5 = arith.constant 0 : index
    %c0_6 = arith.constant 0 : index
    %8 = vector.load %arg5[%c0_5, %c0_6] : memref<128x256xbf16, #tpu.memory_space<vmem>>, vector<128x256xbf16>
    tpu.vector_store %arg5[%c0_5, %c0_6], %7 {strides = array<i32>} : memref<128x256xbf16, #tpu.memory_space<vmem>>, vector<128x256xbf16>,
    return
  }
  func.func @transform_0(%arg0: i32, %arg1: i32) -> (i32, i32) {
    %c0_i32 = arith.constant 0 : i32
    %c0_i32_0 = arith.constant 0 : i32
    return %arg0, %c0_i32 : i32, i32
  }
  func.func @transform_1(%arg0: i32, %arg1: i32) -> (i32, i32) {
    %c0_i32 = arith.constant 0 : i32
    %c0_i32_0 = arith.constant 0 : i32
    return %c0_i32, %arg1 : i32, i32
  }
  func.func @transform_2(%arg0: i32, %arg1: i32) -> (i32, i32) {
    %c0_i32 = arith.constant 0 : i32
    %c0_i32_0 = arith.constant 0 : i32
    return %c0_i32, %arg1 : i32, i32
  }
  func.func @transform_3(%arg0: i32, %arg1: i32) -> (i32, i32) {
    %c0_i32 = arith.constant 0 : i32
    return %arg0, %arg1 : i32, i32
  }
}

module attributes {stable_mosaic.version = 11 : i64} {
  func.func @_linear_kernel_single(%arg0: i32, %arg1: i32, %arg2: memref<128x256xbf16, #tpu.memory_space<vmem>>, %arg3: memref<256x256xbf16, #tpu.memory_space<vmem>>, %arg4: memref<1x256xf32, #tpu.memory_space<vmem>>, %arg5: memref<128x256xf32, #tpu.memory_space<vmem>>) attributes {dimension_semantics = [#tpu.dimension_semantics<parallel>, #tpu.dimension_semantics<parallel>], iteration_bounds = array<i64: 1, 1>, scalar_prefetch = 0 : i64, scratch_operands = 0 : i64, tpu.core_type = #tpu.core_type<tc>, window_params = [{transform_indices = @transform_0, window_bounds = array<i64: 128, 256>}, {transform_indices = @transform_1, window_bounds = array<i64: 256, 256>}, {transform_indices = @transform_2, window_bounds = array<i64: 1, 256>}, {transform_indices = @transform_3, window_bounds = array<i64: 128, 256>}]} {
    %c0 = arith.constant 0 : index
    %c0_0 = arith.constant 0 : index
    %0 = vector.load %arg2[%c0, %c0_0] : memref<128x256xbf16, #tpu.memory_space<vmem>>, vector<128x256xbf16>
    %c0_1 = arith.constant 0 : index
    %c0_2 = arith.constant 0 : index
    %1 = vector.load %arg3[%c0_1, %c0_2] : memref<256x256xbf16, #tpu.memory_space<vmem>>, vector<256x256xbf16>
    %cst = arith.constant dense<0.000000e+00> : vector<128x256xf32>
    %2 = tpu.matmul %0, %1, %cst {dimension_numbers = #tpu.dot_dimension_numbers<[1], [0], [0], [1], [0, 0, 1, 1], [], []>} : vector<128x256xbf16>, vector<256x256xbf16>, vector<128x256xf32> -> vector<128x256xf32>
    %c0_3 = arith.constant 0 : index
    %c0_4 = arith.constant 0 : index
    %3 = vector.load %arg4[%c0_3, %c0_4] : memref<1x256xf32, #tpu.memory_space<vmem>>, vector<1x256xf32>
    %4 = vector.broadcast %3 : vector<1x256xf32> to vector<128x256xf32>
    %5 = arith.addf %2, %4 : vector<128x256xf32>
    %c0_5 = arith.constant 0 : index
    %c0_6 = arith.constant 0 : index
    %6 = vector.load %arg5[%c0_5, %c0_6] : memref<128x256xf32, #tpu.memory_space<vmem>>, vector<128x256xf32>
    tpu.vector_store %arg5[%c0_5, %c0_6], %5 {strides = array<i32>} : memref<128x256xf32, #tpu.memory_space<vmem>>, vector<128x256xf32>,
    return
  }
  func.func @transform_0(%arg0: i32, %arg1: i32) -> (i32, i32) {
    %c0_i32 = arith.constant 0 : i32
    %c0_i32_0 = arith.constant 0 : i32
    return %arg0, %c0_i32 : i32, i32
  }
  func.func @transform_1(%arg0: i32, %arg1: i32) -> (i32, i32) {
    %c0_i32 = arith.constant 0 : i32
    %c0_i32_0 = arith.constant 0 : i32
    return %c0_i32, %arg1 : i32, i32
  }
  func.func @transform_2(%arg0: i32, %arg1: i32) -> (i32, i32) {
    %c0_i32 = arith.constant 0 : i32
    %c0_i32_0 = arith.constant 0 : i32
    return %c0_i32, %arg1 : i32, i32
  }
  func.func @transform_3(%arg0: i32, %arg1: i32) -> (i32, i32) {
    %c0_i32 = arith.constant 0 : i32
    return %arg0, %arg1 : i32, i32
  }
}

module attributes {stable_mosaic.version = 11 : i64} {
  func.func @_lin_angular_attn_kernel(%arg0: i32, %arg1: memref<1x64x512xbf16, #tpu.memory_space<vmem>>, %arg2: memref<9x256xf32, #tpu.memory_space<vmem>>, %arg3: memref<256x256xf32, #tpu.memory_space<vmem>>, %arg4: memref<1x64x256xbf16, #tpu.memory_space<vmem>>, %arg5: memref<80x256xf32, #tpu.memory_space<vmem>>) attributes {dimension_semantics = [#tpu.dimension_semantics<parallel>], iteration_bounds = array<i64: 2>, scalar_prefetch = 0 : i64, scratch_operands = 1 : i64, tpu.core_type = #tpu.core_type<tc>, window_params = [{transform_indices = @transform_0, window_bounds = array<i64: 1, 64, 512>}, {pipeline_mode = #tpu.pipeline_mode<synchronous>, transform_indices = @transform_1, window_bounds = array<i64: 9, 256>}, {pipeline_mode = #tpu.pipeline_mode<synchronous>, transform_indices = @transform_2, window_bounds = array<i64: 256, 256>}, {transform_indices = @transform_3, window_bounds = array<i64: 1, 64, 256>}]} {
    %c0 = arith.constant 0 : index
    %c0_0 = arith.constant 0 : index
    %c0_1 = arith.constant 0 : index
    %0 = vector.load %arg1[%c0, %c0_0, %c0_1] : memref<1x64x512xbf16, #tpu.memory_space<vmem>>, vector<1x64x256xbf16>
    %1 = vector.shape_cast %0 : vector<1x64x256xbf16> to vector<64x256xbf16>
    %2 = arith.extf %1 : vector<64x256xbf16> to vector<64x256xf32>
    %c0_2 = arith.constant 0 : index
    %c0_3 = arith.constant 0 : index
    %c256 = arith.constant 256 : index
    %3 = vector.load %arg1[%c0_2, %c0_3, %c256] : memref<1x64x512xbf16, #tpu.memory_space<vmem>>, vector<1x64x256xbf16>
    %4 = vector.shape_cast %3 : vector<1x64x256xbf16> to vector<64x256xbf16>
    %5 = arith.extf %4 : vector<64x256xbf16> to vector<64x256xf32>
    %c0_4 = arith.constant 0 : index
    %c0_5 = arith.constant 0 : index
    %6 = vector.load %arg3[%c0_4, %c0_5] : memref<256x256xf32, #tpu.memory_space<vmem>>, vector<256x256xf32>
    %cst = arith.constant 0.000000e+00 : f32
    %7 = vector.broadcast %cst : f32 to vector<8x256xf32>
    %c0_6 = arith.constant 0 : index
    %c0_7 = arith.constant 0 : index
    %8 = vector.load %arg5[%c0_6, %c0_7] : memref<80x256xf32, #tpu.memory_space<vmem>>, vector<8x256xf32>
    tpu.vector_store %arg5[%c0_6, %c0_7], %7 {strides = array<i32>} : memref<80x256xf32, #tpu.memory_space<vmem>>, vector<8x256xf32>,
    %cst_8 = arith.constant 0.000000e+00 : f32
    %9 = vector.broadcast %cst_8 : f32 to vector<8x256xf32>
    %c72 = arith.constant 72 : index
    %c0_9 = arith.constant 0 : index
    %10 = vector.load %arg5[%c72, %c0_9] : memref<80x256xf32, #tpu.memory_space<vmem>>, vector<8x256xf32>
    tpu.vector_store %arg5[%c72, %c0_9], %9 {strides = array<i32>} : memref<80x256xf32, #tpu.memory_space<vmem>>, vector<8x256xf32>,
    %c8 = arith.constant 8 : index
    %c0_10 = arith.constant 0 : index
    %11 = vector.load %arg5[%c8, %c0_10] : memref<80x256xf32, #tpu.memory_space<vmem>>, vector<64x256xf32>
    tpu.vector_store %arg5[%c8, %c0_10], %5 {strides = array<i32>} : memref<80x256xf32, #tpu.memory_space<vmem>>, vector<64x256xf32>,
    %cst_11 = arith.constant 0.000000e+00 : f32
    %12 = vector.broadcast %cst_11 : f32 to vector<64x256xf32>
    %c4 = arith.constant 4 : index
    %c0_12 = arith.constant 0 : index
    %13 = vector.load %arg5[%c4, %c0_12] : memref<80x256xf32, #tpu.memory_space<vmem>>, vector<64x256xf32>
    %c0_13 = arith.constant 0 : index
    %c0_14 = arith.constant 0 : index
    %14 = vector.load %arg2[%c0_13, %c0_14] : memref<9x256xf32, #tpu.memory_space<vmem>>, vector<1x256xf32>
    %15 = vector.broadcast %14 : vector<1x256xf32> to vector<64x256xf32>
    %16 = arith.mulf %15, %13 : vector<64x256xf32>
    %17 = arith.addf %12, %16 : vector<64x256xf32>
    %c5 = arith.constant 5 : index
    %c0_15 = arith.constant 0 : index
    %18 = vector.load %arg5[%c5, %c0_15] : memref<80x256xf32, #tpu.memory_space<vmem>>, vector<64x256xf32>
    %c1 = arith.constant 1 : index
    %c0_16 = arith.constant 0 : index
    %19 = vector.load %arg2[%c1, %c0_16] : memref<9x256xf32, #tpu.memory_space<vmem>>, vector<1x256xf32>
    %20 = vector.broadcast %19 : vector<1x256xf32> to vector<64x256xf32>
    %21 = arith.mulf %20, %18 : vector<64x256xf32>
    %22 = arith.addf %17, %21 : vector<64x256xf32>
    %c6 = arith.constant 6 : index
    %c0_17 = arith.constant 0 : index
    %23 = vector.load %arg5[%c6, %c0_17] : memref<80x256xf32, #tpu.memory_space<vmem>>, vector<64x256xf32>
    %c2 = arith.constant 2 : index
    %c0_18 = arith.constant 0 : index
    %24 = vector.load %arg2[%c2, %c0_18] : memref<9x256xf32, #tpu.memory_space<vmem>>, vector<1x256xf32>
    %25 = vector.broadcast %24 : vector<1x256xf32> to vector<64x256xf32>
    %26 = arith.mulf %25, %23 : vector<64x256xf32>
    %27 = arith.addf %22, %26 : vector<64x256xf32>
    %c7 = arith.constant 7 : index
    %c0_19 = arith.constant 0 : index
    %28 = vector.load %arg5[%c7, %c0_19] : memref<80x256xf32, #tpu.memory_space<vmem>>, vector<64x256xf32>
    %c3 = arith.constant 3 : index
    %c0_20 = arith.constant 0 : index
    %29 = vector.load %arg2[%c3, %c0_20] : memref<9x256xf32, #tpu.memory_space<vmem>>, vector<1x256xf32>
    %30 = vector.broadcast %29 : vector<1x256xf32> to vector<64x256xf32>
    %31 = arith.mulf %30, %28 : vector<64x256xf32>
    %32 = arith.addf %27, %31 : vector<64x256xf32>
    %c8_21 = arith.constant 8 : index
    %c0_22 = arith.constant 0 : index
    %33 = vector.load %arg5[%c8_21, %c0_22] : memref<80x256xf32, #tpu.memory_space<vmem>>, vector<64x256xf32>
    %c4_23 = arith.constant 4 : index
    %c0_24 = arith.constant 0 : index
    %34 = vector.load %arg2[%c4_23, %c0_24] : memref<9x256xf32, #tpu.memory_space<vmem>>, vector<1x256xf32>
    %35 = vector.broadcast %34 : vector<1x256xf32> to vector<64x256xf32>
    %36 = arith.mulf %35, %33 : vector<64x256xf32>
    %37 = arith.addf %32, %36 : vector<64x256xf32>
    %c9 = arith.constant 9 : index
    %c0_25 = arith.constant 0 : index
    %38 = vector.load %arg5[%c9, %c0_25] : memref<80x256xf32, #tpu.memory_space<vmem>>, vector<64x256xf32>
    %c5_26 = arith.constant 5 : index
    %c0_27 = arith.constant 0 : index
    %39 = vector.load %arg2[%c5_26, %c0_27] : memref<9x256xf32, #tpu.memory_space<vmem>>, vector<1x256xf32>
    %40 = vector.broadcast %39 : vector<1x256xf32> to vector<64x256xf32>
    %41 = arith.mulf %40, %38 : vector<64x256xf32>
    %42 = arith.addf %37, %41 : vector<64x256xf32>
    %c10 = arith.constant 10 : index
    %c0_28 = arith.constant 0 : index
    %43 = vector.load %arg5[%c10, %c0_28] : memref<80x256xf32, #tpu.memory_space<vmem>>, vector<64x256xf32>
    %c6_29 = arith.constant 6 : index
    %c0_30 = arith.constant 0 : index
    %44 = vector.load %arg2[%c6_29, %c0_30] : memref<9x256xf32, #tpu.memory_space<vmem>>, vector<1x256xf32>
    %45 = vector.broadcast %44 : vector<1x256xf32> to vector<64x256xf32>
    %46 = arith.mulf %45, %43 : vector<64x256xf32>
    %47 = arith.addf %42, %46 : vector<64x256xf32>
    %c11 = arith.constant 11 : index
    %c0_31 = arith.constant 0 : index
    %48 = vector.load %arg5[%c11, %c0_31] : memref<80x256xf32, #tpu.memory_space<vmem>>, vector<64x256xf32>
    %c7_32 = arith.constant 7 : index
    %c0_33 = arith.constant 0 : index
    %49 = vector.load %arg2[%c7_32, %c0_33] : memref<9x256xf32, #tpu.memory_space<vmem>>, vector<1x256xf32>
    %50 = vector.broadcast %49 : vector<1x256xf32> to vector<64x256xf32>
    %51 = arith.mulf %50, %48 : vector<64x256xf32>
    %52 = arith.addf %47, %51 : vector<64x256xf32>
    %c12 = arith.constant 12 : index
    %c0_34 = arith.constant 0 : index
    %53 = vector.load %arg5[%c12, %c0_34] : memref<80x256xf32, #tpu.memory_space<vmem>>, vector<64x256xf32>
    %c8_35 = arith.constant 8 : index
    %c0_36 = arith.constant 0 : index
    %54 = vector.load %arg2[%c8_35, %c0_36] : memref<9x256xf32, #tpu.memory_space<vmem>>, vector<1x256xf32>
    %55 = vector.broadcast %54 : vector<1x256xf32> to vector<64x256xf32>
    %56 = arith.mulf %55, %53 : vector<64x256xf32>
    %57 = arith.addf %52, %56 : vector<64x256xf32>
    %58 = arith.mulf %2, %2 : vector<64x256xf32>
    %cst_37 = arith.constant dense<0.000000e+00> : vector<64x256xf32>
    %59 = tpu.matmul %58, %6, %cst_37 {dimension_numbers = #tpu.dot_dimension_numbers<[1], [0], [0], [1], [0, 0, 1, 1], [], []>} : vector<64x256xf32>, vector<256x256xf32>, vector<64x256xf32> -> vector<64x256xf32>
    %cst_38 = arith.constant 9.99999996E-13 : f32
    %60 = vector.broadcast %cst_38 : f32 to vector<64x256xf32>
    %61 = arith.addf %59, %60 : vector<64x256xf32>
    %62 = math.rsqrt %61 : vector<64x256xf32>
    %63 = arith.mulf %2, %62 : vector<64x256xf32>
    %cst_39 = arith.constant dense<0.000000e+00> : vector<256x256xf32>
    %64 = tpu.matmul %63, %5, %cst_39 {dimension_numbers = #tpu.dot_dimension_numbers<[0], [0], [1], [1], [0, 1, 1, 1], [], []>} : vector<64x256xf32>, vector<64x256xf32>, vector<256x256xf32> -> vector<256x256xf32>
    %65 = arith.mulf %64, %6 : vector<256x256xf32>
    %cst_40 = arith.constant dense<0.000000e+00> : vector<64x256xf32>
    %66 = tpu.matmul %63, %65, %cst_40 {dimension_numbers = #tpu.dot_dimension_numbers<[1], [0], [0], [1], [0, 0, 1, 1], [], []>} : vector<64x256xf32>, vector<256x256xf32>, vector<64x256xf32> -> vector<64x256xf32>
    %cst_41 = arith.constant 5.000000e-01 : f32
    %67 = vector.broadcast %cst_41 : f32 to vector<64x256xf32>
    %68 = arith.mulf %67, %5 : vector<64x256xf32>
    %cst_42 = arith.constant 0.318309873 : f32
    %69 = vector.broadcast %cst_42 : f32 to vector<64x256xf32>
    %70 = arith.mulf %69, %66 : vector<64x256xf32>
    %71 = arith.addf %68, %70 : vector<64x256xf32>
    %72 = arith.mulf %71, %71 : vector<64x256xf32>
    %cst_43 = arith.constant dense<0.000000e+00> : vector<64x256xf32>
    %73 = tpu.matmul %72, %6, %cst_43 {dimension_numbers = #tpu.dot_dimension_numbers<[1], [0], [0], [1], [0, 0, 1, 1], [], []>} : vector<64x256xf32>, vector<256x256xf32>, vector<64x256xf32> -> vector<64x256xf32>
    %cst_44 = arith.constant 9.99999996E-13 : f32
    %74 = vector.broadcast %cst_44 : f32 to vector<64x256xf32>
    %75 = arith.addf %73, %74 : vector<64x256xf32>
    %76 = math.rsqrt %75 : vector<64x256xf32>
    %77 = arith.mulf %71, %76 : vector<64x256xf32>
    %78 = arith.addf %77, %57 : vector<64x256xf32>
    %79 = arith.truncf %78 : vector<64x256xf32> to vector<64x256xbf16>
    %c0_45 = arith.constant 0 : index
    %c0_46 = arith.constant 0 : index
    %c0_47 = arith.constant 0 : index
    %80 = vector.load %arg4[%c0_45, %c0_46, %c0_47] : memref<1x64x256xbf16, #tpu.memory_space<vmem>>, vector<1x64x256xbf16>
    %81 = vector.shape_cast %80 : vector<1x64x256xbf16> to vector<64x256xbf16>
    %82 = vector.shape_cast %79 : vector<64x256xbf16> to vector<1x64x256xbf16>
    tpu.vector_store %arg4[%c0_45, %c0_46, %c0_47], %82 {strides = array<i32>} : memref<1x64x256xbf16, #tpu.memory_space<vmem>>, vector<1x64x256xbf16>,
    return
  }
  func.func @transform_0(%arg0: i32) -> (i32, i32, i32) {
    %c0_i32 = arith.constant 0 : i32
    %c0_i32_0 = arith.constant 0 : i32
    %c0_i32_1 = arith.constant 0 : i32
    return %arg0, %c0_i32, %c0_i32_0 : i32, i32, i32
  }
  func.func @transform_1(%arg0: i32) -> (i32, i32) {
    %c0_i32 = arith.constant 0 : i32
    %c0_i32_0 = arith.constant 0 : i32
    %c0_i32_1 = arith.constant 0 : i32
    return %c0_i32, %c0_i32_0 : i32, i32
  }
  func.func @transform_2(%arg0: i32) -> (i32, i32) {
    %c0_i32 = arith.constant 0 : i32
    %c0_i32_0 = arith.constant 0 : i32
    %c0_i32_1 = arith.constant 0 : i32
    return %c0_i32, %c0_i32_0 : i32, i32
  }
  func.func @transform_3(%arg0: i32) -> (i32, i32, i32) {
    %c0_i32 = arith.constant 0 : i32
    %c0_i32_0 = arith.constant 0 : i32
    %c0_i32_1 = arith.constant 0 : i32
    return %arg0, %c0_i32, %c0_i32_0 : i32, i32, i32
  }
}

</mosaic_0001>

<bundles_post_ra>
// kernel: _lambda_.5
= control target key start
LH: loop header
LB: loop body
LE: loop exit
PB: predicated region body
PF: predicated region fallthrough
CT: control target
= control target key end

     0   :  { %s862_s0 = inlined_call_operand.vmem [shape: bf16[128,256], index: 0, kind: input, shape index: {}]   ;;  %s863_s1 = inlined_call_operand.vmem [shape: bf16[256,256], index: 1, kind: input, shape index: {}]   ;;  %s864_s2 = inlined_call_operand.vmem [shape: f32[1,256], index: 2, kind: input, shape index: {}]   ;;  %s865_s3 = inlined_call_operand.hbm [shape: f32[128,256], index: 3, kind: output, shape index: {}]  }
   0x1   :  { %v559_v0 = vld [vmem:[%s863_s1 + $0x74] ss:$8 sps:$4 sm:$0xff]   ;;  %v561_v1 = vld [vmem:[%s863_s1 + $0x70] ss:$8 sps:$4 sm:$0xff]   ;;  %v562_v2 = vld [vmem:[%s863_s1 + $0x64] ss:$8 sps:$4 sm:$0xff]  }
   0x2   :  { %315 = vmatprep.subr.bf16.mxu0 %v559_v0  ;;  %524 = vmatprep.subr.bf16.mxu1 %v559_v0  ;;  %v564_v3 = vld [vmem:[%s863_s1 + $0x60] ss:$8 sps:$4 sm:$0xff]   ;;  %v565_v4 = vld [vmem:[%s863_s1 + $0x54] ss:$8 sps:$4 sm:$0xff]   ;;  %v567_v5 = vld [vmem:[%s863_s1 + $0x50] ss:$8 sps:$4 sm:$0xff]  }
   0x3   :  { %316 = vmatpush1.bf16.msra.mxu0 %v561_v1  ;;  %540 = vmatpush1.bf16.msra.mxu1 %v561_v1  ;;  %v568_v6 = vld [vmem:[%s863_s1 + $0x44] ss:$8 sps:$4 sm:$0xff]   ;;  %v570_v7 = vld [vmem:[%s863_s1 + $0x40] ss:$8 sps:$4 sm:$0xff]   ;;  %v571_v8 = vld [vmem:[%s863_s1 + $0x34] ss:$8 sps:$4 sm:$0xff]  }
   0x4   :  { %317 = vmatprep.subr.bf16.mxu0 %v562_v2  ;;  %525 = vmatprep.subr.bf16.mxu1 %v562_v2  ;;  %v573_v9 = vld [vmem:[%s863_s1 + $0x30] ss:$8 sps:$4 sm:$0xff]   ;;  %v574_v10 = vld [vmem:[%s863_s1 + $0x24] ss:$8 sps:$4 sm:$0xff]   ;;  %v576_v11 = vld [vmem:[%s863_s1 + $0x20] ss:$8 sps:$4 sm:$0xff]  }
   0x5   :  { %v577_v12 = vld [vmem:[%s863_s1 + $0x14] ss:$8 sps:$4 sm:$0xff]   ;;  %v609_v13 = vld [vmem:[%s862_s0 + $0x4] ss:$8 sps:$4 sm:$0xff]   ;;  %v579_v14 = vld [vmem:[%s863_s1 + $0x10] ss:$8 sps:$4 sm:$0xff]  }
   0x6   :  { %v612_v15 = vld [vmem:[%s862_s0 + $0x44] ss:$8 sps:$4 sm:$0xff]   ;;  %347 = vmatprep.mubr.bf16.mxu0 %v609_v13  ;;  %v582_v17 = vld [vmem:[%s863_s1] ss:$8 sps:$4 sm:$0xff]   ;;  %v583_v18 = vld [vmem:[%s863_s1 + $0xf4] ss:$8 sps:$4 sm:$0xff]  }
   0x7   :  { %318 = vmatpush1.bf16.msra.mxu0 %v564_v3  ;;  %541 = vmatpush1.bf16.msra.mxu1 %v564_v3  ;;  %v580_v16 = vld [vmem:[%s863_s1 + $0x4] ss:$8 sps:$4 sm:$0xff]   ;;  %v585_v19 = vld [vmem:[%s863_s1 + $0xf0] ss:$8 sps:$4 sm:$0xff]  }
   0x8   :  { %319 = vmatprep.subr.bf16.mxu0 %v565_v4  ;;  %526 = vmatprep.subr.bf16.mxu1 %v565_v4  ;;  %v586_v20 = vld [vmem:[%s863_s1 + $0xe4] ss:$8 sps:$4 sm:$0xff]  }
   0x9   :  { %387 = vmatprep.mubr.bf16.mxu1 %v612_v15 }
   0xb   :  { %320 = vmatpush1.bf16.msra.mxu0 %v567_v5  ;;  %542 = vmatpush1.bf16.msra.mxu1 %v567_v5 }
   0xc   :  { %321 = vmatprep.subr.bf16.mxu0 %v568_v6  ;;  %527 = vmatprep.subr.bf16.mxu1 %v568_v6 }
   0xf   :  { %322 = vmatpush1.bf16.msra.mxu0 %v570_v7  ;;  %543 = vmatpush1.bf16.msra.mxu1 %v570_v7 }
  0x10   :  { %323 = vmatprep.subr.bf16.mxu0 %v571_v8  ;;  %528 = vmatprep.subr.bf16.mxu1 %v571_v8 }
  0x13   :  { %324 = vmatpush1.bf16.msra.mxu0 %v573_v9  ;;  %544 = vmatpush1.bf16.msra.mxu1 %v573_v9 }
  0x14   :  { %325 = vmatprep.subr.bf16.mxu0 %v574_v10  ;;  %529 = vmatprep.subr.bf16.mxu1 %v574_v10 }
  0x17   :  { %326 = vmatpush1.bf16.msra.mxu0 %v576_v11  ;;  %545 = vmatpush1.bf16.msra.mxu1 %v576_v11 }
  0x18   :  { %327 = vmatprep.subr.bf16.mxu0 %v577_v12  ;;  %530 = vmatprep.subr.bf16.mxu1 %v577_v12 }
  0x1b   :  { %328 = vmatpush1.bf16.msra.mxu0 %v579_v14  ;;  %546 = vmatpush1.bf16.msra.mxu1 %v579_v14 }
  0x1c   :  { %329 = vmatprep.subr.bf16.mxu0 %v580_v16  ;;  %531 = vmatprep.subr.bf16.mxu1 %v580_v16 }
  0x1f   :  { %330 = vmatpush1.bf16.msra.mxu0 %v582_v17  ;;  %547 = vmatpush1.bf16.msra.mxu1 %v582_v17 }
  0x20   :  { %331 = vmatprep.subr.bf16.mxu0 %v583_v18  ;;  %532 = vmatprep.subr.bf16.mxu1 %v583_v18 }
  0x21   :  { %8 = vsyncpa [#allocation3], 0  ;;  %v588_v21 = vld [vmem:[%s863_s1 + $0xe0] ss:$8 sps:$4 sm:$0xff]   ;;  %v589_v22 = vld [vmem:[%s863_s1 + $0xd4] ss:$8 sps:$4 sm:$0xff]   ;;  %v65_v48 = vlaneseq }
  0x22   :  { %v591_v23 = vld [vmem:[%s863_s1 + $0xd0] ss:$8 sps:$4 sm:$0xff]   ;;  %v592_v24 = vld [vmem:[%s863_s1 + $0xc4] ss:$8 sps:$4 sm:$0xff]   ;;  %v594_v25 = vld [vmem:[%s863_s1 + $0xc0] ss:$8 sps:$4 sm:$0xff]  }
  0x23   :  { %332 = vmatpush2.bf16.msra.mxu0 %v585_v19  ;;  %548 = vmatpush2.bf16.msra.mxu1 %v585_v19  ;;  %v595_v26 = vld [vmem:[%s863_s1 + $0xb4] ss:$8 sps:$4 sm:$0xff]   ;;  %v597_v27 = vld [vmem:[%s863_s1 + $0xb0] ss:$8 sps:$4 sm:$0xff]   ;;  %v598_v28 = vld [vmem:[%s863_s1 + $0xa4] ss:$8 sps:$4 sm:$0xff]  }
  0x24   :  { %333 = vmatprep.subr.bf16.mxu0 %v586_v20  ;;  %533 = vmatprep.subr.bf16.mxu1 %v586_v20  ;;  %v600_v29 = vld [vmem:[%s863_s1 + $0xa0] ss:$8 sps:$4 sm:$0xff]   ;;  %v601_v30 = vld [vmem:[%s863_s1 + $0x94] ss:$8 sps:$4 sm:$0xff]   ;;  %v603_v31 = vld [vmem:[%s863_s1 + $0x90] ss:$8 sps:$4 sm:$0xff]  }
  0x25   :  { %v604_v32 = vld [vmem:[%s863_s1 + $0x84] ss:$8 sps:$4 sm:$0xff]   ;;  %v606_v33 = vld [vmem:[%s863_s1 + $0x80] ss:$8 sps:$4 sm:$0xff]   ;;  %v613_v36 = vld [vmem:[%s862_s0 + $0x14] ss:$8 sps:$4 sm:$0xff]  }
  0x26   :  { %v607_v34 = vld [vmem:[%s862_s0] ss:$8 sps:$4 sm:$0xff]   ;;  %v615_v37 = vld [vmem:[%s862_s0 + $0x54] ss:$8 sps:$4 sm:$0xff]   ;;  %v617_v38 = vld [vmem:[%s862_s0 + $0x10] ss:$8 sps:$4 sm:$0xff]  }
  0x27   :  { %334 = vmatpush2.bf16.msra.mxu0 %v588_v21  ;;  %549 = vmatpush2.bf16.msra.mxu1 %v588_v21  ;;  %v610_v35 = vld [vmem:[%s862_s0 + $0x40] ss:$8 sps:$4 sm:$0xff]   ;;  %v618_v39 = vld [vmem:[%s862_s0 + $0x50] ss:$8 sps:$4 sm:$0xff]   ;;  %v619_v40 = vld [vmem:[%s862_s0 + $0x24] ss:$8 sps:$4 sm:$0xff]  }
  0x28   :  { %335 = vmatprep.subr.bf16.mxu0 %v589_v22  ;;  %534 = vmatprep.subr.bf16.mxu1 %v589_v22  ;;  %v621_v41 = vld [vmem:[%s862_s0 + $0x64] ss:$8 sps:$4 sm:$0xff]   ;;  %v623_v42 = vld [vmem:[%s862_s0 + $0x20] ss:$8 sps:$4 sm:$0xff]   ;;  %v625_v44 = vld [vmem:[%s862_s0 + $0x34] ss:$8 sps:$4 sm:$0xff]  }
  0x29   :  { %v624_v43 = vld [vmem:[%s862_s0 + $0x60] ss:$8 sps:$4 sm:$0xff]   ;;  %v627_v45 = vld [vmem:[%s862_s0 + $0x74] ss:$8 sps:$4 sm:$0xff]   ;;  %v629_v46 = vld [vmem:[%s862_s0 + $0x30] ss:$8 sps:$4 sm:$0xff]  }
  0x2a   :  { %v630_v47 = vld [vmem:[%s862_s0 + $0x70] ss:$8 sps:$4 sm:$0xff]   ;;  %v66_v49 = vshrl.u32 %v65_v48, 7  ;;  %v63_v51 = vld [vmem:[%s864_s2] sm:$0x3]  ;;  %s653_s0 = smov [#allocation2]  }
  0x2b   :  { %336 = vmatpush2.bf16.msra.mxu0 %v591_v23  ;;  %550 = vmatpush2.bf16.msra.mxu1 %v591_v23  ;;  %s465_s2 = sshll.u32 %s653_s0, 4  ;;  %s466_s2 = int_to_ptr.vmem [resolvable:$true] %s465_s2 }
  0x2c   :  { %337 = vmatprep.subr.bf16.mxu0 %v592_v24  ;;  %535 = vmatprep.subr.bf16.mxu1 %v592_v24  ;;  %v67_v50 = vsub.s32 0, %v66_v49  ;;  %v71_v52 = vsub.s32 1, %v66_v49  ;;  %s631_s28 = scalar_lea.vmem %s466_s2, 4096  ;;  %p636_p1 = scmp.lt.s32.totalorder %s466_s2, %s466_s2 }
  0x2d   :  { %p632_p0 = scmp.ne.s32.totalorder %s466_s2, %s631_s28  ;;  %p637_p2 = scmp.lt.s32.totalorder %s631_s28, %s631_s28 }
  0x2e   :  { %v823_v53 = vrot.slane %v63_v51, %v67_v50  ;;  %v825_v54 = vrot.slane %v63_v51, %v71_v52 }
  0x2f   :  { %338 = vmatpush2.bf16.msra.mxu0 %v594_v25  ;;  %551 = vmatpush2.bf16.msra.mxu1 %v594_v25  ;;  %p638_p3 = por %p637_p2, %p636_p1 }
  0x30   :  { %339 = vmatprep.subr.bf16.mxu0 %v595_v26  ;;  %536 = vmatprep.subr.bf16.mxu1 %v595_v26 }
  0x31   :  { %p639_p4 = pnand %p638_p3, %p632_p0 }
  0x33   :  { %340 = vmatpush2.bf16.msra.mxu0 %v597_v27  ;;  %552 = vmatpush2.bf16.msra.mxu1 %v597_v27 }
  0x34   :  { %341 = vmatprep.subr.bf16.mxu0 %v598_v28  ;;  %537 = vmatprep.subr.bf16.mxu1 %v598_v28 }
  0x37   :  { %342 = vmatpush2.bf16.msra.mxu0 %v600_v29  ;;  %553 = vmatpush2.bf16.msra.mxu1 %v600_v29 }
  0x38   :  { %343 = vmatprep.subr.bf16.mxu0 %v601_v30  ;;  %538 = vmatprep.subr.bf16.mxu1 %v601_v30 }
  0x3b   :  { %344 = vmatpush2.bf16.msra.mxu0 %v603_v31  ;;  %554 = vmatpush2.bf16.msra.mxu1 %v603_v31 }
  0x3c   :  { %345 = vmatprep.subr.bf16.mxu0 %v604_v32  ;;  %539 = vmatprep.subr.bf16.mxu1 %v604_v32 }
  0x3f   :  { %346 = vmatpush2.bf16.msra.mxu0 %v606_v33  ;;  %555 = vmatpush2.bf16.msra.mxu1 %v606_v33 }
  0x42   :  { %348 = vmatmul.mubr.bf16.vlgmr.msra.gmra.mxu0 %v607_v34  ;;  %388 = vmatmul.mubr.bf16.vlgmr.msra.gmra.mxu1 %v610_v35 }
  0x43   :  { %357 = vmatprep.mubr.bf16.mxu0 %v613_v36  ;;  %397 = vmatprep.mubr.bf16.mxu1 %v615_v37 }
  0x4a   :  { %358 = vmatmul.mubr.bf16.gmra.mxu0 %v617_v38  ;;  %398 = vmatmul.mubr.bf16.gmra.mxu1 %v618_v39 }
  0x4b   :  { %367 = vmatprep.mubr.bf16.mxu0 %v619_v40  ;;  %407 = vmatprep.mubr.bf16.mxu1 %v621_v41 }
  0x52   :  { %368 = vmatmul.mubr.bf16.gmra.mxu0 %v623_v42  ;;  %408 = vmatmul.mubr.bf16.gmra.mxu1 %v624_v43 }
  0x53   :  { %377 = vmatprep.mubr.bf16.mxu0 %v625_v44  ;;  %417 = vmatprep.mubr.bf16.mxu1 %v627_v45 }
  0x5a   :  { %378 = vmatmul.mubr.bf16.gmra.mxu0 %v629_v46  ;;  %418 = vmatmul.mubr.bf16.gmra.mxu1 %v630_v47 }
 0x102   :  { %v349_v55 = vpop.f32.mrf.mxu0  ;;  %v389_v56 = vpop.f32.mrf.mxu1 }
 0x103   :  { %v350_v57 = vadd.f32 %v349_v55, %v823_v53  ;;  %v390_v58 = vadd.f32 %v389_v56, %v823_v53 }
 0x104   :  { %v351_v59 = vpop.f32.mrf.mxu0  ;;  %v391_v60 = vpop.f32.mrf.mxu1 }
 0x105   :  { %428 = vst [vmem:[#allocation2] sm:$0xff] %v350_v57  ;;  %444 = vst [vmem:[#allocation2 + $0x80] sm:$0xff] %v390_v58  ;;  %v352_v61 = vadd.f32 %v351_v59, %v825_v54  ;;  %v392_v62 = vadd.f32 %v391_v60, %v825_v54 }
 0x106   :  { %v353_v63 = vpop.f32.mrf.mxu0  ;;  %v393_v0 = vpop.f32.mrf.mxu1 }
 0x107   :  { %429 = vst [vmem:[#allocation2 + $0x8] sm:$0xff] %v352_v61  ;;  %445 = vst [vmem:[#allocation2 + $0x88] sm:$0xff] %v392_v62  ;;  %v354_v1 = vadd.f32 %v353_v63, %v823_v53  ;;  %v394_v2 = vadd.f32 %v393_v0, %v823_v53 }
 0x108   :  { %v355_v3 = vpop.f32.mrf.mxu0  ;;  %v395_v4 = vpop.f32.mrf.mxu1 }
 0x109   :  { %430 = vst [vmem:[#allocation2 + $0x10] sm:$0xff] %v354_v1  ;;  %446 = vst [vmem:[#allocation2 + $0x90] sm:$0xff] %v394_v2  ;;  %v356_v5 = vadd.f32 %v355_v3, %v825_v54  ;;  %v396_v6 = vadd.f32 %v395_v4, %v825_v54 }
 0x10a   :  { %v359_v7 = vpop.f32.mrf.mxu0  ;;  %v399_v8 = vpop.f32.mrf.mxu1 }
 0x10b   :  { %431 = vst [vmem:[#allocation2 + $0x18] sm:$0xff] %v356_v5  ;;  %447 = vst [vmem:[#allocation2 + $0x98] sm:$0xff] %v396_v6  ;;  %v360_v9 = vadd.f32 %v359_v7, %v823_v53  ;;  %v400_v10 = vadd.f32 %v399_v8, %v823_v53 }
 0x10c   :  { %v361_v11 = vpop.f32.mrf.mxu0  ;;  %v401_v12 = vpop.f32.mrf.mxu1 }
 0x10d   :  { %432 = vst [vmem:[#allocation2 + $0x20] sm:$0xff] %v360_v9  ;;  %448 = vst [vmem:[#allocation2 + $0xa0] sm:$0xff] %v400_v10  ;;  %v362_v13 = vadd.f32 %v361_v11, %v825_v54  ;;  %v402_v14 = vadd.f32 %v401_v12, %v825_v54 }
 0x10e   :  { %v363_v15 = vpop.f32.mrf.mxu0  ;;  %v403_v16 = vpop.f32.mrf.mxu1 }
 0x10f   :  { %433 = vst [vmem:[#allocation2 + $0x28] sm:$0xff] %v362_v13  ;;  %449 = vst [vmem:[#allocation2 + $0xa8] sm:$0xff] %v402_v14  ;;  %v364_v17 = vadd.f32 %v363_v15, %v823_v53  ;;  %v404_v18 = vadd.f32 %v403_v16, %v823_v53 }
 0x110   :  { %v365_v19 = vpop.f32.mrf.mxu0  ;;  %v405_v20 = vpop.f32.mrf.mxu1 }
 0x111   :  { %434 = vst [vmem:[#allocation2 + $0x30] sm:$0xff] %v364_v17  ;;  %450 = vst [vmem:[#allocation2 + $0xb0] sm:$0xff] %v404_v18  ;;  %v366_v21 = vadd.f32 %v365_v19, %v825_v54  ;;  %v406_v22 = vadd.f32 %v405_v20, %v825_v54 }
 0x112   :  { %v369_v23 = vpop.f32.mrf.mxu0  ;;  %v409_v24 = vpop.f32.mrf.mxu1 }
 0x113   :  { %435 = vst [vmem:[#allocation2 + $0x38] sm:$0xff] %v366_v21  ;;  %451 = vst [vmem:[#allocation2 + $0xb8] sm:$0xff] %v406_v22  ;;  %v370_v25 = vadd.f32 %v369_v23, %v823_v53  ;;  %v410_v26 = vadd.f32 %v409_v24, %v823_v53 }
 0x114   :  { %v371_v27 = vpop.f32.mrf.mxu0  ;;  %v411_v28 = vpop.f32.mrf.mxu1 }
 0x115   :  { %436 = vst [vmem:[#allocation2 + $0x40] sm:$0xff] %v370_v25  ;;  %452 = vst [vmem:[#allocation2 + $0xc0] sm:$0xff] %v410_v26  ;;  %v372_v29 = vadd.f32 %v371_v27, %v825_v54  ;;  %v412_v30 = vadd.f32 %v411_v28, %v825_v54 }
 0x116   :  { %v373_v31 = vpop.f32.mrf.mxu0  ;;  %v413_v32 = vpop.f32.mrf.mxu1 }
 0x117   :  { %437 = vst [vmem:[#allocation2 + $0x48] sm:$0xff] %v372_v29  ;;  %453 = vst [vmem:[#allocation2 + $0xc8] sm:$0xff] %v412_v30  ;;  %v374_v33 = vadd.f32 %v373_v31, %v823_v53  ;;  %v414_v34 = vadd.f32 %v413_v32, %v823_v53 }
 0x118   :  { %v375_v35 = vpop.f32.mrf.mxu0  ;;  %v415_v36 = vpop.f32.mrf.mxu1 }
 0x119   :  { %438 = vst [vmem:[#allocation2 + $0x50] sm:$0xff] %v374_v33  ;;  %454 = vst [vmem:[#allocation2 + $0xd0] sm:$0xff] %v414_v34  ;;  %v376_v37 = vadd.f32 %v375_v35, %v825_v54  ;;  %v416_v38 = vadd.f32 %v415_v36, %v825_v54 }
 0x11a   :  { %v379_v39 = vpop.f32.mrf.mxu0  ;;  %v419_v40 = vpop.f32.mrf.mxu1 }
 0x11b   :  { %439 = vst [vmem:[#allocation2 + $0x58] sm:$0xff] %v376_v37  ;;  %455 = vst [vmem:[#allocation2 + $0xd8] sm:$0xff] %v416_v38  ;;  %v380_v41 = vadd.f32 %v379_v39, %v823_v53  ;;  %v420_v42 = vadd.f32 %v419_v40, %v823_v53 }
 0x11c   :  { %v381_v43 = vpop.f32.mrf.mxu0  ;;  %v421_v44 = vpop.f32.mrf.mxu1 }
 0x11d   :  { %440 = vst [vmem:[#allocation2 + $0x60] sm:$0xff] %v380_v41  ;;  %456 = vst [vmem:[#allocation2 + $0xe0] sm:$0xff] %v420_v42  ;;  %v382_v45 = vadd.f32 %v381_v43, %v825_v54  ;;  %v422_v46 = vadd.f32 %v421_v44, %v825_v54 }
 0x11e   :  { %v383_v47 = vpop.f32.mrf.mxu0  ;;  %v423_v48 = vpop.f32.mrf.mxu1 }
 0x11f   :  { %441 = vst [vmem:[#allocation2 + $0x68] sm:$0xff] %v382_v45  ;;  %457 = vst [vmem:[#allocation2 + $0xe8] sm:$0xff] %v422_v46  ;;  %v384_v49 = vadd.f32 %v383_v47, %v823_v53  ;;  %v424_v50 = vadd.f32 %v423_v48, %v823_v53 }
 0x120   :  { %v385_v51 = vpop.f32.mrf.mxu0  ;;  %v425_v52 = vpop.f32.mrf.mxu1 }
 0x121   :  { %442 = vst [vmem:[#allocation2 + $0x70] sm:$0xff] %v384_v49  ;;  %458 = vst [vmem:[#allocation2 + $0xf0] sm:$0xff] %v424_v50  ;;  %v386_v55 = vadd.f32 %v385_v51, %v825_v54  ;;  %v426_v56 = vadd.f32 %v425_v52, %v825_v54 }
 0x123   :  { %443 = vst [vmem:[#allocation2 + $0x78] sm:$0xff] %v386_v55  ;;  %459 = vst [vmem:[#allocation2 + $0xf8] sm:$0xff] %v426_v56 }
 0x124   :  { %642 = shalt.err (!%p639_p4)
}
 0x125   :  { %s654_s29 = smov 256   ;;  %s655_s30 = smov 16  }
 0x126   :  { %471 = dma.vmem_to_hbm [thread:$0]  %s466_s2, 4096, %s865_s3, [#allocation3], %s654_s29, %s654_s29, %s655_s30  }
 0x127   :  { %651 = dma.done.wait [#allocation3], 4096  }
 0x128   :  { %652 = vsyncadd [#allocation3], 4294963200 }
 0x129   :  { %475 = vsyncpa [#allocation3], 1 }

// kernel: _lambda_.3
= control target key start
LH: loop header
LB: loop body
LE: loop exit
PB: predicated region body
PF: predicated region fallthrough
CT: control target
= control target key end

     0   :  { %8 = vsyncpa [#allocation3], 0  ;;  %s1370_s12 = smov 0   ;;  %s1372_s13 = smov 0   ;;  %s1649_s0 = inlined_call_operand.hbm [shape: f32[128,256], index: 0, kind: input, shape index: {}]   ;;  %s1650_s1 = inlined_call_operand.vmem [shape: bf16[256,512], index: 1, kind: input, shape index: {}]   ;;  %s1651_s2 = inlined_call_operand.vmem [shape: f32[1,512], index: 2, kind: input, shape index: {}]   ;;  %s1652_s3 = inlined_call_operand.vmem [shape: bf16[128,512], index: 3, kind: output, shape index: {}]  }
   0x1   :  { %s1374_s14 = smov 0   ;;  %s1376_s15 = smov 0  }
   0x2   :  { %s1378_s16 = smov 0  }
   0x3 LB: > { %s1060_s17 = sadd.s32 4294967295, %s1345_s16   ;;  %s23_s18 = sadd.s32 1, %s1341_s15  ;;  %s1345_s16 = sphi %s1378_s16, %s14_s16   ;;  %s1341_s15 = sphi %s1376_s15, %s1661_s15   ;;  %s1337_s14 = sphi %s1374_s14, %s1660_s14   ;;  %s1333_s13 = sphi %s1372_s13, %s1659_s13   ;;  %s1329_s12 = sphi %s1370_s12, %s1658_s12  }
   0x4   : > { %p24_p0 = scmp.ge.s32.totalorder %s23_s18, 2  ;;  %s59_s19 = sadd.s32 1, %s1333_s13 }
   0x5   : > { %p66_p1 = scmp.ne.s32.totalorder %s1333_s13, %s1329_s12  ;;  %p67_p2 = scmp.eq.s32.totalorder %s1345_s16, 0 }
   0x6   : > { %s1663_s18 = smov (%p24_p0, %s23_s18), 0  ;;  %p124_p4 = scmp.eq.s32.totalorder %s1060_s17, 1 }
   0x7   : > { %p1403_p3 = por %p67_p2, %p66_p1  ;;  %s56_s21 = ssub.s32 %s1341_s15, %s1663_s18 }
   0x8   : > { %p1062_p5 = scmp.ge.s32.totalorder %s1345_s16, 1  ;;  %p57_p6 = scmp.eq.s32.totalorder %s56_s21, 0 }
   0x9   : > { %p1410_p7 = por %p124_p4, %p66_p1  ;;  %p137_p8 = scmp.lt.s32.totalorder %s1345_s16, 3 }
   0xa   : > { %s1416_s23 = scalar_select %p57_p6, %s1333_s13, %s59_s19  }
   0xb   : > { %s1654_s22 = scalar_select %p1410_p7, 1, 0 }
   0xc   : > { %p1418_p9 = pnand %p1062_p5, %p137_p8  ;;  %p1422_p10 = scmp.eq.s32.totalorder %s1060_s17, 0 }
   0xd   : > { %s1347_s26 = smov [#allocation2]  }
   0xe   : > { %p1180_p11 = pneg %p1418_p9  ;;  %s153_s27 = sshll.u32 %s1347_s26, 4  ;;  %s154_s27 = int_to_ptr.vmem [resolvable:$true] %s153_s27 }
   0xf   : > { %s1288_s28 = scalar_lea.vmem %s154_s27, 4096  ;;  %p1296_p4 = scmp.lt.s32.totalorder %s154_s27, %s154_s27 }
  0x10   : > { %p1181_p12 = pnand %p1422_p10, %p1180_p11  ;;  %p1289_p0 = scmp.ne.s32.totalorder %s154_s27, %s1288_s28 }
  0x11   : > { %p1297_p5 = scmp.lt.s32.totalorder %s1288_s28, %s1288_s28 }
  0x12   : > { %p1279_p13 = pneg %p1181_p12 }
  0x13   : > { %p1298_p6 = por %p1297_p5, %p1296_p4 }
  0x14   : > { %p1291_p1 = pnand %p1289_p0, %p1279_p13 }
  0x16   : > { %p1292_p2 = pneg %p1291_p1 }
  0x18   : > { %p1299_p8 = pnand %p1298_p6, %p1292_p2 }
  0x1a   : > { %1302 = shalt.err (!%p1299_p8)
}
  0x1b   : > { %s1348_s29 = smov 256   ;;  %s1349_s30 = smov 16  }
  0x1c   : > { %1183 = dma.hbm_to_vmem [thread:$0]  (!%p1181_p12), %s1649_s0, 4096, %s154_s27, [#allocation3], %s1348_s29, %s1348_s29, %s1349_s30  }
  0x1d   : > { %p1064_p7 = scmp.ge.s32.totalorder %s1345_s16, 2 }
  0x1f   : > { %163 = sbr.rel (%p1064_p7) target bundleno = 56 (0x38), region = 20 }
  0x24   : > { %166 = sbr.rel (!%p1403_p3) target bundleno = 56 (0x38), region = 24  ;;  %s168_s6 = sand.u32 (%p1403_p3), 1, %s1333_s13  }
  0x25   : > { %s1126_s7 = sshll.u32 (%p1403_p3), %s1341_s15, 3  ;;  %s1065_s8 = sshll.u32 (%p1403_p3), %s168_s6, 8 }
  0x26   : > { %s1441_s11 = scalar_lea.vmem (%p1403_p3), %s1650_s1, %s1126_s7  ;;  %s1446_s17 = scalar_lea.vmem (%p1403_p3), [#allocation4], %s1065_s8 }
  0x27   : > { %v264_v0 = vld [vmem:[%s1441_s11] sm:$0xff] (%p1403_p3)  ;;  %v266_v1 = vld [vmem:[%s1441_s11 + $0x10] sm:$0xff] (%p1403_p3) }
  0x28   : > { %v268_v2 = vld [vmem:[%s1441_s11 + $0x20] sm:$0xff] (%p1403_p3)  ;;  %265 = vst [vmem:[%s1446_s17] sm:$0xff] (%p1403_p3), %v264_v0  ;;  %267 = vst [vmem:[%s1446_s17 + $0x8] sm:$0xff] (%p1403_p3), %v266_v1  ;;  %v270_v3 = vld [vmem:[%s1441_s11 + $0x30] sm:$0xff] (%p1403_p3) }
  0x29   : > { %269 = vst [vmem:[%s1446_s17 + $0x10] sm:$0xff] %v268_v2  ;;  %v272_v4 = vld [vmem:[%s1441_s11 + $0x40] sm:$0xff]  ;;  %v274_v5 = vld [vmem:[%s1441_s11 + $0x50] sm:$0xff]  ;;  %271 = vst [vmem:[%s1446_s17 + $0x18] sm:$0xff] %v270_v3 }
  0x2a   : > { %273 = vst [vmem:[%s1446_s17 + $0x20] sm:$0xff] %v272_v4  ;;  %275 = vst [vmem:[%s1446_s17 + $0x28] sm:$0xff] %v274_v5  ;;  %v276_v6 = vld [vmem:[%s1441_s11 + $0x60] sm:$0xff]  ;;  %v278_v7 = vld [vmem:[%s1441_s11 + $0x70] sm:$0xff] }
  0x2b   : > { %v280_v8 = vld [vmem:[%s1441_s11 + $0x80] sm:$0xff]  ;;  %277 = vst [vmem:[%s1446_s17 + $0x30] sm:$0xff] %v276_v6  ;;  %279 = vst [vmem:[%s1446_s17 + $0x38] sm:$0xff] %v278_v7  ;;  %v282_v9 = vld [vmem:[%s1441_s11 + $0x90] sm:$0xff] }
  0x2c   : > { %281 = vst [vmem:[%s1446_s17 + $0x40] sm:$0xff] %v280_v8  ;;  %v284_v10 = vld [vmem:[%s1441_s11 + $0xa0] sm:$0xff]  ;;  %v286_v11 = vld [vmem:[%s1441_s11 + $0xb0] sm:$0xff]  ;;  %283 = vst [vmem:[%s1446_s17 + $0x48] sm:$0xff] %v282_v9 }
  0x2d   : > { %285 = vst [vmem:[%s1446_s17 + $0x50] sm:$0xff] %v284_v10  ;;  %287 = vst [vmem:[%s1446_s17 + $0x58] sm:$0xff] %v286_v11  ;;  %v288_v12 = vld [vmem:[%s1441_s11 + $0xc0] sm:$0xff]  ;;  %v290_v13 = vld [vmem:[%s1441_s11 + $0xd0] sm:$0xff] }
  0x2e   : > { %v292_v14 = vld [vmem:[%s1441_s11 + $0xe0] sm:$0xff]  ;;  %289 = vst [vmem:[%s1446_s17 + $0x60] sm:$0xff] %v288_v12  ;;  %291 = vst [vmem:[%s1446_s17 + $0x68] sm:$0xff] %v290_v13  ;;  %v294_v15 = vld [vmem:[%s1441_s11 + $0xf0] sm:$0xff] }
  0x2f   : > { %293 = vst [vmem:[%s1446_s17 + $0x70] sm:$0xff] %v292_v14  ;;  %v296_v16 = vld [vmem:[%s1441_s11 + $0x100] sm:$0xff]  ;;  %v298_v17 = vld [vmem:[%s1441_s11 + $0x110] sm:$0xff]  ;;  %295 = vst [vmem:[%s1446_s17 + $0x78] sm:$0xff] %v294_v15 }
  0x30   : > { %297 = vst [vmem:[%s1446_s17 + $0x80] sm:$0xff] %v296_v16  ;;  %299 = vst [vmem:[%s1446_s17 + $0x88] sm:$0xff] %v298_v17  ;;  %v300_v18 = vld [vmem:[%s1441_s11 + $0x120] sm:$0xff]  ;;  %v302_v19 = vld [vmem:[%s1441_s11 + $0x130] sm:$0xff] }
  0x31   : > { %v304_v20 = vld [vmem:[%s1441_s11 + $0x140] sm:$0xff]  ;;  %301 = vst [vmem:[%s1446_s17 + $0x90] sm:$0xff] %v300_v18  ;;  %303 = vst [vmem:[%s1446_s17 + $0x98] sm:$0xff] %v302_v19  ;;  %v306_v21 = vld [vmem:[%s1441_s11 + $0x150] sm:$0xff] }
  0x32   : > { %305 = vst [vmem:[%s1446_s17 + $0xa0] sm:$0xff] %v304_v20  ;;  %v308_v22 = vld [vmem:[%s1441_s11 + $0x160] sm:$0xff]  ;;  %v310_v23 = vld [vmem:[%s1441_s11 + $0x170] sm:$0xff]  ;;  %307 = vst [vmem:[%s1446_s17 + $0xa8] sm:$0xff] %v306_v21 }
  0x33   : > { %309 = vst [vmem:[%s1446_s17 + $0xb0] sm:$0xff] %v308_v22  ;;  %311 = vst [vmem:[%s1446_s17 + $0xb8] sm:$0xff] %v310_v23  ;;  %v312_v24 = vld [vmem:[%s1441_s11 + $0x180] sm:$0xff]  ;;  %v314_v25 = vld [vmem:[%s1441_s11 + $0x190] sm:$0xff] }
  0x34   : > { %v316_v26 = vld [vmem:[%s1441_s11 + $0x1a0] sm:$0xff]  ;;  %313 = vst [vmem:[%s1446_s17 + $0xc0] sm:$0xff] %v312_v24  ;;  %315 = vst [vmem:[%s1446_s17 + $0xc8] sm:$0xff] %v314_v25  ;;  %v318_v27 = vld [vmem:[%s1441_s11 + $0x1b0] sm:$0xff] }
  0x35   : > { %317 = vst [vmem:[%s1446_s17 + $0xd0] sm:$0xff] %v316_v26  ;;  %v320_v28 = vld [vmem:[%s1441_s11 + $0x1c0] sm:$0xff]  ;;  %v322_v29 = vld [vmem:[%s1441_s11 + $0x1d0] sm:$0xff]  ;;  %319 = vst [vmem:[%s1446_s17 + $0xd8] sm:$0xff] %v318_v27 }
  0x36   : > { %321 = vst [vmem:[%s1446_s17 + $0xe0] sm:$0xff] %v320_v28  ;;  %323 = vst [vmem:[%s1446_s17 + $0xe8] sm:$0xff] %v322_v29  ;;  %v324_v30 = vld [vmem:[%s1441_s11 + $0x1e0] sm:$0xff]  ;;  %v326_v31 = vld [vmem:[%s1441_s11 + $0x1f0] sm:$0xff] }
  0x37   : > { %325 = vst [vmem:[%s1446_s17 + $0xf0] sm:$0xff] %v324_v30  ;;  %327 = vst [vmem:[%s1446_s17 + $0xf8] sm:$0xff] %v326_v31 }
  0x38 PF: > { %344 = sbr.rel (%p1418_p9) target bundleno = 367 (0x16f), region = 66 }
  0x3d   : > { %1324 = dma.done.wait (%p1422_p10), [#allocation3], 4096  }
  0x3e   : > { %1326 = vsyncadd (%p1422_p10), [#allocation3], 4294963200  ;;  %s351_s19 = sand.u32 1, %s1329_s12   ;;  %v387_v45 = vld [vmem:[#allocation2 + $0x8] sm:$0xff]  ;;  %v389_v46 = vld [vmem:[#allocation2 + $0x18] sm:$0xff]  ;;  %s1072_s24 = sshll.u32 %s1337_s14, 1 }
  0x3f   : > { %s1070_s20 = sshll.u32 %s351_s19, 8  ;;  %v419_v47 = vpack.c.bf16 %v389_v46, %v387_v45  ;;  %v403_v48 = vld [vmem:[#allocation2 + $0x88] sm:$0xff]  ;;  %v405_v49 = vld [vmem:[#allocation2 + $0x98] sm:$0xff]  ;;  %v386_v6 = vld [vmem:[#allocation2] sm:$0xff]  ;;  %p380_p3 = scmp.lt.s32.totalorder %s1072_s24, 3 }
  0x40   : > { %s1518_s21 = scalar_lea.vmem [#allocation4], %s1070_s20  ;;  %v427_v51 = vpack.c.bf16 %v405_v49, %v403_v48  ;;  %v388_v7 = vld [vmem:[#allocation2 + $0x10] sm:$0xff]  ;;  %v402_v8 = vld [vmem:[#allocation2 + $0x80] sm:$0xff]  ;;  %v391_v10 = vld [vmem:[#allocation2 + $0x28] sm:$0xff]  ;;  %v468_v48 = vlaneseq  ;;  %s1071_s28 = sshll.u32 %s351_s19, 7 }
  0x41   : > { %v1229_v32 = vld [vmem:[%s1518_s21 + $0x74] ss:$8 sps:$4 sm:$0xff]   ;;  %v1231_v33 = vld [vmem:[%s1518_s21 + $0x70] ss:$8 sps:$4 sm:$0xff]   ;;  %v1232_v34 = vld [vmem:[%s1518_s21 + $0x64] ss:$8 sps:$4 sm:$0xff]   ;;  %670 = vmatprep.mubr.bf16.mxu0 %v419_v47  ;;  %v418_v14 = vpack.c.bf16 %v388_v7, %v386_v6 }
  0x42   : > { %638 = vmatprep.subr.bf16.mxu0 %v1229_v32  ;;  %1144 = vmatprep.subr.bf16.mxu1 %v1229_v32  ;;  %v1234_v35 = vld [vmem:[%s1518_s21 + $0x60] ss:$8 sps:$4 sm:$0xff]   ;;  %v1235_v36 = vld [vmem:[%s1518_s21 + $0x54] ss:$8 sps:$4 sm:$0xff]   ;;  %v1237_v37 = vld [vmem:[%s1518_s21 + $0x50] ss:$8 sps:$4 sm:$0xff]  }
  0x43   : > { %639 = vmatpush1.bf16.msra.mxu0 %v1231_v33  ;;  %1160 = vmatpush1.bf16.msra.mxu1 %v1231_v33  ;;  %v1238_v38 = vld [vmem:[%s1518_s21 + $0x44] ss:$8 sps:$4 sm:$0xff]   ;;  %v1240_v39 = vld [vmem:[%s1518_s21 + $0x40] ss:$8 sps:$4 sm:$0xff]   ;;  %v1241_v40 = vld [vmem:[%s1518_s21 + $0x34] ss:$8 sps:$4 sm:$0xff]  }
  0x44   : > { %640 = vmatprep.subr.bf16.mxu0 %v1232_v34  ;;  %1145 = vmatprep.subr.bf16.mxu1 %v1232_v34  ;;  %v1243_v41 = vld [vmem:[%s1518_s21 + $0x30] ss:$8 sps:$4 sm:$0xff]   ;;  %v1244_v42 = vld [vmem:[%s1518_s21 + $0x24] ss:$8 sps:$4 sm:$0xff]   ;;  %v1246_v43 = vld [vmem:[%s1518_s21 + $0x20] ss:$8 sps:$4 sm:$0xff]  }
  0x45   : > { %v1247_v44 = vld [vmem:[%s1518_s21 + $0x14] ss:$8 sps:$4 sm:$0xff]   ;;  %v1249_v50 = vld [vmem:[%s1518_s21 + $0x10] ss:$8 sps:$4 sm:$0xff]   ;;  %v1250_v52 = vld [vmem:[%s1518_s21 + $0x4] ss:$8 sps:$4 sm:$0xff]   ;;  %710 = vmatprep.mubr.bf16.mxu1 %v427_v51 }
  0x46   : > { %v1252_v53 = vld [vmem:[%s1518_s21] ss:$8 sps:$4 sm:$0xff]   ;;  %v1253_v54 = vld [vmem:[%s1518_s21 + $0xf4] ss:$8 sps:$4 sm:$0xff]   ;;  %v1255_v55 = vld [vmem:[%s1518_s21 + $0xf0] ss:$8 sps:$4 sm:$0xff]  }
  0x47   : > { %641 = vmatpush1.bf16.msra.mxu0 %v1234_v35  ;;  %1161 = vmatpush1.bf16.msra.mxu1 %v1234_v35  ;;  %v1256_v56 = vld [vmem:[%s1518_s21 + $0xe4] ss:$8 sps:$4 sm:$0xff]   ;;  %v1258_v57 = vld [vmem:[%s1518_s21 + $0xe0] ss:$8 sps:$4 sm:$0xff]   ;;  %v1259_v58 = vld [vmem:[%s1518_s21 + $0xd4] ss:$8 sps:$4 sm:$0xff]  }
  0x48   : > { %642 = vmatprep.subr.bf16.mxu0 %v1235_v36  ;;  %1146 = vmatprep.subr.bf16.mxu1 %v1235_v36  ;;  %v1261_v59 = vld [vmem:[%s1518_s21 + $0xd0] ss:$8 sps:$4 sm:$0xff]   ;;  %v1262_v60 = vld [vmem:[%s1518_s21 + $0xc4] ss:$8 sps:$4 sm:$0xff]   ;;  %v1264_v61 = vld [vmem:[%s1518_s21 + $0xc0] ss:$8 sps:$4 sm:$0xff]  }
  0x49   : > { %v1265_v62 = vld [vmem:[%s1518_s21 + $0xb4] ss:$8 sps:$4 sm:$0xff]   ;;  %v1267_v63 = vld [vmem:[%s1518_s21 + $0xb0] ss:$8 sps:$4 sm:$0xff]   ;;  %v1268_v0 = vld [vmem:[%s1518_s21 + $0xa4] ss:$8 sps:$4 sm:$0xff]  }
  0x4a   : > { %v1270_v1 = vld [vmem:[%s1518_s21 + $0xa0] ss:$8 sps:$4 sm:$0xff]   ;;  %v1271_v2 = vld [vmem:[%s1518_s21 + $0x94] ss:$8 sps:$4 sm:$0xff]   ;;  %v1273_v3 = vld [vmem:[%s1518_s21 + $0x90] ss:$8 sps:$4 sm:$0xff]  }
  0x4b   : > { %643 = vmatpush1.bf16.msra.mxu0 %v1237_v37  ;;  %1162 = vmatpush1.bf16.msra.mxu1 %v1237_v37  ;;  %v1274_v4 = vld [vmem:[%s1518_s21 + $0x84] ss:$8 sps:$4 sm:$0xff]   ;;  %v1276_v5 = vld [vmem:[%s1518_s21 + $0x80] ss:$8 sps:$4 sm:$0xff]   ;;  %v404_v9 = vld [vmem:[#allocation2 + $0x90] sm:$0xff]  ;;  %s1665_s24 = smov (!%p380_p3, %s1072_s24), 3 }
  0x4c   : > { %644 = vmatprep.subr.bf16.mxu0 %v1238_v38  ;;  %1147 = vmatprep.subr.bf16.mxu1 %v1238_v38  ;;  %v393_v11 = vld [vmem:[#allocation2 + $0x38] sm:$0xff]  ;;  %v407_v12 = vld [vmem:[#allocation2 + $0xa8] sm:$0xff]  ;;  %v426_v15 = vpack.c.bf16 %v404_v9, %v402_v8  ;;  %v390_v18 = vld [vmem:[#allocation2 + $0x20] sm:$0xff]  ;;  %v469_v49 = vshrl.u32 %v468_v48, 7  ;;  %s382_s27 = scalar_lea.vmem %s1651_s2, %s1665_s24  ;;  %s1566_s29 = scalar_lea.vmem [#allocation5], %s1071_s28 }
  0x4d   : > { %v409_v13 = vld [vmem:[#allocation2 + $0xb8] sm:$0xff]  ;;  %v421_v16 = vpack.c.bf16 %v393_v11, %v391_v10  ;;  %v392_v19 = vld [vmem:[#allocation2 + $0x30] sm:$0xff]  ;;  %v406_v20 = vld [vmem:[#allocation2 + $0xa0] sm:$0xff]  ;;  %p1657_p7 = scmp.ne.s32.totalorder %s1654_s22, 0 }
  0x4e   : > { %v429_v17 = vpack.c.bf16 %v409_v13, %v407_v12  ;;  %v408_v21 = vld [vmem:[#allocation2 + $0xb0] sm:$0xff]  ;;  %v395_v22 = vld [vmem:[#allocation2 + $0x48] sm:$0xff]  ;;  %v397_v23 = vld [vmem:[#allocation2 + $0x58] sm:$0xff]  ;;  %v420_v26 = vpack.c.bf16 %v392_v19, %v390_v18  ;;  %v474_v51 = vsub.s32 1, %v469_v49  ;;  %s1143_s12 = sshll.u32 (%p1657_p7), %s1337_s14, 3 }
  0x4f   : > { %645 = vmatpush1.bf16.msra.mxu0 %v1240_v39  ;;  %1163 = vmatpush1.bf16.msra.mxu1 %v1240_v39  ;;  %v411_v24 = vld [vmem:[#allocation2 + $0xc8] sm:$0xff]  ;;  %v413_v25 = vld [vmem:[#allocation2 + $0xd8] sm:$0xff]  ;;  %v428_v27 = vpack.c.bf16 %v408_v21, %v406_v20  ;;  %v423_v28 = vpack.c.bf16 %v397_v23, %v395_v22  ;;  %v394_v30 = vld [vmem:[#allocation2 + $0x40] sm:$0xff]  ;;  %s875_s5 = scalar_lea.vmem (%p1657_p7), %s1652_s3, %s1143_s12 }
  0x50   : > { %646 = vmatprep.subr.bf16.mxu0 %v1241_v40  ;;  %1148 = vmatprep.subr.bf16.mxu1 %v1241_v40  ;;  %v431_v29 = vpack.c.bf16 %v413_v25, %v411_v24  ;;  %v396_v31 = vld [vmem:[#allocation2 + $0x50] sm:$0xff]  ;;  %v410_v32 = vld [vmem:[#allocation2 + $0xc0] sm:$0xff]  ;;  %v399_v34 = vld [vmem:[#allocation2 + $0x68] sm:$0xff] }
  0x51   : > { %v412_v33 = vld [vmem:[#allocation2 + $0xd0] sm:$0xff]  ;;  %v401_v35 = vld [vmem:[#allocation2 + $0x78] sm:$0xff]  ;;  %v415_v36 = vld [vmem:[#allocation2 + $0xe8] sm:$0xff]  ;;  %v422_v38 = vpack.c.bf16 %v396_v31, %v394_v30 }
  0x52   : > { %v417_v37 = vld [vmem:[#allocation2 + $0xf8] sm:$0xff]  ;;  %v430_v39 = vpack.c.bf16 %v412_v33, %v410_v32  ;;  %v425_v40 = vpack.c.bf16 %v401_v35, %v399_v34  ;;  %v416_v45 = vld [vmem:[#allocation2 + $0xf0] sm:$0xff] }
  0x53   : > { %647 = vmatpush1.bf16.msra.mxu0 %v1243_v41  ;;  %1164 = vmatpush1.bf16.msra.mxu1 %v1243_v41  ;;  %v433_v41 = vpack.c.bf16 %v417_v37, %v415_v36 }
  0x54   : > { %648 = vmatprep.subr.bf16.mxu0 %v1244_v42  ;;  %1149 = vmatprep.subr.bf16.mxu1 %v1244_v42  ;;  %v398_v42 = vld [vmem:[#allocation2 + $0x60] sm:$0xff] }
  0x57   : > { %649 = vmatpush1.bf16.msra.mxu0 %v1246_v43  ;;  %1165 = vmatpush1.bf16.msra.mxu1 %v1246_v43  ;;  %v400_v43 = vld [vmem:[#allocation2 + $0x70] sm:$0xff] }
  0x58   : > { %650 = vmatprep.subr.bf16.mxu0 %v1247_v44  ;;  %1150 = vmatprep.subr.bf16.mxu1 %v1247_v44  ;;  %v414_v44 = vld [vmem:[#allocation2 + $0xe0] sm:$0xff]  ;;  %v424_v46 = vpack.c.bf16 %v400_v43, %v398_v42 }
  0x59   : > { %v432_v47 = vpack.c.bf16 %v416_v45, %v414_v44 }
  0x5b   : > { %651 = vmatpush1.bf16.msra.mxu0 %v1249_v50  ;;  %1166 = vmatpush1.bf16.msra.mxu1 %v1249_v50  ;;  %v470_v50 = vsub.s32 0, %v469_v49 }
  0x5c   : > { %652 = vmatprep.subr.bf16.mxu0 %v1250_v52  ;;  %1151 = vmatprep.subr.bf16.mxu1 %v1250_v52  ;;  %v466_v52 = vld [vmem:[%s382_s27] sm:$0x3] }
  0x5f   : > { %653 = vmatpush1.bf16.msra.mxu0 %v1252_v53  ;;  %1167 = vmatpush1.bf16.msra.mxu1 %v1252_v53  ;;  %v1556_v53 = vrot.slane %v466_v52, %v470_v50 }
  0x60   : > { %654 = vmatprep.subr.bf16.mxu0 %v1253_v54  ;;  %1152 = vmatprep.subr.bf16.mxu1 %v1253_v54  ;;  %v1558_v54 = vrot.slane %v466_v52, %v474_v51 }
  0x63   : > { %655 = vmatpush2.bf16.msra.mxu0 %v1255_v55  ;;  %1168 = vmatpush2.bf16.msra.mxu1 %v1255_v55 }
  0x64   : > { %656 = vmatprep.subr.bf16.mxu0 %v1256_v56  ;;  %1153 = vmatprep.subr.bf16.mxu1 %v1256_v56 }
  0x67   : > { %657 = vmatpush2.bf16.msra.mxu0 %v1258_v57  ;;  %1169 = vmatpush2.bf16.msra.mxu1 %v1258_v57 }
  0x68   : > { %658 = vmatprep.subr.bf16.mxu0 %v1259_v58  ;;  %1154 = vmatprep.subr.bf16.mxu1 %v1259_v58 }
  0x6b   : > { %659 = vmatpush2.bf16.msra.mxu0 %v1261_v59  ;;  %1170 = vmatpush2.bf16.msra.mxu1 %v1261_v59 }
  0x6c   : > { %660 = vmatprep.subr.bf16.mxu0 %v1262_v60  ;;  %1155 = vmatprep.subr.bf16.mxu1 %v1262_v60 }
  0x6f   : > { %661 = vmatpush2.bf16.msra.mxu0 %v1264_v61  ;;  %1171 = vmatpush2.bf16.msra.mxu1 %v1264_v61 }
  0x70   : > { %662 = vmatprep.subr.bf16.mxu0 %v1265_v62  ;;  %1156 = vmatprep.subr.bf16.mxu1 %v1265_v62 }
  0x73   : > { %663 = vmatpush2.bf16.msra.mxu0 %v1267_v63  ;;  %1172 = vmatpush2.bf16.msra.mxu1 %v1267_v63 }
  0x74   : > { %664 = vmatprep.subr.bf16.mxu0 %v1268_v0  ;;  %1157 = vmatprep.subr.bf16.mxu1 %v1268_v0 }
  0x77   : > { %665 = vmatpush2.bf16.msra.mxu0 %v1270_v1  ;;  %1173 = vmatpush2.bf16.msra.mxu1 %v1270_v1 }
  0x78   : > { %666 = vmatprep.subr.bf16.mxu0 %v1271_v2  ;;  %1158 = vmatprep.subr.bf16.mxu1 %v1271_v2 }
  0x7b   : > { %667 = vmatpush2.bf16.msra.mxu0 %v1273_v3  ;;  %1174 = vmatpush2.bf16.msra.mxu1 %v1273_v3 }
  0x7c   : > { %668 = vmatprep.subr.bf16.mxu0 %v1274_v4  ;;  %1159 = vmatprep.subr.bf16.mxu1 %v1274_v4 }
  0x7f   : > { %669 = vmatpush2.bf16.msra.mxu0 %v1276_v5  ;;  %1175 = vmatpush2.bf16.msra.mxu1 %v1276_v5 }
  0x82   : > { %671 = vmatmul.mubr.bf16.vlgmr.msra.gmra.mxu0 %v418_v14  ;;  %711 = vmatmul.mubr.bf16.vlgmr.msra.gmra.mxu1 %v426_v15 }
  0x83   : > { %680 = vmatprep.mubr.bf16.mxu0 %v421_v16  ;;  %720 = vmatprep.mubr.bf16.mxu1 %v429_v17 }
  0x8a   : > { %681 = vmatmul.mubr.bf16.gmra.mxu0 %v420_v26  ;;  %721 = vmatmul.mubr.bf16.gmra.mxu1 %v428_v27 }
  0x8b   : > { %690 = vmatprep.mubr.bf16.mxu0 %v423_v28  ;;  %730 = vmatprep.mubr.bf16.mxu1 %v431_v29 }
  0x92   : > { %691 = vmatmul.mubr.bf16.gmra.mxu0 %v422_v38  ;;  %731 = vmatmul.mubr.bf16.gmra.mxu1 %v430_v39 }
  0x93   : > { %700 = vmatprep.mubr.bf16.mxu0 %v425_v40  ;;  %740 = vmatprep.mubr.bf16.mxu1 %v433_v41 }
  0x9a   : > { %701 = vmatmul.mubr.bf16.gmra.mxu0 %v424_v46  ;;  %741 = vmatmul.mubr.bf16.gmra.mxu1 %v432_v47 }
 0x142   : > { %v672_v55 = vpop.f32.mrf.mxu0  ;;  %v712_v56 = vpop.f32.mrf.mxu1 }
 0x143   : > { %v673_v59 = vadd.f32 %v672_v55, %v1556_v53  ;;  %v713_v60 = vadd.f32 %v712_v56, %v1556_v53 }
 0x144   : > { %v674_v57 = vpop.f32.mrf.mxu0  ;;  %v714_v58 = vpop.f32.mrf.mxu1 }
 0x145   : > { %v675_v61 = vadd.f32 %v674_v57, %v1558_v54  ;;  %v715_v62 = vadd.f32 %v714_v58, %v1558_v54 }
 0x146   : > { %v676_v63 = vpop.f32.mrf.mxu0  ;;  %v716_v0 = vpop.f32.mrf.mxu1 }
 0x147   : > { %v1127_v1 = vpack.c.bf16 %v675_v61, %v673_v59  ;;  %v1135_v2 = vpack.c.bf16 %v715_v62, %v713_v60  ;;  %v677_v5 = vadd.f32 %v676_v63, %v1556_v53  ;;  %v717_v6 = vadd.f32 %v716_v0, %v1556_v53 }
 0x148   : > { %v678_v3 = vpop.f32.mrf.mxu0  ;;  %v718_v4 = vpop.f32.mrf.mxu1 }
 0x149   : > { %847 = vst [vmem:[%s1566_s29] sm:$0xff] %v1127_v1  ;;  %855 = vst [vmem:[%s1566_s29 + $0x40] sm:$0xff] %v1135_v2  ;;  %v679_v7 = vadd.f32 %v678_v3, %v1558_v54  ;;  %v719_v8 = vadd.f32 %v718_v4, %v1558_v54 }
 0x14a   : > { %v682_v9 = vpop.f32.mrf.mxu0  ;;  %v722_v10 = vpop.f32.mrf.mxu1 }
 0x14b   : > { %v1128_v11 = vpack.c.bf16 %v679_v7, %v677_v5  ;;  %v1136_v12 = vpack.c.bf16 %v719_v8, %v717_v6  ;;  %v683_v15 = vadd.f32 %v682_v9, %v1556_v53  ;;  %v723_v16 = vadd.f32 %v722_v10, %v1556_v53 }
 0x14c   : > { %v684_v13 = vpop.f32.mrf.mxu0  ;;  %v724_v14 = vpop.f32.mrf.mxu1 }
 0x14d   : > { %848 = vst [vmem:[%s1566_s29 + $0x8] sm:$0xff] %v1128_v11  ;;  %856 = vst [vmem:[%s1566_s29 + $0x48] sm:$0xff] %v1136_v12  ;;  %v685_v17 = vadd.f32 %v684_v13, %v1558_v54  ;;  %v725_v18 = vadd.f32 %v724_v14, %v1558_v54 }
 0x14e   : > { %v686_v19 = vpop.f32.mrf.mxu0  ;;  %v726_v20 = vpop.f32.mrf.mxu1 }
 0x14f   : > { %v1129_v21 = vpack.c.bf16 %v685_v17, %v683_v15  ;;  %v1137_v22 = vpack.c.bf16 %v725_v18, %v723_v16  ;;  %v687_v25 = vadd.f32 %v686_v19, %v1556_v53  ;;  %v727_v26 = vadd.f32 %v726_v20, %v1556_v53 }
 0x150   : > { %v688_v23 = vpop.f32.mrf.mxu0  ;;  %v728_v24 = vpop.f32.mrf.mxu1  ;;  %v950_v15 = vld [vmem:[%s1566_s29 + $0x40] sm:$0xff] (%p1657_p7) }
 0x151   : > { %849 = vst [vmem:[%s1566_s29 + $0x10] sm:$0xff] %v1129_v21  ;;  %857 = vst [vmem:[%s1566_s29 + $0x50] sm:$0xff] %v1137_v22  ;;  %v689_v27 = vadd.f32 %v688_v23, %v1558_v54  ;;  %v729_v28 = vadd.f32 %v728_v24, %v1558_v54 }
 0x152   : > { %v692_v29 = vpop.f32.mrf.mxu0  ;;  %v732_v30 = vpop.f32.mrf.mxu1  ;;  %951 = vst [vmem:[%s875_s5 + $0x80] sm:$0xff] (%p1657_p7), %v950_v15 }
 0x153   : > { %v1130_v31 = vpack.c.bf16 %v689_v27, %v687_v25  ;;  %v1138_v32 = vpack.c.bf16 %v729_v28, %v727_v26  ;;  %v693_v35 = vadd.f32 %v692_v29, %v1556_v53  ;;  %v733_v36 = vadd.f32 %v732_v30, %v1556_v53 }
 0x154   : > { %v694_v33 = vpop.f32.mrf.mxu0  ;;  %v734_v34 = vpop.f32.mrf.mxu1  ;;  %v952_v16 = vld [vmem:[%s1566_s29 + $0x48] sm:$0xff] (%p1657_p7) }
 0x155   : > { %850 = vst [vmem:[%s1566_s29 + $0x18] sm:$0xff] %v1130_v31  ;;  %858 = vst [vmem:[%s1566_s29 + $0x58] sm:$0xff] %v1138_v32  ;;  %v695_v37 = vadd.f32 %v694_v33, %v1558_v54  ;;  %v735_v38 = vadd.f32 %v734_v34, %v1558_v54 }
 0x156   : > { %v696_v39 = vpop.f32.mrf.mxu0  ;;  %v736_v40 = vpop.f32.mrf.mxu1  ;;  %953 = vst [vmem:[%s875_s5 + $0x90] sm:$0xff] (%p1657_p7), %v952_v16 }
 0x157   : > { %v1131_v41 = vpack.c.bf16 %v695_v37, %v693_v35  ;;  %v1139_v42 = vpack.c.bf16 %v735_v38, %v733_v36  ;;  %v697_v45 = vadd.f32 %v696_v39, %v1556_v53  ;;  %v737_v46 = vadd.f32 %v736_v40, %v1556_v53 }
 0x158   : > { %v698_v43 = vpop.f32.mrf.mxu0  ;;  %v738_v44 = vpop.f32.mrf.mxu1  ;;  %v938_v9 = vld [vmem:[%s1566_s29 + $0x10] sm:$0xff] (%p1657_p7) }
 0x159   : > { %851 = vst [vmem:[%s1566_s29 + $0x20] sm:$0xff] %v1131_v41  ;;  %859 = vst [vmem:[%s1566_s29 + $0x60] sm:$0xff] %v1139_v42  ;;  %v699_v47 = vadd.f32 %v698_v43, %v1558_v54  ;;  %v739_v48 = vadd.f32 %v738_v44, %v1558_v54  ;;  %v954_v17 = vld [vmem:[%s1566_s29 + $0x50] sm:$0xff] (%p1657_p7) }
 0x15a   : > { %v702_v49 = vpop.f32.mrf.mxu0  ;;  %v742_v50 = vpop.f32.mrf.mxu1  ;;  %939 = vst [vmem:[%s875_s5 + $0x20] sm:$0xff] (%p1657_p7), %v938_v9  ;;  %955 = vst [vmem:[%s875_s5 + $0xa0] sm:$0xff] (%p1657_p7), %v954_v17 }
 0x15b   : > { %v1132_v51 = vpack.c.bf16 %v699_v47, %v697_v45  ;;  %v1140_v52 = vpack.c.bf16 %v739_v48, %v737_v46  ;;  %v703_v57 = vadd.f32 %v702_v49, %v1556_v53  ;;  %v743_v58 = vadd.f32 %v742_v50, %v1556_v53 }
 0x15c   : > { %v704_v55 = vpop.f32.mrf.mxu0  ;;  %v744_v56 = vpop.f32.mrf.mxu1  ;;  %v940_v10 = vld [vmem:[%s1566_s29 + $0x18] sm:$0xff] (%p1657_p7) }
 0x15d   : > { %852 = vst [vmem:[%s1566_s29 + $0x28] sm:$0xff] %v1132_v51  ;;  %860 = vst [vmem:[%s1566_s29 + $0x68] sm:$0xff] %v1140_v52  ;;  %v705_v59 = vadd.f32 %v704_v55, %v1558_v54  ;;  %v745_v60 = vadd.f32 %v744_v56, %v1558_v54  ;;  %v956_v18 = vld [vmem:[%s1566_s29 + $0x58] sm:$0xff] (%p1657_p7) }
 0x15e   : > { %v706_v61 = vpop.f32.mrf.mxu0  ;;  %v746_v62 = vpop.f32.mrf.mxu1  ;;  %941 = vst [vmem:[%s875_s5 + $0x30] sm:$0xff] (%p1657_p7), %v940_v10  ;;  %957 = vst [vmem:[%s875_s5 + $0xb0] sm:$0xff] (%p1657_p7), %v956_v18 }
 0x15f   : > { %v1133_v63 = vpack.c.bf16 %v705_v59, %v703_v57  ;;  %v1141_v0 = vpack.c.bf16 %v745_v60, %v743_v58  ;;  %v707_v3 = vadd.f32 %v706_v61, %v1556_v53  ;;  %v747_v4 = vadd.f32 %v746_v62, %v1556_v53  ;;  %v934_v53 = vld [vmem:[%s1566_s29] sm:$0xff] (%p1657_p7) }
 0x160   : > { %v708_v1 = vpop.f32.mrf.mxu0  ;;  %v748_v2 = vpop.f32.mrf.mxu1  ;;  %v942_v11 = vld [vmem:[%s1566_s29 + $0x20] sm:$0xff] (%p1657_p7)  ;;  %935 = vst [vmem:[%s875_s5] sm:$0xff] (%p1657_p7), %v934_v53 }
 0x161   : > { %853 = vst [vmem:[%s1566_s29 + $0x30] sm:$0xff] %v1133_v63  ;;  %861 = vst [vmem:[%s1566_s29 + $0x70] sm:$0xff] %v1141_v0  ;;  %v709_v5 = vadd.f32 %v708_v1, %v1558_v54  ;;  %v749_v6 = vadd.f32 %v748_v2, %v1558_v54  ;;  %869 = sbr.rel (!%p1657_p7) target bundleno = 367 (0x16f), region = 78  ;;  %v936_v54 = vld [vmem:[%s1566_s29 + $0x8] sm:$0xff] (%p1657_p7)  ;;  %v958_v19 = vld [vmem:[%s1566_s29 + $0x60] sm:$0xff] (%p1657_p7) }
 0x162   : > { %937 = vst [vmem:[%s875_s5 + $0x10] sm:$0xff] (%p1657_p7), %v936_v54  ;;  %943 = vst [vmem:[%s875_s5 + $0x40] sm:$0xff] (%p1657_p7), %v942_v11 }
 0x163   : > { %v1134_v7 = vpack.c.bf16 %v709_v5, %v707_v3  ;;  %v1142_v8 = vpack.c.bf16 %v749_v6, %v747_v4  ;;  %959 = vst [vmem:[%s875_s5 + $0xc0] sm:$0xff] (%p1657_p7), %v958_v19 }
 0x164   : > { %v944_v12 = vld [vmem:[%s1566_s29 + $0x28] sm:$0xff] (%p1657_p7) }
 0x165   : > { %854 = vst [vmem:[%s1566_s29 + $0x38] sm:$0xff] %v1134_v7  ;;  %862 = vst [vmem:[%s1566_s29 + $0x78] sm:$0xff] %v1142_v8  ;;  %v960_v20 = vld [vmem:[%s1566_s29 + $0x68] sm:$0xff] (%p1657_p7) }
 0x166   : > { %945 = vst [vmem:[%s875_s5 + $0x50] sm:$0xff] %v944_v12  ;;  %961 = vst [vmem:[%s875_s5 + $0xd0] sm:$0xff] %v960_v20 }
 0x168   : > { %v946_v13 = vld [vmem:[%s1566_s29 + $0x30] sm:$0xff] }
 0x169   : > { %947 = vst [vmem:[%s875_s5 + $0x60] sm:$0xff] %v946_v13  ;;  %v962_v21 = vld [vmem:[%s1566_s29 + $0x70] sm:$0xff] }
 0x16a   : > { %963 = vst [vmem:[%s875_s5 + $0xe0] sm:$0xff] %v962_v21 }
 0x16c   : > { %v948_v14 = vld [vmem:[%s1566_s29 + $0x38] sm:$0xff] }
 0x16d   : > { %949 = vst [vmem:[%s875_s5 + $0x70] sm:$0xff] %v948_v14  ;;  %v964_v22 = vld [vmem:[%s1566_s29 + $0x78] sm:$0xff] }
 0x16e   : > { %965 = vst [vmem:[%s875_s5 + $0xf0] sm:$0xff] %v964_v22 }
 0x16f PF: > { %s14_s16 = sadd.s32 1, %s1345_s16   ;;  %s1658_s12 = smov %s1333_s13 }
 0x170   : > { %p11_p9 = scmp.ge.s32.totalorder %s14_s16, 4   ;;  %s1659_s13 = smov %s1416_s23 }
 0x171   : > { %s1660_s14 = smov %s1341_s15  ;;  %s1661_s15 = smov %s1663_s18 }
 0x172   :  { %13 = sbr.rel (!%p11_p9) target bundleno = 3 (0x3), region = 152 }
 0x177   :  { %981 = vsyncpa [#allocation3], 1 }
 0x178   :  { %983 = vsyncpa [#allocation3 + $0x1], 1 }

// kernel: _lambda_.4
= control target key start
LH: loop header
LB: loop body
LE: loop exit
PB: predicated region body
PF: predicated region fallthrough
CT: control target
= control target key end

     0   :  { %s2706_s12 = smov 0   ;;  %s5091_s0 = inlined_call_operand.vmem [shape: bf16[2,64,512], index: 0, kind: input, shape index: {}]   ;;  %s5092_s1 = inlined_call_operand.vmem [shape: f32[9,256], index: 1, kind: input, shape index: {}]   ;;  %s5093_s2 = inlined_call_operand.vmem [shape: f32[256,256], index: 2, kind: input, shape index: {}]   ;;  %s5094_s3 = inlined_call_operand.vmem [shape: bf16[2,64,256], index: 3, kind: output, shape index: {}]  }
   0x1 LB: > { %s2454_s13 = sadd.s32 4294967295, %s2683_s12   ;;  %p2458_p0 = scmp.ge.s32.totalorder %s2683_s12, 1  ;;  %s2683_s12 = sphi %s2706_s12, %s13_s12  }
   0x2   : > { %p137_p1 = scmp.lt.s32.totalorder %s2683_s12, 3 }
   0x4   : > { %p138_p2 = pnand %p2458_p0, %p137_p1 }
   0x6   : > { %141 = sbr.rel (%p138_p2) target bundleno = 1215 (0x4bf), region = 32 }
   0xb   : > { %v2717_v0 = vld [vmem:[%s5093_s2 + $0xf8] sm:$0xff]  ;;  %v2722_v1 = vld [vmem:[%s5093_s2 + $0xf0] sm:$0xff]  ;;  %v2727_v2 = vld [vmem:[%s5093_s2 + $0xe8] sm:$0xff]  ;;  %p161_p3 = scmp.lt.s32.totalorder %s2454_s13, 1  ;;  %vm1519_vm0 = vcmask 523264   ;;  %vm422_vm1 = vcmask 1046528  }
   0xc   : > { %1310 = vmatprep.subr.mxu0 %v2717_v0  ;;  %v2733_v3 = vld [vmem:[%s5093_s2 + $0xe0] sm:$0xff]  ;;  %v2739_v4 = vld [vmem:[%s5093_s2 + $0xd8] sm:$0xff]  ;;  %v2745_v5 = vld [vmem:[%s5093_s2 + $0xd0] sm:$0xff]  ;;  %vm546_vm2 = vcmask 1045504   ;;  %vm670_vm3 = vcmask 1044480   ;;  %vm788_vm4 = vcmask 1043456  }
   0xd   : > { %1311 = vmatpush1.msra.mxu0 %v2722_v1  ;;  %v2751_v6 = vld [vmem:[%s5093_s2 + $0xc8] sm:$0xff]  ;;  %v2757_v7 = vld [vmem:[%s5093_s2 + $0xc0] sm:$0xff]  ;;  %v2763_v8 = vld [vmem:[%s5093_s2 + $0xb8] sm:$0xff]  ;;  %s5499_s13 = smov (!%p161_p3, %s2454_s13), 1  ;;  %vm922_vm5 = vcmask 1042432   ;;  %vm1046_vm6 = vcmask 1041408  }
   0xe   : > { %1312 = vmatprep.subr.mxu0 %v2727_v2  ;;  %v2769_v9 = vld [vmem:[%s5093_s2 + $0xb0] sm:$0xff]  ;;  %v2777_v10 = vld [vmem:[%s5093_s2 + $0xa8] sm:$0xff]  ;;  %v2783_v11 = vld [vmem:[%s5093_s2 + $0xa0] sm:$0xff]  ;;  %s2513_s25 = sshll.u32 %s5499_s13, 7  ;;  %vm1170_vm7 = vcmask 1040384   ;;  %s2514_s20 = sshll.u32 %s5499_s13, 6 }
   0xf   : > { %1313 = vmatpush1.msra.mxu0 %v2733_v3  ;;  %v2789_v12 = vld [vmem:[%s5093_s2 + $0x98] sm:$0xff]  ;;  %v2795_v13 = vld [vmem:[%s5093_s2 + $0x90] sm:$0xff]  ;;  %v2805_v14 = vld [vmem:[%s5093_s2 + $0x88] sm:$0xff]  ;;  %s2847_s7 = scalar_lea.vmem %s5091_s0, %s2513_s25  ;;  %s5011_s22 = scalar_lea.vmem %s5094_s3, %s2514_s20 }
  0x10   : > { %1314 = vmatprep.subr.mxu0 %v2739_v4  ;;  %v2811_v15 = vld [vmem:[%s5093_s2 + $0x80] sm:$0xff]  ;;  %v2817_v16 = vld [vmem:[%s5093_s2 + $0x78] sm:$0xff]  ;;  %v2823_v17 = vld [vmem:[%s5093_s2 + $0x70] sm:$0xff] }
  0x11   : > { %1315 = vmatpush1.msra.mxu0 %v2745_v5  ;;  %v2830_v18 = vld [vmem:[%s5093_s2 + $0x68] sm:$0xff]  ;;  %v2836_v19 = vld [vmem:[%s5093_s2 + $0x60] sm:$0xff]  ;;  %v2842_v20 = vld [vmem:[%s5093_s2 + $0x58] sm:$0xff] }
  0x12   : > { %1316 = vmatprep.subr.mxu0 %v2751_v6  ;;  %v2853_v21 = vld [vmem:[%s5093_s2 + $0x50] sm:$0xff]  ;;  %v2859_v22 = vld [vmem:[%s5093_s2 + $0x48] sm:$0xff]  ;;  %v2865_v23 = vld [vmem:[%s5093_s2 + $0x40] sm:$0xff] }
  0x13   : > { %1317 = vmatpush1.msra.mxu0 %v2757_v7  ;;  %v2868_v24 = vld [vmem:[%s2847_s7] sm:$0xff]  ;;  %v2874_v25 = vld [vmem:[%s5093_s2 + $0x38] sm:$0xff]  ;;  %v2883_v27 = vld [vmem:[%s5093_s2 + $0x30] sm:$0xff] }
  0x14   : > { %1318 = vmatprep.subr.mxu0 %v2763_v8  ;;  %v2877_v26 = vunpack.c.h.bf16 %v2868_v24  ;;  %v2889_v28 = vld [vmem:[%s5093_s2 + $0x28] sm:$0xff]  ;;  %v2897_v30 = vld [vmem:[%s5093_s2 + $0x20] sm:$0xff]  ;;  %v2903_v31 = vld [vmem:[%s5093_s2 + $0x18] sm:$0xff] }
  0x15   : > { %1319 = vmatpush1.msra.mxu0 %v2769_v9  ;;  %v2909_v32 = vld [vmem:[%s5093_s2 + $0x10] sm:$0xff]  ;;  %v2915_v33 = vld [vmem:[%s5093_s2 + $0x8] sm:$0xff]  ;;  %v2921_v34 = vld [vmem:[%s5093_s2] sm:$0xff] }
  0x16   : > { %1320 = vmatprep.subr.mxu0 %v2777_v10  ;;  %v1295_v29 = vmul.f32 %v2877_v26, %v2877_v26  ;;  %5224 = vst [vmem:[#allocation3_spill] sm:$0xff] %v2915_v33  ;;  %5225 = vst [vmem:[#allocation4_spill] sm:$0xff] %v2921_v34  ;;  %v2927_v35 = vld [vmem:[%s5093_s2 + $0x1f8] sm:$0xff]  ;;  %v2933_v36 = vld [vmem:[%s5093_s2 + $0x1f0] sm:$0xff] }
  0x17   : > { %1321 = vmatpush1.msra.mxu0 %v2783_v11  ;;  %5226 = vst [vmem:[#allocation5_spill] sm:$0xff] %v2927_v35  ;;  %5227 = vst [vmem:[#allocation6_spill] sm:$0xff] %v2933_v36  ;;  %v2939_v37 = vld [vmem:[%s5093_s2 + $0x1e8] sm:$0xff]  ;;  %v2945_v38 = vld [vmem:[%s5093_s2 + $0x1e0] sm:$0xff] }
  0x18   : > { %1322 = vmatprep.subr.mxu0 %v2789_v12  ;;  %1374 = vmatprep.mubr.f32.mxu0 %v1295_v29  ;;  %5228 = vst [vmem:[#allocation7_spill] sm:$0xff] %v2939_v37  ;;  %5229 = vst [vmem:[#allocation8_spill] sm:$0xff] %v2945_v38  ;;  %v2951_v39 = vld [vmem:[%s5093_s2 + $0x1d8] sm:$0xff]  ;;  %v2957_v40 = vld [vmem:[%s5093_s2 + $0x1d0] sm:$0xff]  ;;  %v3093_v29 = vunpack.c.l.bf16 %v2868_v24 }
  0x19   : > { %1323 = vmatpush1.msra.mxu0 %v2795_v13  ;;  %5230 = vst [vmem:[#allocation9_spill] sm:$0xff] %v2951_v39  ;;  %5231 = vst [vmem:[#allocation10_spill] sm:$0xff] %v2957_v40  ;;  %v2963_v41 = vld [vmem:[%s5093_s2 + $0x1c8] sm:$0xff]  ;;  %v2969_v42 = vld [vmem:[%s5093_s2 + $0x1c0] sm:$0xff] }
  0x1a   : > { %1324 = vmatprep.subr.mxu0 %v2805_v14  ;;  %5232 = vst [vmem:[#allocation11_spill] sm:$0xff] %v2963_v41  ;;  %5233 = vst [vmem:[#allocation12_spill] sm:$0xff] %v2969_v42  ;;  %v2975_v43 = vld [vmem:[%s5093_s2 + $0x1b8] sm:$0xff]  ;;  %v2981_v44 = vld [vmem:[%s5093_s2 + $0x1b0] sm:$0xff] }
  0x1b   : > { %1325 = vmatpush1.msra.mxu0 %v2811_v15  ;;  %5234 = vst [vmem:[#allocation13_spill] sm:$0xff] %v2975_v43  ;;  %5235 = vst [vmem:[#allocation14_spill] sm:$0xff] %v2981_v44  ;;  %v2987_v45 = vld [vmem:[%s5093_s2 + $0x1a8] sm:$0xff]  ;;  %v2993_v46 = vld [vmem:[%s5093_s2 + $0x1a0] sm:$0xff] }
  0x1c   : > { %1326 = vmatprep.subr.mxu0 %v2817_v16  ;;  %5236 = vst [vmem:[#allocation15_spill] sm:$0xff] %v2987_v45  ;;  %5237 = vst [vmem:[#allocation16_spill] sm:$0xff] %v2993_v46  ;;  %v2999_v47 = vld [vmem:[%s5093_s2 + $0x198] sm:$0xff]  ;;  %v3005_v48 = vld [vmem:[%s5093_s2 + $0x190] sm:$0xff] }
  0x1d   : > { %1327 = vmatpush1.msra.mxu0 %v2823_v17  ;;  %5238 = vst [vmem:[#allocation17_spill] sm:$0xff] %v2999_v47  ;;  %5239 = vst [vmem:[#allocation18_spill] sm:$0xff] %v3005_v48  ;;  %v3011_v49 = vld [vmem:[%s5093_s2 + $0x188] sm:$0xff]  ;;  %v3017_v50 = vld [vmem:[%s5093_s2 + $0x180] sm:$0xff] }
  0x1e   : > { %1328 = vmatprep.subr.mxu0 %v2830_v18  ;;  %5240 = vst [vmem:[#allocation19_spill] sm:$0xff] %v3011_v49  ;;  %5241 = vst [vmem:[#allocation20_spill] sm:$0xff] %v3017_v50  ;;  %v3023_v51 = vld [vmem:[%s5093_s2 + $0x178] sm:$0xff]  ;;  %v3029_v52 = vld [vmem:[%s5093_s2 + $0x170] sm:$0xff] }
  0x1f   : > { %1329 = vmatpush1.msra.mxu0 %v2836_v19  ;;  %5242 = vst [vmem:[#allocation21_spill] sm:$0xff] %v3023_v51  ;;  %5243 = vst [vmem:[#allocation22_spill] sm:$0xff] %v3029_v52  ;;  %v3035_v53 = vld [vmem:[%s5093_s2 + $0x168] sm:$0xff]  ;;  %v3041_v54 = vld [vmem:[%s5093_s2 + $0x160] sm:$0xff] }
  0x20   : > { %1330 = vmatprep.subr.mxu0 %v2842_v20  ;;  %5244 = vst [vmem:[#allocation23_spill] sm:$0xff] %v3035_v53  ;;  %5245 = vst [vmem:[#allocation24_spill] sm:$0xff] %v3041_v54  ;;  %v3047_v55 = vld [vmem:[%s5093_s2 + $0x158] sm:$0xff]  ;;  %v3053_v56 = vld [vmem:[%s5093_s2 + $0x150] sm:$0xff] }
  0x21   : > { %1331 = vmatpush1.msra.mxu0 %v2853_v21  ;;  %5246 = vst [vmem:[#allocation25_spill] sm:$0xff] %v3047_v55  ;;  %5247 = vst [vmem:[#allocation26_spill] sm:$0xff] %v3053_v56  ;;  %v3059_v57 = vld [vmem:[%s5093_s2 + $0x148] sm:$0xff]  ;;  %v3065_v58 = vld [vmem:[%s5093_s2 + $0x140] sm:$0xff] }
  0x22   : > { %1332 = vmatprep.subr.mxu0 %v2859_v22  ;;  %5248 = vst [vmem:[#allocation27_spill] sm:$0xff] %v3059_v57  ;;  %5249 = vst [vmem:[#allocation28_spill] sm:$0xff] %v3065_v58  ;;  %v3071_v59 = vld [vmem:[%s5093_s2 + $0x138] sm:$0xff]  ;;  %v3077_v60 = vld [vmem:[%s5093_s2 + $0x130] sm:$0xff] }
  0x23   : > { %1333 = vmatpush1.msra.mxu0 %v2865_v23  ;;  %5250 = vst [vmem:[#allocation29_spill] sm:$0xff] %v3071_v59  ;;  %5251 = vst [vmem:[#allocation30_spill] sm:$0xff] %v3077_v60  ;;  %v172_v61 = vld [vmem:[%s2847_s7 + $0x10] sm:$0xff]  ;;  %v3084_v62 = vld [vmem:[%s5093_s2 + $0x128] sm:$0xff] }
  0x24   : > { %1334 = vmatprep.subr.mxu0 %v2874_v25  ;;  %5252 = vst [vmem:[#allocation31_spill] sm:$0xff] %v3084_v62  ;;  %v3090_v63 = vld [vmem:[%s5093_s2 + $0x120] sm:$0xff]  ;;  %v3114_v24 = vld [vmem:[%s5093_s2 + $0x108] sm:$0xff] }
  0x25   : > { %1335 = vmatpush1.msra.mxu0 %v2883_v27  ;;  %5253 = vst [vmem:[#allocation32_spill] sm:$0xff] %v3090_v63  ;;  %5256 = vst [vmem:[#allocation35_spill] sm:$0xff] %v3114_v24 }
  0x26   : > { %1336 = vmatprep.subr.mxu0 %v2889_v28 }
  0x27   : > { %1337 = vmatpush1.msra.mxu0 %v2897_v30 }
  0x28   : > { %1338 = vmatprep.subr.mxu0 %v2903_v31 }
  0x29   : > { %1339 = vmatpush1.msra.mxu0 %v2909_v32 }
  0x2a   : > { %1340 = vmatprep.subr.mxu0 %v2915_v33 }
  0x2b   : > { %1341 = vmatpush1.msra.mxu0 %v2921_v34 }
  0x2c   : > { %1342 = vmatprep.subr.mxu0 %v2927_v35 }
  0x2d   : > { %1343 = vmatpush2.msra.mxu0 %v2933_v36 }
  0x2e   : > { %1344 = vmatprep.subr.mxu0 %v2939_v37  ;;  %v196_v37 = vld [vmem:[%s2847_s7 + $0x18] sm:$0xff] }
  0x2f   : > { %1345 = vmatpush2.msra.mxu0 %v2945_v38  ;;  %v5129_v38 = vmov 0.0  }
  0x30   : > { %1346 = vmatprep.subr.mxu0 %v2951_v39  ;;  %v198_v39 = vld [vmem:[%s2847_s7 + $0x38] sm:$0xff]  ;;  %1680 = vmatprep.mubr.f32.mxu1 %v5129_v38  ;;  %283 = vst [vmem:[#allocation2] sm:$0xff] %v5129_v38  ;;  %284 = vst [vmem:[#allocation2 + $0x28] sm:$0xff] %v5129_v38 }
  0x31   : > { %1347 = vmatpush2.msra.mxu0 %v2957_v40  ;;  %v200_v40 = vld [vmem:[%s2847_s7 + $0x58] sm:$0xff]  ;;  %285 = vst [vmem:[#allocation2 + $0x40] sm:$0xff] %v5129_v38  ;;  %286 = vst [vmem:[#allocation2 + $0x98] sm:$0xff] %v5129_v38  ;;  %v210_v35 = vunpack.c.h.bf16 %v198_v39  ;;  %v209_v34 = vunpack.c.l.bf16 %v198_v39 }
  0x32   : > { %1348 = vmatprep.subr.mxu0 %v2963_v41 }
  0x33   : > { %1349 = vmatpush2.msra.mxu0 %v2969_v42  ;;  %294 = vst [vmem:[#allocation2 + $0x30] sm:$0xff] %v210_v35  ;;  %293 = vst [vmem:[#allocation2 + $0x18] sm:$0xff] %v209_v34 }
  0x34   : > { %1350 = vmatprep.subr.mxu0 %v2975_v43  ;;  %v201_v43 = vld [vmem:[%s2847_s7 + $0x68] sm:$0xff] }
  0x35   : > { %1351 = vmatpush2.msra.mxu0 %v2981_v44  ;;  %v202_v44 = vld [vmem:[%s2847_s7 + $0x78] sm:$0xff]  ;;  %v216_v41 = vunpack.c.h.bf16 %v201_v43 }
  0x36   : > { %1352 = vmatprep.subr.mxu0 %v2987_v45  ;;  %v217_v42 = vunpack.c.l.bf16 %v202_v44 }
  0x37   : > { %1353 = vmatpush2.msra.mxu0 %v2993_v46  ;;  %300 = vst [vmem:[#allocation2 + $0x38] sm:$0xff] %v216_v41 }
  0x38   : > { %1354 = vmatprep.subr.mxu0 %v2999_v47  ;;  %301 = vst [vmem:[#allocation2 + $0x60] sm:$0xff] %v217_v42 }
  0x39   : > { %1355 = vmatpush2.msra.mxu0 %v3005_v48 }
  0x3a   : > { %1356 = vmatprep.subr.mxu0 %v3011_v49 }
  0x3b   : > { %1357 = vmatpush2.msra.mxu0 %v3017_v50 }
  0x3c   : > { %1358 = vmatprep.subr.mxu0 %v3023_v51  ;;  %v175_v51 = vld [vmem:[%s2847_s7 + $0x40] sm:$0xff] }
  0x3d   : > { %1359 = vmatpush2.msra.mxu0 %v3029_v52  ;;  %v3154_v49 = vunpack.c.l.bf16 %v175_v51 }
  0x3e   : > { %1360 = vmatprep.subr.mxu0 %v3035_v53 }
  0x3f   : > { %1361 = vmatpush2.msra.mxu0 %v3041_v54  ;;  %v1302_v48 = vmul.f32 %v3154_v49, %v3154_v49 }
  0x40   : > { %1362 = vmatprep.subr.mxu0 %v3047_v55  ;;  %v3124_v55 = vunpack.c.l.bf16 %v172_v61 }
  0x41   : > { %1363 = vmatpush2.msra.mxu0 %v3053_v56  ;;  %v173_v56 = vld [vmem:[%s2847_s7 + $0x20] sm:$0xff] }
  0x42   : > { %1364 = vmatprep.subr.mxu0 %v3059_v57  ;;  %v3101_v57 = vunpack.c.h.bf16 %v172_v61  ;;  %v3129_v54 = vunpack.c.h.bf16 %v173_v56  ;;  %v1296_v53 = vmul.f32 %v3124_v55, %v3124_v55  ;;  %v3136_v52 = vunpack.c.l.bf16 %v173_v56 }
  0x43   : > { %1365 = vmatpush2.msra.mxu0 %v3065_v58  ;;  %v3099_v58 = vld [vmem:[%s5093_s2 + $0x118] sm:$0xff]  ;;  %v3149_v56 = vunpack.c.h.bf16 %v175_v51  ;;  %v178_v51 = vld [vmem:[%s2847_s7 + $0x70] sm:$0xff] }
  0x44   : > { %1366 = vmatprep.subr.mxu0 %v3071_v59  ;;  %5254 = vst [vmem:[#allocation33_spill] sm:$0xff] %v3099_v58  ;;  %v3107_v59 = vld [vmem:[%s5093_s2 + $0x110] sm:$0xff]  ;;  %v1299_v61 = vmul.f32 %v3129_v54, %v3129_v54 }
  0x45   : > { %1367 = vmatpush2.msra.mxu0 %v3077_v60  ;;  %5255 = vst [vmem:[#allocation34_spill] sm:$0xff] %v3107_v59  ;;  %v1294_v60 = vmul.f32 %v3093_v29, %v3093_v29 }
  0x46   : > { %1368 = vmatprep.subr.mxu0 %v3084_v62  ;;  %v3120_v62 = vld [vmem:[%s5093_s2 + $0x100] sm:$0xff] }
  0x47   : > { %1369 = vmatpush2.msra.mxu0 %v3090_v63  ;;  %5257 = vst [vmem:[#allocation36_spill] sm:$0xff] %v3120_v62  ;;  %v1297_v63 = vmul.f32 %v3101_v57, %v3101_v57 }
  0x48   : > { %1370 = vmatprep.subr.mxu0 %v3099_v58  ;;  %v174_v58 = vld [vmem:[%s2847_s7 + $0x30] sm:$0xff] }
  0x49   : > { %1371 = vmatpush2.msra.mxu0 %v3107_v59  ;;  %v3140_v59 = vunpack.c.h.bf16 %v174_v58  ;;  %v3145_v50 = vunpack.c.l.bf16 %v174_v58 }
  0x4a   : > { %1372 = vmatprep.subr.mxu0 %v3114_v24  ;;  %v1298_v24 = vmul.f32 %v3136_v52, %v3136_v52 }
  0x4b   : > { %1373 = vmatpush2.msra.mxu0 %v3120_v62  ;;  %v1300_v62 = vmul.f32 %v3145_v50, %v3145_v50 }
  0x4c   : > { %1375 = vmatmul.mubr.f32.vlgmr.msra.gmra.mxu0 %v1294_v60  ;;  %v1301_v60 = vmul.f32 %v3140_v59, %v3140_v59 }
  0x4d   : > { %1380 = vmatprep.mubr.f32.mxu0 %v1297_v63  ;;  %v176_v63 = vld [vmem:[%s2847_s7 + $0x50] sm:$0xff] }
  0x4e   : > { %v3158_v58 = vunpack.c.h.bf16 %v176_v63  ;;  %v3163_v47 = vunpack.c.l.bf16 %v176_v63  ;;  %v3176_v63 = vunpack.c.h.bf16 %v178_v51 }
  0x50   : > { %1381 = vmatmul.mubr.f32.gmra.mxu0 %v1296_v53  ;;  %v1303_v53 = vmul.f32 %v3149_v56, %v3149_v56 }
  0x51   : > { %1386 = vmatprep.mubr.f32.mxu0 %v1299_v61  ;;  %v177_v61 = vld [vmem:[%s2847_s7 + $0x60] sm:$0xff] }
  0x52   : > { %v3167_v46 = vunpack.c.h.bf16 %v177_v61  ;;  %v3172_v45 = vunpack.c.l.bf16 %v177_v61  ;;  %v1309_v61 = vmul.f32 %v3176_v63, %v3176_v63 }
  0x54   : > { %1387 = vmatmul.mubr.f32.gmra.mxu0 %v1298_v24  ;;  %v1305_v24 = vmul.f32 %v3158_v58, %v3158_v58 }
  0x55   : > { %1392 = vmatprep.mubr.f32.mxu0 %v1301_v60  ;;  %v1304_v60 = vmul.f32 %v3163_v47, %v3163_v47 }
  0x58   : > { %1393 = vmatmul.mubr.f32.gmra.mxu0 %v1300_v62  ;;  %v1307_v62 = vmul.f32 %v3167_v46, %v3167_v46 }
  0x59   : > { %1398 = vmatprep.mubr.f32.mxu0 %v1303_v53  ;;  %v1306_v53 = vmul.f32 %v3172_v45, %v3172_v45 }
  0x5c   : > { %1399 = vmatmul.mubr.f32.gmra.mxu0 %v1302_v48  ;;  %v3180_v48 = vunpack.c.l.bf16 %v178_v51  ;;  %v215_v51 = vunpack.c.l.bf16 %v201_v43  ;;  %v195_v43 = vld [vmem:[%s2847_s7 + $0x8] sm:$0xff] }
  0x5d   : > { %1404 = vmatprep.mubr.f32.mxu0 %v1305_v24  ;;  %v3210_v39 = vunpack.c.l.bf16 %v195_v43 }
  0x5e   : > { %v1308_v24 = vmul.f32 %v3180_v48, %v3180_v48  ;;  %299 = vst [vmem:[#allocation2 + $0x10] sm:$0xff] %v215_v51 }
  0x5f   : > { %287 = vst [vmem:[#allocation2 + $0x20] sm:$0xff] %v3210_v39 }
  0x60   : > { %1405 = vmatmul.mubr.f32.gmra.mxu0 %v1304_v60  ;;  %v218_v60 = vunpack.c.h.bf16 %v202_v44  ;;  %v213_v44 = vunpack.c.l.bf16 %v200_v40 }
  0x61   : > { %1410 = vmatprep.mubr.f32.mxu0 %v1307_v62  ;;  %v199_v62 = vld [vmem:[%s2847_s7 + $0x48] sm:$0xff] }
  0x62   : > { %302 = vst [vmem:[#allocation2 + $0x80] sm:$0xff] %v218_v60  ;;  %1632 = vmatprep.subr.mxu1 %v218_v60  ;;  %v211_v36 = vunpack.c.l.bf16 %v199_v62  ;;  %297 = vst [vmem:[#allocation2 + $0x88] sm:$0xff] %v213_v44  ;;  %v3206_v60 = vunpack.c.l.bf16 %v196_v37 }
  0x63   : > { %1633 = vmatpush1.msra.mxu1 %v217_v42 }
  0x64   : > { %1411 = vmatmul.mubr.f32.gmra.mxu0 %v1306_v53  ;;  %v214_v53 = vunpack.c.h.bf16 %v200_v40  ;;  %v3203_v40 = vunpack.c.h.bf16 %v196_v37  ;;  %1634 = vmatprep.subr.mxu1 %v216_v41  ;;  %295 = vst [vmem:[#allocation2 + $0x48] sm:$0xff] %v211_v36  ;;  %289 = vst [vmem:[#allocation2 + $0x68] sm:$0xff] %v3206_v60 }
  0x65   : > { %1416 = vmatprep.mubr.f32.mxu0 %v1309_v61  ;;  %v212_v61 = vunpack.c.h.bf16 %v199_v62  ;;  %v3208_v62 = vunpack.c.h.bf16 %v195_v43  ;;  %1635 = vmatpush1.msra.mxu1 %v215_v51 }
  0x66   : > { %298 = vst [vmem:[#allocation2 + $0x50] sm:$0xff] %v214_v53  ;;  %290 = vst [vmem:[#allocation2 + $0x70] sm:$0xff] %v3203_v40  ;;  %1636 = vmatprep.subr.mxu1 %v214_v53 }
  0x67   : > { %296 = vst [vmem:[#allocation2 + $0x90] sm:$0xff] %v212_v61  ;;  %288 = vst [vmem:[#allocation2 + $0x58] sm:$0xff] %v3208_v62  ;;  %1637 = vmatpush1.msra.mxu1 %v213_v44 }
  0x68   : > { %1417 = vmatmul.mubr.f32.gmra.mxu0 %v1308_v24  ;;  %v197_v24 = vld [vmem:[%s2847_s7 + $0x28] sm:$0xff]  ;;  %1638 = vmatprep.subr.mxu1 %v212_v61 }
  0x69   : > { %v3199_v33 = vunpack.c.h.bf16 %v197_v24  ;;  %v3201_v38 = vunpack.c.l.bf16 %v197_v24  ;;  %1639 = vmatpush1.msra.mxu1 %v211_v36 }
  0x6a   : > { %1640 = vmatprep.subr.mxu1 %v210_v35 }
  0x6b   : > { %5258 = vst [vmem:[#allocation37_spill] sm:$0xff] %v3199_v33  ;;  %5259 = vst [vmem:[#allocation38_spill] sm:$0xff] %v3201_v38  ;;  %1641 = vmatpush1.msra.mxu1 %v209_v34 }
  0x6c   : > { %292 = vst [vmem:[#allocation2 + $0x78] sm:$0xff] %v3199_v33  ;;  %291 = vst [vmem:[#allocation2 + $0x8] sm:$0xff] %v3201_v38  ;;  %1642 = vmatprep.subr.mxu1 %v3199_v33 }
  0x6d   : > { %1643 = vmatpush1.msra.mxu1 %v3201_v38 }
  0x6e   : > { %1644 = vmatprep.subr.mxu1 %v3203_v40 }
  0x6f   : > { %1645 = vmatpush1.msra.mxu1 %v3206_v60 }
  0x70   : > { %1646 = vmatprep.subr.mxu1 %v3208_v62 }
  0x71   : > { %1647 = vmatpush1.msra.mxu1 %v3210_v39 }
  0x72   : > { %2114 = vmatprep.subr.mxu1 %v2717_v0 }
 0x10c   : > { %v1376_v37 = vpop.f32.mrf.mxu0 }
 0x10d   : > { %v1377_v41 = vadd.f32 1e-12, %v1376_v37 }
 0x10e   : > { %v1378_v42 = vpop.f32.mrf.mxu0 }
 0x10f   : > { %2532 = vrsqrt.f32 %v1377_v41  ;;  %v1379_v35 = vadd.f32 1e-12, %v1378_v42 }
 0x110   : > { %v1382_v34 = vpop.f32.mrf.mxu0 }
 0x111   : > { %2534 = vrsqrt.f32 %v1379_v35  ;;  %v1383_v36 = vadd.f32 1e-12, %v1382_v34 }
 0x112   : > { %v1384_v51 = vpop.f32.mrf.mxu0 }
 0x113   : > { %2536 = vrsqrt.f32 %v1383_v36  ;;  %v1385_v53 = vadd.f32 1e-12, %v1384_v51 }
 0x114   : > { %v1388_v44 = vpop.f32.mrf.mxu0 }
 0x115   : > { %2538 = vrsqrt.f32 %v1385_v53  ;;  %v1389_v61 = vadd.f32 1e-12, %v1388_v44 }
 0x116   : > { %v1390_v24 = vpop.f32.mrf.mxu0 }
 0x117   : > { %2540 = vrsqrt.f32 %v1389_v61  ;;  %v1391_v43 = vadd.f32 1e-12, %v1390_v24 }
 0x118   : > { %v1394_v33 = vpop.f32.mrf.mxu0 }
 0x119   : > { %2542 = vrsqrt.f32 %v1391_v43  ;;  %v1395_v0 = vadd.f32 1e-12, %v1394_v33 }
 0x11a   : > { %v1396_v38 = vpop.f32.mrf.mxu0 }
 0x11b   : > { %2544 = vrsqrt.f32 %v1395_v0  ;;  %v1397_v37 = vadd.f32 1e-12, %v1396_v38 }
 0x11c   : > { %v2533_v41 = vpop.eup %2532  ;;  %v1400_v42 = vpop.f32.mrf.mxu0 }
 0x11d   : > { %2546 = vrsqrt.f32 %v1397_v37  ;;  %v1401_v35 = vadd.f32 1e-12, %v1400_v42  ;;  %v3225_v34 = vmul.f32 %v2533_v41, %v3093_v29 }
 0x11e   : > { %v2535_v36 = vpop.eup %2534  ;;  %v1402_v51 = vpop.f32.mrf.mxu0 }
 0x11f   : > { %2548 = vrsqrt.f32 %v1401_v35  ;;  %v1403_v53 = vadd.f32 1e-12, %v1402_v51  ;;  %1455 = vxpose.xlu0.b32.start [1/8] (short) %v3225_v34, 128  ;;  %v1440_v44 = vmul.f32 %v2535_v36, %v2877_v26 }
 0x120   : > { %v2537_v61 = vpop.eup %2536  ;;  %v1406_v33 = vpop.f32.mrf.mxu0 }
 0x121   : > { %2550 = vrsqrt.f32 %v1403_v53  ;;  %v1407_v24 = vadd.f32 1e-12, %v1406_v33  ;;  %1487 = vxpose.xlu1.b32.start [1/8] (short) %v1440_v44, 128  ;;  %2001 = vmatprep.mubr.f32.mxu0 %v1440_v44  ;;  %v3230_v38 = vmul.f32 %v2537_v61, %v3124_v55 }
 0x122   : > { %v2539_v43 = vpop.eup %2538  ;;  %v1408_v29 = vpop.f32.mrf.mxu0 }
 0x123   : > { %2552 = vrsqrt.f32 %v1407_v24  ;;  %v1409_v0 = vadd.f32 1e-12, %v1408_v29  ;;  %1456 = vxpose.xlu0.b32.cont [2/8] (short) %v3230_v38, 128  ;;  %v3234_v37 = vmul.f32 %v2539_v43, %v3101_v57 }
 0x124   : > { %v2541_v41 = vpop.eup %2540  ;;  %v1412_v26 = vpop.f32.mrf.mxu0 }
 0x125   : > { %2554 = vrsqrt.f32 %v1409_v0  ;;  %v1413_v42 = vadd.f32 1e-12, %v1412_v26  ;;  %1488 = vxpose.xlu1.b32.cont [2/8] (short) %v3234_v37, 128  ;;  %v3238_v35 = vmul.f32 %v2541_v41, %v3136_v52 }
 0x126   : > { %v2543_v55 = vpop.eup %2542  ;;  %v1414_v36 = vpop.f32.mrf.mxu0 }
 0x127   : > { %2556 = vrsqrt.f32 %v1413_v42  ;;  %v1415_v51 = vadd.f32 1e-12, %v1414_v36  ;;  %1457 = vxpose.xlu0.b32.cont [3/8] (short) %v3238_v35, 128  ;;  %v3242_v53 = vmul.f32 %v2543_v55, %v3129_v54 }
 0x128   : > { %v2545_v57 = vpop.eup %2544  ;;  %v1418_v44 = vpop.f32.mrf.mxu0 }
 0x129   : > { %2558 = vrsqrt.f32 %v1415_v51  ;;  %v1419_v61 = vadd.f32 1e-12, %v1418_v44  ;;  %1489 = vxpose.xlu1.b32.cont [3/8] (short) %v3242_v53, 128  ;;  %v3246_v33 = vmul.f32 %v2545_v57, %v3145_v50 }
 0x12a   : > { %v2547_v52 = vpop.eup %2546  ;;  %v1420_v24 = vpop.f32.mrf.mxu0 }
 0x12b   : > { %2560 = vrsqrt.f32 %v1419_v61  ;;  %v1421_v43 = vadd.f32 1e-12, %v1420_v24  ;;  %1458 = vxpose.xlu0.b32.cont [4/8] (short) %v3246_v33, 128  ;;  %v3250_v29 = vmul.f32 %v2547_v52, %v3140_v59  ;;  %v5278_v52 = vld [vmem:[#allocation20_spill] sm:$0xff]  ;;  %v5279_v24 = vld [vmem:[#allocation21_spill] sm:$0xff] }
 0x12c   : > { %v2549_v54 = vpop.eup %2548 }
 0x12d   : > { %2562 = vrsqrt.f32 %v1421_v43  ;;  %1490 = vxpose.xlu1.b32.cont [4/8] (short) %v3250_v29, 128  ;;  %v3254_v0 = vmul.f32 %v2549_v54, %v3154_v49  ;;  %v5280_v54 = vld [vmem:[#allocation22_spill] sm:$0xff] }
 0x12e   : > { %v2551_v41 = vpop.eup %2550 }
 0x12f   : > { %1459 = vxpose.xlu0.b32.cont [5/8] (short) %v3254_v0, 128  ;;  %v3258_v50 = vmul.f32 %v2551_v41, %v3149_v56  ;;  %v5281_v41 = vld [vmem:[#allocation23_spill] sm:$0xff] }
 0x130   : > { %v2553_v26 = vpop.eup %2552 }
 0x131   : > { %1491 = vxpose.xlu1.b32.cont [5/8] (short) %v3258_v50, 128  ;;  %v3262_v42 = vmul.f32 %v2553_v26, %v3163_v47 }
 0x132   : > { %v2555_v59 = vpop.eup %2554 }
 0x133   : > { %1460 = vxpose.xlu0.b32.cont [6/8] (short) %v3262_v42, 128  ;;  %v3266_v55 = vmul.f32 %v2555_v59, %v3158_v58  ;;  %v5282_v59 = vld [vmem:[#allocation24_spill] sm:$0xff] }
 0x134   : > { %v2557_v49 = vpop.eup %2556 }
 0x135   : > { %1492 = vxpose.xlu1.b32.cont [6/8] (short) %v3266_v55, 128  ;;  %v3270_v36 = vmul.f32 %v2557_v49, %v3172_v45  ;;  %v5283_v49 = vld [vmem:[#allocation25_spill] sm:$0xff] }
 0x136   : > { %v2559_v56 = vpop.eup %2558 }
 0x137   : > { %1461 = vxpose.xlu0.b32.cont [7/8] (short) %v3270_v36, 128  ;;  %v3274_v51 = vmul.f32 %v2559_v56, %v3167_v46  ;;  %v5260_v46 = vmov 0.0   ;;  %v5284_v56 = vld [vmem:[#allocation26_spill] sm:$0xff] }
 0x138   : > { %v2561_v47 = vpop.eup %2560 }
 0x139   : > { %1493 = vxpose.xlu1.b32.cont [7/8] (short) %v3274_v51, 128  ;;  %v3278_v57 = vmul.f32 %v2561_v47, %v3180_v48  ;;  %v5285_v47 = vld [vmem:[#allocation27_spill] sm:$0xff] }
 0x13a   : > { %v2563_v58 = vpop.eup %2562 }
 0x13b   : > { %1462 = vxpose.xlu0.b32.end [8/8] (short) %v3278_v57, 128  ;;  %v3282_v44 = vmul.f32 %v2563_v58, %v3176_v63 }
 0x13d   : > { %1494 = vxpose.xlu1.b32.end [8/8] (short) %v3282_v44, 128 }
 0x19b   : > { %v1471_v45 = vpop.trf.xlu0 }
 0x19c   : > { %2471 = vmatmul.mubr.msk.f32.vlgmr.msra.gmra.mxu1 %vm1519_vm0, %v1471_v45 }
 0x19d   : > { %1686 = vmatprep.mubr.f32.mxu1 %v5260_v46  ;;  %2115 = vmatpush1.msra.mxu1 %v2722_v1 }
 0x19e   : > { %2116 = vmatprep.subr.mxu1 %v2727_v2 }
 0x19f   : > { %v1472_v48 = vpop.trf.xlu0  ;;  %2117 = vmatpush1.msra.mxu1 %v2733_v3 }
 0x1a0   : > { %2472 = vmatmul.mubr.msk.f32.gmra.mxu1 %vm1519_vm0, %v1472_v48  ;;  %2118 = vmatprep.subr.mxu1 %v2739_v4  ;;  %v5286_v48 = vld [vmem:[#allocation28_spill] sm:$0xff] }
 0x1a1   : > { %1692 = vmatprep.mubr.f32.mxu1 %v5260_v46  ;;  %2119 = vmatpush1.msra.mxu1 %v2745_v5 }
 0x1a2   : > { %2120 = vmatprep.subr.mxu1 %v2751_v6  ;;  %v5261_v6 = vld [vmem:[#allocation3_spill] sm:$0xff] }
 0x1a3   : > { %v1473_v63 = vpop.trf.xlu0  ;;  %2121 = vmatpush1.msra.mxu1 %v2757_v7 }
 0x1a4   : > { %2473 = vmatmul.mubr.msk.f32.gmra.mxu1 %vm1519_vm0, %v1473_v63  ;;  %2122 = vmatprep.subr.mxu1 %v2763_v8  ;;  %v1503_v8 = vpop.trf.xlu1  ;;  %v5287_v63 = vld [vmem:[#allocation29_spill] sm:$0xff] }
 0x1a5   : > { %1698 = vmatprep.mubr.f32.mxu1 %v5260_v46  ;;  %2123 = vmatpush1.msra.mxu1 %v2769_v9  ;;  %v5262_v9 = vld [vmem:[#allocation4_spill] sm:$0xff] }
 0x1a6   : > { %2124 = vmatprep.subr.mxu1 %v2777_v10  ;;  %v5263_v10 = vld [vmem:[#allocation5_spill] sm:$0xff] }
 0x1a7   : > { %v1474_v1 = vpop.trf.xlu0  ;;  %2125 = vmatpush1.msra.mxu1 %v2783_v11  ;;  %v5264_v11 = vld [vmem:[#allocation6_spill] sm:$0xff] }
 0x1a8   : > { %2474 = vmatmul.mubr.msk.f32.gmra.mxu1 %vm1519_vm0, %v1474_v1  ;;  %2126 = vmatprep.subr.mxu1 %v2789_v12  ;;  %v5265_v12 = vld [vmem:[#allocation7_spill] sm:$0xff]  ;;  %v5288_v1 = vld [vmem:[#allocation30_spill] sm:$0xff] }
 0x1a9   : > { %1704 = vmatprep.mubr.f32.mxu1 %v5260_v46  ;;  %2127 = vmatpush1.msra.mxu1 %v2795_v13 }
 0x1aa   : > { %2128 = vmatprep.subr.mxu1 %v2805_v14  ;;  %v5266_v14 = vld [vmem:[#allocation8_spill] sm:$0xff] }
 0x1ab   : > { %v1475_v2 = vpop.trf.xlu0  ;;  %2129 = vmatpush1.msra.mxu1 %v2811_v15  ;;  %v5267_v15 = vld [vmem:[#allocation9_spill] sm:$0xff] }
 0x1ac   : > { %2475 = vmatmul.mubr.msk.f32.gmra.mxu1 %vm1519_vm0, %v1475_v2  ;;  %2130 = vmatprep.subr.mxu1 %v2817_v16  ;;  %v1504_v16 = vpop.trf.xlu1  ;;  %v5289_v2 = vld [vmem:[#allocation31_spill] sm:$0xff] }
 0x1ad   : > { %1710 = vmatprep.mubr.f32.mxu1 %v5260_v46  ;;  %2131 = vmatpush1.msra.mxu1 %v2823_v17  ;;  %v5268_v17 = vld [vmem:[#allocation10_spill] sm:$0xff] }
 0x1ae   : > { %2132 = vmatprep.subr.mxu1 %v2830_v18  ;;  %v5269_v18 = vld [vmem:[#allocation11_spill] sm:$0xff] }
 0x1af   : > { %v1476_v3 = vpop.trf.xlu0  ;;  %2133 = vmatpush1.msra.mxu1 %v2836_v19 }
 0x1b0   : > { %2476 = vmatmul.mubr.msk.f32.gmra.mxu1 %vm1519_vm0, %v1476_v3  ;;  %2134 = vmatprep.subr.mxu1 %v2842_v20  ;;  %v5270_v20 = vld [vmem:[#allocation12_spill] sm:$0xff] }
 0x1b1   : > { %1716 = vmatprep.mubr.f32.mxu1 %v5260_v46  ;;  %2135 = vmatpush1.msra.mxu1 %v2853_v21  ;;  %v5271_v21 = vld [vmem:[#allocation13_spill] sm:$0xff] }
 0x1b2   : > { %2136 = vmatprep.subr.mxu1 %v2859_v22  ;;  %v5272_v22 = vld [vmem:[#allocation14_spill] sm:$0xff] }
 0x1b3   : > { %v1477_v4 = vpop.trf.xlu0  ;;  %2137 = vmatpush1.msra.mxu1 %v2865_v23  ;;  %v5273_v23 = vld [vmem:[#allocation15_spill] sm:$0xff] }
 0x1b4   : > { %2477 = vmatmul.mubr.msk.f32.gmra.mxu1 %vm1519_vm0, %v1477_v4  ;;  %2138 = vmatprep.subr.mxu1 %v2874_v25  ;;  %v5290_v4 = vld [vmem:[#allocation32_spill] sm:$0xff] }
 0x1b5   : > { %1722 = vmatprep.mubr.f32.mxu1 %v5260_v46  ;;  %2139 = vmatpush1.msra.mxu1 %v2883_v27  ;;  %v1505_v27 = vpop.trf.xlu1 }
 0x1b6   : > { %2140 = vmatprep.subr.mxu1 %v2889_v28  ;;  %v5274_v28 = vld [vmem:[#allocation16_spill] sm:$0xff] }
 0x1b7   : > { %v1478_v5 = vpop.trf.xlu0  ;;  %2141 = vmatpush1.msra.mxu1 %v2897_v30  ;;  %v5275_v30 = vld [vmem:[#allocation17_spill] sm:$0xff] }
 0x1b8   : > { %2478 = vmatmul.mubr.msk.f32.gmra.mxu1 %vm1519_vm0, %v1478_v5  ;;  %2142 = vmatprep.subr.mxu1 %v2903_v31  ;;  %v5276_v31 = vld [vmem:[#allocation18_spill] sm:$0xff]  ;;  %v5291_v5 = vld [vmem:[#allocation33_spill] sm:$0xff] }
 0x1b9   : > { %1728 = vmatprep.mubr.f32.mxu1 %v5260_v46  ;;  %2143 = vmatpush1.msra.mxu1 %v2909_v32  ;;  %v5277_v32 = vld [vmem:[#allocation19_spill] sm:$0xff]  ;;  %v1506_v43 = vpop.trf.xlu1 }
 0x1ba   : > { %2144 = vmatprep.subr.mxu1 %v5261_v6 }
 0x1bb   : > { %v1479_v7 = vpop.trf.xlu0  ;;  %2145 = vmatpush1.msra.mxu1 %v5262_v9  ;;  %v5293_v9 = vld [vmem:[#allocation35_spill] sm:$0xff] }
 0x1bc   : > { %2479 = vmatmul.mubr.msk.f32.gmra.mxu1 %vm1519_vm0, %v1479_v7  ;;  %2146 = vmatprep.subr.mxu1 %v5263_v10  ;;  %v5292_v7 = vld [vmem:[#allocation34_spill] sm:$0xff]  ;;  %v5294_v10 = vld [vmem:[#allocation36_spill] sm:$0xff] }
 0x1bd   : > { %1734 = vmatprep.mubr.f32.mxu1 %v5260_v46  ;;  %2147 = vmatpush2.msra.mxu1 %v5264_v11  ;;  %v1507_v45 = vpop.trf.xlu1 }
 0x1be   : > { %2148 = vmatprep.subr.mxu1 %v5265_v12 }
 0x1bf   : > { %v1480_v13 = vpop.trf.xlu0  ;;  %2149 = vmatpush2.msra.mxu1 %v5266_v14 }
 0x1c0   : > { %2480 = vmatmul.mubr.msk.f32.gmra.mxu1 %vm1519_vm0, %v1480_v13  ;;  %2150 = vmatprep.subr.mxu1 %v5267_v15 }
 0x1c1   : > { %1740 = vmatprep.mubr.f32.mxu1 %v5260_v46  ;;  %2151 = vmatpush2.msra.mxu1 %v5268_v17  ;;  %v1508_v6 = vpop.trf.xlu1 }
 0x1c2   : > { %2152 = vmatprep.subr.mxu1 %v5269_v18 }
 0x1c3   : > { %v1481_v19 = vpop.trf.xlu0  ;;  %2153 = vmatpush2.msra.mxu1 %v5270_v20 }
 0x1c4   : > { %2481 = vmatmul.mubr.msk.f32.gmra.mxu1 %vm1519_vm0, %v1481_v19  ;;  %2154 = vmatprep.subr.mxu1 %v5271_v21 }
 0x1c5   : > { %1746 = vmatprep.mubr.f32.mxu1 %v5260_v46  ;;  %2155 = vmatpush2.msra.mxu1 %v5272_v22  ;;  %v1509_v11 = vpop.trf.xlu1 }
 0x1c6   : > { %2156 = vmatprep.subr.mxu1 %v5273_v23 }
 0x1c7   : > { %v1482_v25 = vpop.trf.xlu0  ;;  %2157 = vmatpush2.msra.mxu1 %v5274_v28 }
 0x1c8   : > { %2482 = vmatmul.mubr.msk.f32.gmra.mxu1 %vm1519_vm0, %v1482_v25  ;;  %2158 = vmatprep.subr.mxu1 %v5275_v30 }
 0x1c9   : > { %1752 = vmatprep.mubr.f32.mxu1 %v5260_v46  ;;  %2159 = vmatpush2.msra.mxu1 %v5276_v31  ;;  %v1510_v12 = vpop.trf.xlu1 }
 0x1ca   : > { %2160 = vmatprep.subr.mxu1 %v5277_v32 }
 0x1cb   : > { %v1483_v61 = vpop.trf.xlu0  ;;  %2161 = vmatpush2.msra.mxu1 %v5278_v52 }
 0x1cc   : > { %2483 = vmatmul.mubr.msk.f32.gmra.mxu1 %vm1519_vm0, %v1483_v61  ;;  %2162 = vmatprep.subr.mxu1 %v5279_v24 }
 0x1cd   : > { %1758 = vmatprep.mubr.f32.mxu1 %v5260_v46  ;;  %2163 = vmatpush2.msra.mxu1 %v5280_v54  ;;  %v1511_v13 = vpop.trf.xlu1 }
 0x1ce   : > { %2164 = vmatprep.subr.mxu1 %v5281_v41 }
 0x1cf   : > { %v1484_v26 = vpop.trf.xlu0  ;;  %2165 = vmatpush2.msra.mxu1 %v5282_v59 }
 0x1d0   : > { %2484 = vmatmul.mubr.msk.f32.gmra.mxu1 %vm1519_vm0, %v1484_v26  ;;  %2166 = vmatprep.subr.mxu1 %v5283_v49 }
 0x1d1   : > { %1764 = vmatprep.mubr.f32.mxu1 %v5260_v46  ;;  %2167 = vmatpush2.msra.mxu1 %v5284_v56 }
 0x1d2   : > { %2168 = vmatprep.subr.mxu1 %v5285_v47 }
 0x1d3   : > { %v1485_v58 = vpop.trf.xlu0  ;;  %2169 = vmatpush2.msra.mxu1 %v5286_v48 }
 0x1d4   : > { %2485 = vmatmul.mubr.msk.f32.gmra.mxu1 %vm1519_vm0, %v1485_v58  ;;  %2170 = vmatprep.subr.mxu1 %v5287_v63 }
 0x1d5   : > { %1770 = vmatprep.mubr.f32.mxu1 %v5260_v46  ;;  %2171 = vmatpush2.msra.mxu1 %v5288_v1 }
 0x1d6   : > { %2172 = vmatprep.subr.mxu1 %v5289_v2 }
 0x1d7   : > { %v1486_v3 = vpop.trf.xlu0  ;;  %2173 = vmatpush2.msra.mxu1 %v5290_v4 }
 0x1d8   : > { %2486 = vmatmul.mubr.msk.f32.gmra.mxu1 %vm1519_vm0, %v1486_v3  ;;  %2174 = vmatprep.subr.mxu1 %v5291_v5 }
 0x1d9   : > { %1776 = vmatprep.mubr.f32.mxu1 %v5260_v46  ;;  %2175 = vmatpush2.msra.mxu1 %v5292_v7  ;;  %v2596_v7 = vld [vmem:[%s5093_s2 + $0xf8] sm:$0xff] }
 0x1da   : > { %2176 = vmatprep.subr.mxu1 %v5293_v9 }
 0x1db   : > { %2177 = vmatpush2.msra.mxu1 %v5294_v10  ;;  %v2597_v10 = vld [vmem:[%s5093_s2 + $0xf0] sm:$0xff] }
 0x1dc   : > { %2487 = vmatmul.mubr.msk.f32.gmra.mxu1 %vm1519_vm0, %v1503_v8  ;;  %v1512_v8 = vpop.trf.xlu1 }
 0x1dd   : > { %1782 = vmatprep.mubr.f32.mxu1 %v5260_v46 }
 0x1e0   : > { %2488 = vmatmul.mubr.msk.f32.gmra.mxu1 %vm1519_vm0, %v1504_v16  ;;  %v1513_v14 = vpop.trf.xlu1 }
 0x1e1   : > { %1788 = vmatprep.mubr.f32.mxu1 %v5260_v46 }
 0x1e4   : > { %2489 = vmatmul.mubr.msk.f32.gmra.mxu1 %vm1519_vm0, %v1505_v27  ;;  %v1514_v15 = vpop.trf.xlu1 }
 0x1e5   : > { %1794 = vmatprep.mubr.f32.mxu1 %v5260_v46 }
 0x1e8   : > { %2490 = vmatmul.mubr.msk.f32.gmra.mxu1 %vm1519_vm0, %v1506_v43  ;;  %v1515_v16 = vpop.trf.xlu1 }
 0x1e9   : > { %1800 = vmatprep.mubr.f32.mxu1 %v5260_v46 }
 0x1ec   : > { %2491 = vmatmul.mubr.msk.f32.gmra.mxu1 %vm1519_vm0, %v1507_v45  ;;  %v1516_v17 = vpop.trf.xlu1 }
 0x1ed   : > { %1806 = vmatprep.mubr.f32.mxu1 %v5260_v46 }
 0x1f0   : > { %2492 = vmatmul.mubr.msk.f32.gmra.mxu1 %vm1519_vm0, %v1508_v6  ;;  %v1517_v18 = vpop.trf.xlu1 }
 0x1f1   : > { %1812 = vmatprep.mubr.f32.mxu1 %v5260_v46 }
 0x1f4   : > { %2493 = vmatmul.mubr.msk.f32.gmra.mxu1 %vm1519_vm0, %v1509_v11  ;;  %v1518_v19 = vpop.trf.xlu1 }
 0x1f5   : > { %1818 = vmatprep.mubr.f32.mxu1 %v5260_v46 }
 0x1f8   : > { %2494 = vmatmul.mubr.msk.f32.gmra.mxu1 %vm1519_vm0, %v1510_v12 }
 0x1f9   : > { %1824 = vmatprep.mubr.f32.mxu1 %v5260_v46 }
 0x1fc   : > { %2495 = vmatmul.mubr.msk.f32.gmra.mxu1 %vm1519_vm0, %v1511_v13  ;;  %v2598_v13 = vld [vmem:[%s5093_s2 + $0xe8] sm:$0xff] }
 0x1fd   : > { %1830 = vmatprep.mubr.f32.mxu1 %v5260_v46 }
 0x200   : > { %2496 = vmatmul.mubr.msk.f32.gmra.mxu1 %vm1519_vm0, %v1512_v8 }
 0x201   : > { %1836 = vmatprep.mubr.f32.mxu1 %v5260_v46 }
 0x204   : > { %2497 = vmatmul.mubr.msk.f32.gmra.mxu1 %vm1519_vm0, %v1513_v14  ;;  %v2599_v14 = vld [vmem:[%s5093_s2 + $0xe0] sm:$0xff] }
 0x205   : > { %1842 = vmatprep.mubr.f32.mxu1 %v5260_v46 }
 0x208   : > { %2498 = vmatmul.mubr.msk.f32.gmra.mxu1 %vm1519_vm0, %v1514_v15 }
 0x209   : > { %1848 = vmatprep.mubr.f32.mxu1 %v5260_v46 }
 0x20c   : > { %2499 = vmatmul.mubr.msk.f32.gmra.mxu1 %vm1519_vm0, %v1515_v16 }
 0x20d   : > { %1854 = vmatprep.mubr.f32.mxu1 %v5260_v46 }
 0x210   : > { %2500 = vmatmul.mubr.msk.f32.gmra.mxu1 %vm1519_vm0, %v1516_v17  ;;  %v2600_v17 = vld [vmem:[%s5093_s2 + $0xd8] sm:$0xff] }
 0x211   : > { %1860 = vmatprep.mubr.f32.mxu1 %v5260_v46 }
 0x214   : > { %2501 = vmatmul.mubr.msk.f32.gmra.mxu1 %vm1519_vm0, %v1517_v18 }
 0x215   : > { %1866 = vmatprep.mubr.f32.mxu1 %v5260_v46 }
 0x218   : > { %2502 = vmatmul.mubr.msk.f32.gmra.mxu1 %vm1519_vm0, %v1518_v19  ;;  %v2601_v19 = vld [vmem:[%s5093_s2 + $0xd0] sm:$0xff] }
 0x25c   : > { %v3411_v20 = vpop.f32.mrf.mxu1 }
 0x25e   : > { %v3413_v21 = vpop.f32.mrf.mxu1 }
 0x260   : > { %v3415_v22 = vpop.f32.mrf.mxu1 }
 0x262   : > { %v3417_v23 = vpop.f32.mrf.mxu1 }
 0x264   : > { %v3419_v25 = vpop.f32.mrf.mxu1 }
 0x266   : > { %v3421_v27 = vpop.f32.mrf.mxu1 }
 0x268   : > { %v3423_v28 = vpop.f32.mrf.mxu1 }
 0x26a   : > { %v3425_v30 = vpop.f32.mrf.mxu1 }
 0x26c   : > { %v3427_v31 = vpop.f32.mrf.mxu1 }
 0x26e   : > { %v3429_v46 = vpop.f32.mrf.mxu1 }
 0x270   : > { %v3431_v32 = vpop.f32.mrf.mxu1 }
 0x272   : > { %v3433_v61 = vpop.f32.mrf.mxu1 }
 0x274   : > { %v3435_v52 = vpop.f32.mrf.mxu1 }
 0x276   : > { %v3437_v24 = vpop.f32.mrf.mxu1 }
 0x278   : > { %v3439_v43 = vpop.f32.mrf.mxu1 }
 0x27a   : > { %v3441_v54 = vpop.f32.mrf.mxu1 }
 0x27c   : > { %v3443_v41 = vpop.f32.mrf.mxu1 }
 0x27e   : > { %v3445_v26 = vpop.f32.mrf.mxu1 }
 0x280   : > { %v1736_v59 = vpop.f32.mrf.mxu1 }
 0x282   : > { %v1738_v49 = vpop.f32.mrf.mxu1 }
 0x284   : > { %v1742_v56 = vpop.f32.mrf.mxu1 }
 0x286   : > { %v1744_v47 = vpop.f32.mrf.mxu1 }
 0x288   : > { %v1748_v58 = vpop.f32.mrf.mxu1 }
 0x28a   : > { %v1750_v45 = vpop.f32.mrf.mxu1 }
 0x28c   : > { %v1754_v48 = vpop.f32.mrf.mxu1 }
 0x28e   : > { %v1756_v63 = vpop.f32.mrf.mxu1 }
 0x290   : > { %v1760_v1 = vpop.f32.mrf.mxu1 }
 0x292   : > { %v1762_v2 = vpop.f32.mrf.mxu1 }
 0x293   : > { %v1900_v18 = vmul.f32 %v2600_v17, %v1762_v2 }
 0x294   : > { %v1766_v3 = vpop.f32.mrf.mxu1 }
 0x295   : > { %v1901_v15 = vmul.f32 %v2599_v14, %v1766_v3  ;;  %v2602_v3 = vld [vmem:[%s5093_s2 + $0xc8] sm:$0xff]  ;;  %v2607_v14 = vld [vmem:[%s5093_s2 + $0xa0] sm:$0xff] }
 0x296   : > { %v1768_v4 = vpop.f32.mrf.mxu1 }
 0x297   : > { %v1902_v8 = vmul.f32 %v2598_v13, %v1768_v4  ;;  %v1899_v4 = vmul.f32 %v2601_v19, %v1760_v1  ;;  %v2604_v1 = vld [vmem:[%s5093_s2 + $0xb8] sm:$0xff] }
 0x298   : > { %v1772_v5 = vpop.f32.mrf.mxu1 }
 0x299   : > { %v1903_v11 = vmul.f32 %v2597_v10, %v1772_v5  ;;  %v1896_v10 = vmul.f32 %v2604_v1, %v1750_v45  ;;  %v1893_v45 = vmul.f32 %v2607_v14, %v1742_v56  ;;  %v2610_v56 = vld [vmem:[%s5093_s2 + $0x88] sm:$0xff] }
 0x29a   : > { %v1774_v6 = vpop.f32.mrf.mxu1 }
 0x29b   : > { %v1904_v9 = vmul.f32 %v2596_v7, %v1774_v6  ;;  %v1898_v6 = vmul.f32 %v2602_v3, %v1756_v63  ;;  %v2603_v7 = vld [vmem:[%s5093_s2 + $0xc0] sm:$0xff] }
 0x29c   : > { %v3453_v12 = vpop.f32.mrf.mxu1  ;;  %v1897_v2 = vmul.f32 %v2603_v7, %v1754_v48  ;;  %v2606_v48 = vld [vmem:[%s5093_s2 + $0xa8] sm:$0xff] }
 0x29d   : > { %1937 = vmatprep.subr.mxu0 %v1904_v9 }
 0x29e   : > { %v3461_v16 = vpop.f32.mrf.mxu1  ;;  %1938 = vmatpush1.msra.mxu0 %v1903_v11  ;;  %v2605_v11 = vld [vmem:[%s5093_s2 + $0xb0] sm:$0xff] }
 0x29f   : > { %1939 = vmatprep.subr.mxu0 %v1902_v8  ;;  %v1895_v63 = vmul.f32 %v2605_v11, %v1748_v58  ;;  %v1894_v8 = vmul.f32 %v2606_v48, %v1744_v47  ;;  %v2608_v58 = vld [vmem:[%s5093_s2 + $0x98] sm:$0xff] }
 0x2a0   : > { %v3469_v5 = vpop.f32.mrf.mxu1  ;;  %1940 = vmatpush1.msra.mxu0 %v1901_v15  ;;  %v1892_v17 = vmul.f32 %v2608_v58, %v1738_v49  ;;  %v2611_v49 = vld [vmem:[%s5093_s2 + $0x80] sm:$0xff] }
 0x2a1   : > { %1941 = vmatprep.subr.mxu0 %v1900_v18  ;;  %v2609_v18 = vld [vmem:[%s5093_s2 + $0x90] sm:$0xff]  ;;  %v1889_v3 = vmul.f32 %v2611_v49, %v3443_v41  ;;  %v2614_v41 = vld [vmem:[%s5093_s2 + $0x68] sm:$0xff] }
 0x2a2   : > { %v3477_v9 = vpop.f32.mrf.mxu1  ;;  %1942 = vmatpush1.msra.mxu0 %v1899_v4  ;;  %v1891_v47 = vmul.f32 %v2609_v18, %v1736_v59  ;;  %v1890_v4 = vmul.f32 %v2610_v56, %v3445_v26  ;;  %v2612_v59 = vld [vmem:[%s5093_s2 + $0x78] sm:$0xff]  ;;  %v2613_v26 = vld [vmem:[%s5093_s2 + $0x70] sm:$0xff] }
 0x2a3   : > { %1943 = vmatprep.subr.mxu0 %v1898_v6  ;;  %v1888_v7 = vmul.f32 %v2612_v59, %v3441_v54  ;;  %v2615_v54 = vld [vmem:[%s5093_s2 + $0x60] sm:$0xff] }
 0x2a4   : > { %v3485_v13 = vpop.f32.mrf.mxu1  ;;  %1944 = vmatpush1.msra.mxu0 %v1897_v2  ;;  %v1887_v2 = vmul.f32 %v2613_v26, %v3439_v43  ;;  %v1885_v11 = vmul.f32 %v2615_v54, %v3435_v52  ;;  %v2616_v43 = vld [vmem:[%s5093_s2 + $0x58] sm:$0xff]  ;;  %v2618_v52 = vld [vmem:[%s5093_s2 + $0x48] sm:$0xff] }
 0x2a5   : > { %1945 = vmatprep.subr.mxu0 %v1896_v10  ;;  %v1886_v10 = vmul.f32 %v2614_v41, %v3437_v24  ;;  %v1884_v48 = vmul.f32 %v2616_v43, %v3433_v61  ;;  %v2617_v24 = vld [vmem:[%s5093_s2 + $0x50] sm:$0xff]  ;;  %v2619_v61 = vld [vmem:[%s5093_s2 + $0x40] sm:$0xff] }
 0x2a6   : > { %v3493_v15 = vpop.f32.mrf.mxu1  ;;  %1946 = vmatpush1.msra.mxu0 %v1895_v63  ;;  %v1881_v58 = vmul.f32 %v2619_v61, %v3427_v31  ;;  %v2622_v31 = vld [vmem:[%s5093_s2 + $0x28] sm:$0xff] }
 0x2a7   : > { %1947 = vmatprep.subr.mxu0 %v1894_v8  ;;  %v1883_v8 = vmul.f32 %v2617_v24, %v3431_v32  ;;  %v2620_v32 = vld [vmem:[%s5093_s2 + $0x38] sm:$0xff] }
 0x2a8   : > { %v3501_v19 = vpop.f32.mrf.mxu1  ;;  %1948 = vmatpush1.msra.mxu0 %v1893_v45  ;;  %v1882_v45 = vmul.f32 %v2618_v52, %v3429_v46  ;;  %v1880_v18 = vmul.f32 %v2620_v32, %v3425_v30  ;;  %v2621_v46 = vld [vmem:[%s5093_s2 + $0x30] sm:$0xff]  ;;  %v2623_v30 = vld [vmem:[%s5093_s2 + $0x20] sm:$0xff] }
 0x2a9   : > { %1949 = vmatprep.subr.mxu0 %v1892_v17  ;;  %v1877_v49 = vmul.f32 %v2623_v30, %v3419_v25  ;;  %v2626_v25 = vld [vmem:[%s5093_s2 + $0x8] sm:$0xff] }
 0x2aa   : > { %v3511_v6 = vpop.f32.mrf.mxu1  ;;  %1950 = vmatpush1.msra.mxu0 %v1891_v47  ;;  %v1879_v47 = vmul.f32 %v2621_v46, %v3423_v28  ;;  %v2624_v28 = vld [vmem:[%s5093_s2 + $0x18] sm:$0xff] }
 0x2ab   : > { %1951 = vmatprep.subr.mxu0 %v1890_v4  ;;  %v1878_v4 = vmul.f32 %v2622_v31, %v3421_v27  ;;  %v1876_v59 = vmul.f32 %v2624_v28, %v3417_v23  ;;  %v2625_v27 = vld [vmem:[%s5093_s2 + $0x10] sm:$0xff]  ;;  %v2627_v23 = vld [vmem:[%s5093_s2] sm:$0xff] }
 0x2ac   : > { %v3521_v1 = vpop.f32.mrf.mxu1  ;;  %1952 = vmatpush1.msra.mxu0 %v1889_v3  ;;  %v1873_v41 = vmul.f32 %v2627_v23, %v3411_v20 }
 0x2ad   : > { %1953 = vmatprep.subr.mxu0 %v1888_v7  ;;  %v1875_v7 = vmul.f32 %v2625_v27, %v3415_v22 }
 0x2ae   : > { %v3531_v63 = vpop.f32.mrf.mxu1  ;;  %1954 = vmatpush1.msra.mxu0 %v1887_v2  ;;  %v1874_v2 = vmul.f32 %v2626_v25, %v3413_v21 }
 0x2af   : > { %1955 = vmatprep.subr.mxu0 %v1886_v10 }
 0x2b0   : > { %v3541_v14 = vpop.f32.mrf.mxu1  ;;  %1956 = vmatpush1.msra.mxu0 %v1885_v11 }
 0x2b1   : > { %1957 = vmatprep.subr.mxu0 %v1884_v48 }
 0x2b2   : > { %v3551_v17 = vpop.f32.mrf.mxu1  ;;  %1958 = vmatpush1.msra.mxu0 %v1883_v8 }
 0x2b3   : > { %1959 = vmatprep.subr.mxu0 %v1882_v45 }
 0x2b4   : > { %v3561_v56 = vpop.f32.mrf.mxu1  ;;  %1960 = vmatpush1.msra.mxu0 %v1881_v58 }
 0x2b5   : > { %1961 = vmatprep.subr.mxu0 %v1880_v18 }
 0x2b6   : > { %v3571_v3 = vpop.f32.mrf.mxu1  ;;  %1962 = vmatpush1.msra.mxu0 %v1879_v47  ;;  %v2628_v47 = vld [vmem:[%s5093_s2 + $0x1f8] sm:$0xff] }
 0x2b7   : > { %1963 = vmatprep.subr.mxu0 %v1878_v4  ;;  %v2629_v4 = vld [vmem:[%s5093_s2 + $0x1f0] sm:$0xff] }
 0x2b8   : > { %v3581_v26 = vpop.f32.mrf.mxu1  ;;  %1964 = vmatpush1.msra.mxu0 %v1877_v49  ;;  %v2630_v49 = vld [vmem:[%s5093_s2 + $0x1e8] sm:$0xff] }
 0x2b9   : > { %1965 = vmatprep.subr.mxu0 %v1876_v59  ;;  %v2631_v59 = vld [vmem:[%s5093_s2 + $0x1e0] sm:$0xff] }
 0x2ba   : > { %v3591_v10 = vpop.f32.mrf.mxu1  ;;  %1966 = vmatpush1.msra.mxu0 %v1875_v7  ;;  %v2632_v7 = vld [vmem:[%s5093_s2 + $0x1d8] sm:$0xff] }
 0x2bb   : > { %1967 = vmatprep.subr.mxu0 %v1874_v2  ;;  %v2633_v2 = vld [vmem:[%s5093_s2 + $0x1d0] sm:$0xff] }
 0x2bc   : > { %v1826_v22 = vpop.f32.mrf.mxu1  ;;  %1968 = vmatpush1.msra.mxu0 %v1873_v41  ;;  %v2634_v41 = vld [vmem:[%s5093_s2 + $0x1c8] sm:$0xff] }
 0x2be   : > { %v1828_v54 = vpop.f32.mrf.mxu1 }
 0x2c0   : > { %v1832_v11 = vpop.f32.mrf.mxu1 }
 0x2c2   : > { %v1834_v43 = vpop.f32.mrf.mxu1 }
 0x2c4   : > { %v1838_v48 = vpop.f32.mrf.mxu1 }
 0x2c6   : > { %v1840_v24 = vpop.f32.mrf.mxu1 }
 0x2c8   : > { %v1844_v8 = vpop.f32.mrf.mxu1 }
 0x2ca   : > { %v1846_v21 = vpop.f32.mrf.mxu1 }
 0x2cc   : > { %v1850_v52 = vpop.f32.mrf.mxu1 }
 0x2ce   : > { %v1852_v45 = vpop.f32.mrf.mxu1 }
 0x2d0   : > { %v1856_v61 = vpop.f32.mrf.mxu1 }
 0x2d1   : > { %v1931_v23 = vmul.f32 %v2633_v2, %v1856_v61  ;;  %v2637_v61 = vld [vmem:[%s5093_s2 + $0x1b0] sm:$0xff]  ;;  %v2648_v2 = vld [vmem:[%s5093_s2 + $0x158] sm:$0xff] }
 0x2d2   : > { %v1858_v58 = vpop.f32.mrf.mxu1 }
 0x2d3   : > { %v1932_v25 = vmul.f32 %v2632_v7, %v1858_v58  ;;  %v2636_v58 = vld [vmem:[%s5093_s2 + $0x1b8] sm:$0xff]  ;;  %v2646_v7 = vld [vmem:[%s5093_s2 + $0x168] sm:$0xff] }
 0x2d4   : > { %v1862_v32 = vpop.f32.mrf.mxu1 }
 0x2d5   : > { %v1933_v27 = vmul.f32 %v2631_v59, %v1862_v32  ;;  %v2635_v32 = vld [vmem:[%s5093_s2 + $0x1c0] sm:$0xff] }
 0x2d6   : > { %v1864_v18 = vpop.f32.mrf.mxu1 }
 0x2d7   : > { %v1934_v28 = vmul.f32 %v2630_v49, %v1864_v18  ;;  %v1930_v18 = vmul.f32 %v2634_v41, %v1852_v45  ;;  %v2638_v45 = vld [vmem:[%s5093_s2 + $0x1a8] sm:$0xff] }
 0x2d8   : > { %v1868_v20 = vpop.f32.mrf.mxu1  ;;  %v2650_v41 = vld [vmem:[%s5093_s2 + $0x148] sm:$0xff] }
 0x2d9   : > { %v1935_v30 = vmul.f32 %v2629_v4, %v1868_v20  ;;  %v1929_v20 = vmul.f32 %v2635_v32, %v1850_v52  ;;  %v2639_v52 = vld [vmem:[%s5093_s2 + $0x1a0] sm:$0xff]  ;;  %v2652_v32 = vld [vmem:[%s5093_s2 + $0x138] sm:$0xff] }
 0x2da   : > { %v1870_v46 = vpop.f32.mrf.mxu1  ;;  %v1925_v4 = vmul.f32 %v2639_v52, %v1838_v48  ;;  %v2643_v48 = vld [vmem:[%s5093_s2 + $0x180] sm:$0xff] }
 0x2db   : > { %v1936_v31 = vmul.f32 %v2628_v47, %v1870_v46  ;;  %v1928_v46 = vmul.f32 %v2636_v58, %v1846_v21  ;;  %v1927_v47 = vmul.f32 %v2637_v61, %v1844_v8  ;;  %v2640_v21 = vld [vmem:[%s5093_s2 + $0x198] sm:$0xff]  ;;  %v2641_v8 = vld [vmem:[%s5093_s2 + $0x190] sm:$0xff]  ;;  %v1921_v59 = vmul.f32 %v2643_v48, %v1826_v22  ;;  %v2654_v58 = vld [vmem:[%s5093_s2 + $0x128] sm:$0xff] }
 0x2dc   : > { %v1923_v49 = vmul.f32 %v2641_v8, %v1832_v11  ;;  %v2645_v11 = vld [vmem:[%s5093_s2 + $0x170] sm:$0xff]  ;;  %v1918_v22 = vmul.f32 %v2646_v7, %v3571_v3  ;;  %v2656_v61 = vld [vmem:[%s5093_s2 + $0x118] sm:$0xff] }
 0x2dd   : > { %1969 = vmatprep.subr.mxu0 %v1936_v31  ;;  %v1926_v31 = vmul.f32 %v2638_v45, %v1840_v24  ;;  %v2642_v24 = vld [vmem:[%s5093_s2 + $0x188] sm:$0xff] }
 0x2de   : > { %1970 = vmatpush2.msra.mxu0 %v1935_v30  ;;  %v1924_v30 = vmul.f32 %v2640_v21, %v1834_v43  ;;  %v2644_v43 = vld [vmem:[%s5093_s2 + $0x178] sm:$0xff]  ;;  %v2658_v45 = vld [vmem:[%s5093_s2 + $0x108] sm:$0xff] }
 0x2df   : > { %1971 = vmatprep.subr.mxu0 %v1934_v28  ;;  %v1922_v28 = vmul.f32 %v2642_v24, %v1828_v54  ;;  %v1919_v54 = vmul.f32 %v2645_v11, %v3581_v26  ;;  %v1916_v26 = vmul.f32 %v2648_v2, %v3551_v17  ;;  %v3749_v11 = vld [vmem:[#allocation2 + $0x30] sm:$0xff] }
 0x2e0   : > { %1972 = vmatpush2.msra.mxu0 %v1933_v27  ;;  %v1920_v27 = vmul.f32 %v2644_v43, %v3591_v10 }
 0x2e1   : > { %1973 = vmatprep.subr.mxu0 %v1932_v25  ;;  %v2647_v25 = vld [vmem:[%s5093_s2 + $0x160] sm:$0xff] }
 0x2e2   : > { %1974 = vmatpush2.msra.mxu0 %v1931_v23  ;;  %v1917_v10 = vmul.f32 %v2647_v25, %v3561_v56  ;;  %v2649_v23 = vld [vmem:[%s5093_s2 + $0x150] sm:$0xff]  ;;  %v1914_v56 = vmul.f32 %v2650_v41, %v3531_v63 }
 0x2e3   : > { %1975 = vmatprep.subr.mxu0 %v1930_v18  ;;  %v1915_v3 = vmul.f32 %v2649_v23, %v3541_v14  ;;  %v2651_v18 = vld [vmem:[%s5093_s2 + $0x140] sm:$0xff]  ;;  %v1912_v14 = vmul.f32 %v2652_v32, %v3511_v6 }
 0x2e4   : > { %1976 = vmatpush2.msra.mxu0 %v1929_v20  ;;  %v1913_v17 = vmul.f32 %v2651_v18, %v3521_v1  ;;  %v2653_v20 = vld [vmem:[%s5093_s2 + $0x130] sm:$0xff]  ;;  %v1910_v1 = vmul.f32 %v2654_v58, %v3493_v15 }
 0x2e5   : > { %1977 = vmatprep.subr.mxu0 %v1928_v46  ;;  %v1911_v63 = vmul.f32 %v2653_v20, %v3501_v19  ;;  %v2655_v46 = vld [vmem:[%s5093_s2 + $0x120] sm:$0xff]  ;;  %v1908_v19 = vmul.f32 %v2656_v61, %v3477_v9  ;;  %v3763_v18 = vld [vmem:[#allocation2 + $0x90] sm:$0xff] }
 0x2e6   : > { %1978 = vmatpush2.msra.mxu0 %v1927_v47  ;;  %v1909_v6 = vmul.f32 %v2655_v46, %v3485_v13  ;;  %v2657_v47 = vld [vmem:[%s5093_s2 + $0x110] sm:$0xff]  ;;  %v1906_v13 = vmul.f32 %v2658_v45, %v3461_v16  ;;  %v5298_v16 = vld [vmem:[#allocation38_spill] sm:$0xff]  ;;  %5305 = vst [vmem:[#allocation11_spill] sm:$0xff] %v3763_v18 }
 0x2e7   : > { %1979 = vmatprep.subr.mxu0 %v1926_v31  ;;  %v1907_v15 = vmul.f32 %v2657_v47, %v3469_v5  ;;  %v2659_v31 = vld [vmem:[%s5093_s2 + $0x100] sm:$0xff]  ;;  %v2054_v5 = vmul.f32 0.5, %v5298_v16  ;;  %v3777_v47 = vld [vmem:[#allocation2 + $0x50] sm:$0xff] }
 0x2e8   : > { %1980 = vmatpush2.msra.mxu0 %v1925_v4  ;;  %v1905_v9 = vmul.f32 %v2659_v31, %v3453_v12  ;;  %v5300_v4 = vld [vmem:[#allocation37_spill] sm:$0xff]  ;;  %5309 = vst [vmem:[#allocation15_spill] sm:$0xff] %v3777_v47 }
 0x2e9   : > { %1981 = vmatprep.subr.mxu0 %v1924_v30  ;;  %v2055_v21 = vmul.f32 0.5, %v5300_v4  ;;  %v2669_v4 = vld [vmem:[#allocation2 + $0x80] sm:$0xff] }
 0x2ea   : > { %1982 = vmatpush2.msra.mxu0 %v1923_v49 }
 0x2eb   : > { %1983 = vmatprep.subr.mxu0 %v1922_v28  ;;  %v3742_v28 = vld [vmem:[#allocation2 + $0x18] sm:$0xff] }
 0x2ec   : > { %1984 = vmatpush2.msra.mxu0 %v1921_v59  ;;  %v2056_v48 = vmul.f32 0.5, %v3742_v28 }
 0x2ed   : > { %1985 = vmatprep.subr.mxu0 %v1920_v27 }
 0x2ee   : > { %1986 = vmatpush2.msra.mxu0 %v1919_v54  ;;  %v2057_v54 = vmul.f32 0.5, %v3749_v11 }
 0x2ef   : > { %1987 = vmatprep.subr.mxu0 %v1918_v22 }
 0x2f0   : > { %1988 = vmatpush2.msra.mxu0 %v1917_v10 }
 0x2f1   : > { %1989 = vmatprep.subr.mxu0 %v1916_v26  ;;  %v3756_v26 = vld [vmem:[#allocation2 + $0x48] sm:$0xff] }
 0x2f2   : > { %1990 = vmatpush2.msra.mxu0 %v1915_v3  ;;  %v2058_v23 = vmul.f32 0.5, %v3756_v26 }
 0x2f3   : > { %1991 = vmatprep.subr.mxu0 %v1914_v56 }
 0x2f4   : > { %1992 = vmatpush2.msra.mxu0 %v1913_v17  ;;  %v2059_v17 = vmul.f32 0.5, %v3763_v18  ;;  %v1118_v18 = vld [vmem:[#allocation2 + $0x58] sm:$0xf8] }
 0x2f5   : > { %1993 = vmatprep.subr.mxu0 %v1912_v14 }
 0x2f6   : > { %1994 = vmatpush2.msra.mxu0 %v1911_v63 }
 0x2f7   : > { %1995 = vmatprep.subr.mxu0 %v1910_v1  ;;  %v3770_v1 = vld [vmem:[#allocation2 + $0x88] sm:$0xff] }
 0x2f8   : > { %1996 = vmatpush2.msra.mxu0 %v1909_v6  ;;  %5307 = vst [vmem:[#allocation13_spill] sm:$0xff] %v3770_v1  ;;  %v2060_v46 = vmul.f32 0.5, %v3770_v1 }
 0x2f9   : > { %1997 = vmatprep.subr.mxu0 %v1908_v19 }
 0x2fa   : > { %1998 = vmatpush2.msra.mxu0 %v1907_v15  ;;  %v2061_v15 = vmul.f32 0.5, %v3777_v47  ;;  %v372_v47 = vld [vmem:[#allocation2 + $0x80] sm:$0x1f] }
 0x2fb   : > { %1999 = vmatprep.subr.mxu0 %v1906_v13 }
 0x2fc   : > { %2000 = vmatpush2.msra.mxu0 %v1905_v9 }
 0x2fd   : > { %2002 = vmatmul.mubr.f32.vlgmr.msra.gmra.mxu0 %v3225_v34 }
 0x2fe   : > { %2007 = vmatprep.mubr.f32.mxu0 %v3234_v37 }
 0x301   : > { %2008 = vmatmul.mubr.f32.gmra.mxu0 %v3230_v38  ;;  %v2050_v38 = vmul.f32 0.5, %v3210_v39 }
 0x302   : > { %2013 = vmatprep.mubr.f32.mxu0 %v3242_v53 }
 0x305   : > { %2014 = vmatmul.mubr.f32.gmra.mxu0 %v3238_v35  ;;  %v2051_v35 = vmul.f32 0.5, %v3208_v62 }
 0x306   : > { %2019 = vmatprep.mubr.f32.mxu0 %v3250_v29 }
 0x309   : > { %2020 = vmatmul.mubr.f32.gmra.mxu0 %v3246_v33 }
 0x30a   : > { %2025 = vmatprep.mubr.f32.mxu0 %v3258_v50  ;;  %v2052_v50 = vmul.f32 0.5, %v3206_v60 }
 0x30d   : > { %2026 = vmatmul.mubr.f32.gmra.mxu0 %v3254_v0 }
 0x30e   : > { %2031 = vmatprep.mubr.f32.mxu0 %v3266_v55 }
 0x311   : > { %2032 = vmatmul.mubr.f32.gmra.mxu0 %v3262_v42 }
 0x312   : > { %2037 = vmatprep.mubr.f32.mxu0 %v3274_v51 }
 0x315   : > { %2038 = vmatmul.mubr.f32.gmra.mxu0 %v3270_v36  ;;  %v2053_v36 = vmul.f32 0.5, %v3203_v40 }
 0x316   : > { %2043 = vmatprep.mubr.f32.mxu0 %v3282_v44 }
 0x319   : > { %2044 = vmatmul.mubr.f32.gmra.mxu0 %v3278_v57 }
 0x3bd   : > { %v2003_v34 = vpop.f32.mrf.mxu0 }
 0x3be   : > { %v2066_v37 = vmul.f32 0.31830987, %v2003_v34 }
 0x3bf   : > { %v2005_v53 = vpop.f32.mrf.mxu0 }
 0x3c0   : > { %v2067_v33 = vmul.f32 0.31830987, %v2005_v53  ;;  %v3722_v29 = vadd.f32 %v2066_v37, %v2050_v38  ;;  %v3784_v38 = vld [vmem:[#allocation2 + $0x10] sm:$0xff] }
 0x3c1   : > { %v2009_v0 = vpop.f32.mrf.mxu0  ;;  %5311 = vst [vmem:[#allocation17_spill] sm:$0xff] %v3784_v38  ;;  %v2062_v37 = vmul.f32 0.5, %v3784_v38 }
 0x3c2   : > { %5295 = vst [vmem:[#allocation3_spill] sm:$0xff] %v3722_v29  ;;  %v3725_v42 = vadd.f32 %v2067_v33, %v2051_v35  ;;  %v2068_v55 = vmul.f32 0.31830987, %v2009_v0  ;;  %v2098_v62 = vmul.f32 %v3722_v29, %v3722_v29  ;;  %v3791_v0 = vld [vmem:[#allocation2 + $0x38] sm:$0xff] }
 0x3c3   : > { %v2011_v51 = vpop.f32.mrf.mxu0  ;;  %5313 = vst [vmem:[#allocation19_spill] sm:$0xff] %v3791_v0 }
 0x3c4   : > { %5296 = vst [vmem:[#allocation4_spill] sm:$0xff] %v3725_v42  ;;  %v2069_v57 = vmul.f32 0.31830987, %v2011_v51  ;;  %v2099_v39 = vmul.f32 %v3725_v42, %v3725_v42  ;;  %v3732_v44 = vadd.f32 %v2068_v55, %v2052_v50  ;;  %v2063_v50 = vmul.f32 0.5, %v3791_v0 }
 0x3c5   : > { %v2015_v12 = vpop.f32.mrf.mxu0 }
 0x3c6   : > { %5297 = vst [vmem:[#allocation5_spill] sm:$0xff] %v3732_v44  ;;  %v3735_v52 = vadd.f32 %v2069_v57, %v2053_v36  ;;  %v2070_v60 = vmul.f32 0.31830987, %v2015_v12  ;;  %2178 = vmatprep.mubr.f32.mxu1 %v2099_v39  ;;  %v2100_v59 = vmul.f32 %v3732_v44, %v3732_v44 }
 0x3c7   : > { %v2017_v40 = vpop.f32.mrf.mxu0  ;;  %2179 = vmatmul.mubr.f32.vlgmr.msra.gmra.mxu1 %v2098_v62  ;;  %v2668_v62 = vld [vmem:[#allocation2 + $0x60] sm:$0xff] }
 0x3c8   : > { %5299 = vst [vmem:[#allocation6_spill] sm:$0xff] %v3735_v52  ;;  %v2071_v30 = vmul.f32 0.31830987, %v2017_v40  ;;  %v2101_v8 = vmul.f32 %v3735_v52, %v3735_v52  ;;  %v3740_v49 = vadd.f32 %v2070_v60, %v2054_v5  ;;  %v2064_v12 = vmul.f32 0.5, %v2668_v62 }
 0x3c9   : > { %v2021_v24 = vpop.f32.mrf.mxu0 }
 0x3ca   : > { %5301 = vst [vmem:[#allocation7_spill] sm:$0xff] %v3740_v49  ;;  %v3747_v43 = vadd.f32 %v2071_v30, %v2055_v21  ;;  %v2072_v27 = vmul.f32 0.31830987, %v2021_v24  ;;  %2184 = vmatprep.mubr.f32.mxu1 %v2101_v8  ;;  %v2102_v3 = vmul.f32 %v3740_v49, %v3740_v49  ;;  %v2065_v21 = vmul.f32 0.5, %v2669_v4 }
 0x3cb   : > { %v2023_v7 = vpop.f32.mrf.mxu0  ;;  %2185 = vmatmul.mubr.f32.gmra.mxu1 %v2100_v59 }
 0x3cc   : > { %5302 = vst [vmem:[#allocation8_spill] sm:$0xff] %v3747_v43  ;;  %v2073_v22 = vmul.f32 0.31830987, %v2023_v7  ;;  %v2103_v25 = vmul.f32 %v3747_v43, %v3747_v43  ;;  %v3754_v10 = vadd.f32 %v2072_v27, %v2056_v48  ;;  %v323_v7 = vlaneseq }
 0x3cd   : > { %v2027_v2 = vpop.f32.mrf.mxu0 }
 0x3ce   : > { %5303 = vst [vmem:[#allocation9_spill] sm:$0xff] %v3754_v10  ;;  %v3761_v41 = vadd.f32 %v2073_v22, %v2057_v54  ;;  %v2074_v56 = vmul.f32 0.31830987, %v2027_v2  ;;  %2190 = vmatprep.mubr.f32.mxu1 %v2103_v25  ;;  %v2104_v6 = vmul.f32 %v3754_v10, %v3754_v10  ;;  %v324_v22 = vshrl.u32 %v323_v7, 7 }
 0x3cf   : > { %v2029_v32 = vpop.f32.mrf.mxu0  ;;  %2191 = vmatmul.mubr.f32.gmra.mxu1 %v2102_v3  ;;  %v2463_v2 = vld [vmem:[%s5092_s1 + $0x1] ss:$8 sm:$0x3]  ;;  %v369_v3 = vld [vmem:[#allocation2] sm:$0xe0] }
 0x3d0   : > { %5304 = vst [vmem:[#allocation10_spill] sm:$0xff] %v3761_v41  ;;  %v2075_v14 = vmul.f32 0.31830987, %v2029_v32  ;;  %v2105_v20 = vmul.f32 %v3761_v41, %v3761_v41  ;;  %v3768_v63 = vadd.f32 %v2074_v56, %v2058_v23  ;;  %v3814_v25 = vsub.s32 0, %v324_v22  ;;  %v2670_v32 = vld [vmem:[#allocation2 + $0x20] sm:$0xff] }
 0x3d1   : > { %v2033_v58 = vpop.f32.mrf.mxu0  ;;  %v3825_v56 = vld [vmem:[%s5092_s1 + $0x2] ss:$8 sm:$0x3] }
 0x3d2   : > { %5306 = vst [vmem:[#allocation12_spill] sm:$0xff] %v3768_v63  ;;  %v3775_v61 = vadd.f32 %v2075_v14, %v2059_v17  ;;  %v2076_v19 = vmul.f32 0.31830987, %v2033_v58  ;;  %2196 = vmatprep.mubr.f32.mxu1 %v2105_v20  ;;  %v2106_v35 = vmul.f32 %v3768_v63, %v3768_v63  ;;  %v3820_v23 = vrot.slane %v2463_v2, %v3814_v25  ;;  %v3829_v20 = vld [vmem:[#allocation2 + $0x68] sm:$0xff] }
 0x3d3   : > { %v2035_v45 = vpop.f32.mrf.mxu0  ;;  %2197 = vmatmul.mubr.f32.gmra.mxu1 %v2104_v6  ;;  %v3842_v6 = vrot.slane %v3825_v56, %v3814_v25 }
 0x3d4   : > { %5308 = vst [vmem:[#allocation14_spill] sm:$0xff] %v3775_v61  ;;  %v2077_v13 = vmul.f32 0.31830987, %v2035_v45  ;;  %v2107_v31 = vmul.f32 %v3775_v61, %v3775_v61  ;;  %v3782_v9 = vadd.f32 %v2076_v19, %v2060_v46  ;;  %v386_v17 = vmul.f32 %v3820_v23, %v369_v3  ;;  %v3838_v46 = vld [vmem:[%s5092_s1] ss:$8 sm:$0x3] }
 0x3d5   : > { %v2039_v34 = vpop.f32.mrf.mxu0  ;;  %v388_v14 = vmul.f32 %v2670_v32, %v3820_v23  ;;  %v3833_v58 = vmul.f32 %v3829_v20, %v3820_v23  ;;  %v493_v19 = vld [vmem:[#allocation2] sm:$0xc0]  ;;  %v3851_v45 = vrot.slane %v3838_v46, %v3814_v25 }
 0x3d6   : > { %5310 = vst [vmem:[#allocation16_spill] sm:$0xff] %v3782_v9  ;;  %v3789_v53 = vadd.f32 %v2077_v13, %v2061_v15  ;;  %v2078_v33 = vmul.f32 0.31830987, %v2039_v34  ;;  %2202 = vmatprep.mubr.f32.mxu1 %v2107_v31  ;;  %v2108_v16 = vmul.f32 %v3782_v9, %v3782_v9  ;;  %v3847_v15 = vld [vmem:[%s5092_s1 + $0x3] ss:$8 sm:$0x3] }
 0x3d7   : > { %v2041_v55 = vpop.f32.mrf.mxu0  ;;  %2203 = vmatmul.mubr.f32.gmra.mxu1 %v2106_v35  ;;  %v423_v13 = vrot.slane %v386_v17, 1  ;;  %v424_v31 = vrot.slane %v388_v14, 1  ;;  %v5134_v34 = vrot.slane %v3833_v58, 1  ;;  %v510_v35 = vmul.f32 %v3842_v6, %v493_v19 }
 0x3d8   : > { %5312 = vst [vmem:[#allocation18_spill] sm:$0xff] %v3789_v53  ;;  %v2079_v36 = vmul.f32 0.31830987, %v2041_v55  ;;  %v2109_v51 = vmul.f32 %v3789_v53, %v3789_v53  ;;  %v3796_v57 = vadd.f32 %v2078_v33, %v2062_v37  ;;  %v303_v37 = vld [vmem:[#allocation2] sm:$0xf0]  ;;  %v512_v33 = vmul.f32 %v2670_v32, %v3842_v6 }
 0x3d9   : > { %v2045_v39 = vpop.f32.mrf.mxu0  ;;  %v3862_v55 = vmul.f32 %v3829_v20, %v3842_v6  ;;  %v335_v62 = vmul.f32 %v2670_v32, %v3851_v45 }
 0x3da   : > { %5314 = vst [vmem:[#allocation20_spill] sm:$0xff] %v3796_v57  ;;  %v3800_v5 = vadd.f32 %v2079_v36, %v2063_v50  ;;  %v2080_v60 = vmul.f32 0.31830987, %v2045_v39  ;;  %2208 = vmatprep.mubr.f32.mxu1 %v2109_v51  ;;  %v2110_v48 = vmul.f32 %v3796_v57, %v3796_v57  ;;  %v3858_v50 = vrot.slane %v3847_v15, %v3814_v25  ;;  %v617_v36 = vld [vmem:[#allocation2] sm:$0x80] }
 0x3db   : > { %v2047_v40 = vpop.f32.mrf.mxu0  ;;  %2209 = vmatmul.mubr.f32.gmra.mxu1 %v2108_v16  ;;  %v3867_v51 = vld [vmem:[%s5092_s1 + $0x4] ss:$8 sm:$0x3]  ;;  %v333_v39 = vmul.f32 %v3851_v45, %v303_v37  ;;  %v430_v16 = vsel %vm422_vm1, %v424_v31, %v5134_v34  ;;  %v548_v4 = vrot.slane %v512_v33, 2 }
 0x3dc   : > { %5315 = vst [vmem:[#allocation21_spill] sm:$0xff] %v3800_v5  ;;  %v2081_v30 = vmul.f32 0.31830987, %v2047_v40  ;;  %v2111_v8 = vmul.f32 %v3800_v5, %v3800_v5  ;;  %v3804_v24 = vadd.f32 %v2080_v60, %v2064_v12  ;;  %5318 = vst [vmem:[#allocation24_spill] sm:$0xff] %v3858_v50  ;;  %v425_v12 = vsel %vm422_vm1, %v423_v13, %v424_v31  ;;  %v855_v33 = vld [vmem:[#allocation2 + $0x20] sm:$0xfe] }
 0x3dd   : > { %v547_v60 = vrot.slane %v510_v35, 2  ;;  %v636_v40 = vmul.f32 %v2670_v32, %v3858_v50  ;;  %v475_v7 = vadd.f32 %v425_v12, %v333_v39  ;;  %v477_v3 = vadd.f32 %v430_v16, %v335_v62  ;;  %v3915_v62 = vld [vmem:[%s5092_s1 + $0x6] ss:$8 sm:$0x3]  ;;  %v3917_v16 = vld [vmem:[#allocation2 + $0x58] sm:$0xff] }
 0x3de   : > { %5316 = vst [vmem:[#allocation22_spill] sm:$0xff] %v3804_v24  ;;  %v3808_v59 = vadd.f32 %v2081_v30, %v2065_v21  ;;  %2214 = vmatprep.mubr.f32.mxu1 %v2111_v8  ;;  %v2112_v54 = vmul.f32 %v3804_v24, %v3804_v24  ;;  %v634_v21 = vmul.f32 %v3858_v50, %v617_v36  ;;  %v5133_v30 = vrot.slane %v3862_v55, 2  ;;  %v3907_v36 = vld [vmem:[#allocation2 + $0x68] sm:$0xff] }
 0x3df   : > { %2215 = vmatmul.mubr.f32.gmra.mxu1 %v2110_v48  ;;  %v3880_v8 = vmul.f32 %v3829_v20, %v3858_v50  ;;  %v3884_v48 = vrot.slane %v3867_v51, %v3814_v25  ;;  %v549_v17 = vsel %vm546_vm2, %v547_v60, %v548_v4  ;;  %v672_v19 = vrot.slane %v636_v40, 3  ;;  %v370_v60 = vld [vmem:[#allocation2 + $0x28] sm:$0xe0] }
 0x3e0   : > { %5317 = vst [vmem:[#allocation23_spill] sm:$0xff] %v3808_v59  ;;  %v2113_v27 = vmul.f32 %v3808_v59, %v3808_v59  ;;  %v671_v14 = vrot.slane %v634_v21, 3  ;;  %v554_v31 = vsel %vm546_vm2, %v548_v4, %v5133_v30  ;;  %v599_v12 = vadd.f32 %v549_v17, %v475_v7  ;;  %v3936_v17 = vld [vmem:[%s5092_s1 + $0x7] ss:$8 sm:$0x3] }
 0x3e1   : > { %v5135_v37 = vrot.slane %v3880_v8, 3  ;;  %v3905_v35 = vmul.f32 %v3829_v20, %v3884_v48  ;;  %v3931_v7 = vrot.slane %v3915_v62, %v3814_v25 }
 0x3e2   : > { %2220 = vmatprep.mubr.f32.mxu1 %v2113_v27  ;;  %v3889_v27 = vld [vmem:[%s5092_s1 + $0x5] ss:$8 sm:$0x3]  ;;  %v673_v4 = vsel %vm670_vm3, %v671_v14, %v672_v19 }
 0x3e3   : > { %2221 = vmatmul.mubr.f32.gmra.mxu1 %v2112_v54  ;;  %v3891_v54 = vsub.s32 1, %v324_v22  ;;  %v3896_v13 = vrot.slane %v3889_v27, %v3814_v25  ;;  %v756_v22 = vmul.f32 %v2670_v32, %v3884_v48  ;;  %v601_v32 = vadd.f32 %v554_v31, %v477_v3  ;;  %v993_v3 = vld [vmem:[#allocation2 + $0x20] sm:$0xfc] }
 0x3e4   : > { %v5321_v5 = vrot.slane %v3905_v35, 4  ;;  %v1010_v53 = vmul.f32 %v3931_v7, %v993_v3  ;;  %v3958_v9 = vmul.f32 %v3931_v7, %v3907_v36 }
 0x3e5   : > { %v3910_v39 = vrot.slane %v2463_v2, %v3891_v54  ;;  %v886_v21 = vmul.f32 %v3896_v13, %v855_v33  ;;  %v3923_v40 = vmul.f32 %v3896_v13, %v3907_v36  ;;  %v678_v2 = vsel %vm670_vm3, %v672_v19, %v5135_v37  ;;  %v3941_v19 = vld [vmem:[#allocation2 + $0x70] sm:$0xff] }
 0x3e6   : > { %v789_v30 = vrot.slane %v756_v22, 4  ;;  %v3949_v33 = vrot.slane %v3825_v56, %v3891_v54  ;;  %v723_v37 = vadd.f32 %v673_v4, %v599_v12  ;;  %v725_v34 = vadd.f32 %v678_v2, %v601_v32  ;;  %v1117_v12 = vld [vmem:[#allocation2 + $0x20] sm:$0xf8]  ;;  %v618_v2 = vld [vmem:[#allocation2 + $0x28] sm:$0x80] }
 0x3e7   : > { %5319 = vst [vmem:[#allocation25_spill] sm:$0xff] %v3910_v39  ;;  %v387_v14 = vmul.f32 %v3910_v39, %v370_v60  ;;  %v389_v31 = vmul.f32 %v3910_v39, %v3917_v16  ;;  %v3945_v22 = vmul.f32 %v3941_v19, %v3910_v39  ;;  %v923_v59 = vrot.slane %v886_v21, 5  ;;  %v494_v60 = vld [vmem:[#allocation2 + $0x28] sm:$0xc0] }
 0x3e8   : > { %5320 = vst [vmem:[#allocation26_spill] sm:$0xff] %v3949_v33  ;;  %v792_v57 = vsel %vm788_vm4, %v789_v30, %v5321_v5  ;;  %v3962_v56 = vrot.slane %v3936_v17, %v3814_v25  ;;  %v3966_v32 = vrot.slane %v3838_v46, %v3891_v54  ;;  %v304_v5 = vld [vmem:[#allocation2 + $0x28] sm:$0xf0]  ;;  %v511_v3 = vmul.f32 %v3949_v33, %v494_v60 }
 0x3e9   : > { %v426_v4 = vrot.slane %v387_v14, 1  ;;  %v427_v21 = vrot.slane %v389_v31, 1  ;;  %v513_v24 = vmul.f32 %v3949_v33, %v3917_v16  ;;  %v3974_v61 = vrot.slane %v3847_v15, %v3891_v54 }
 0x3ea   : > { %v837_v63 = vadd.f32 %v789_v30, %v723_v37  ;;  %v839_v41 = vadd.f32 %v792_v57, %v725_v34  ;;  %v5323_v46 = vrot.slane %v3923_v40, 5  ;;  %v3981_v31 = vmul.f32 %v3941_v19, %v3949_v33 }
 0x3eb   : > { %5322 = vst [vmem:[#allocation27_spill] sm:$0xff] %v3974_v61  ;;  %v1047_v10 = vrot.slane %v1010_v53, 6  ;;  %v1134_v43 = vmul.f32 %v3962_v56, %v1117_v12  ;;  %v3987_v15 = vmul.f32 %v3962_v56, %v3907_v36  ;;  %v334_v57 = vmul.f32 %v3966_v32, %v304_v5 }
 0x3ec   : > { %v926_v14 = vsel %vm922_vm5, %v923_v59, %v5323_v46  ;;  %v336_v34 = vmul.f32 %v3966_v32, %v3917_v16  ;;  %v428_v30 = vsel %vm422_vm1, %v426_v4, %v427_v21  ;;  %v5324_v37 = vrot.slane %v3945_v22, 1 }
 0x3ed   : > { %v550_v53 = vrot.slane %v511_v3, 2  ;;  %v551_v49 = vrot.slane %v513_v24, 2  ;;  %v635_v60 = vmul.f32 %v3974_v61, %v618_v2  ;;  %v637_v12 = vmul.f32 %v3974_v61, %v3917_v16 }
 0x3ee   : > { %v432_v46 = vsel %vm422_vm1, %v427_v21, %v5324_v37  ;;  %v4002_v5 = vmul.f32 %v3941_v19, %v3974_v61  ;;  %v4006_v4 = vrot.slane %v3867_v51, %v3891_v54  ;;  %v975_v44 = vadd.f32 %v923_v59, %v837_v63  ;;  %v4015_v37 = vld [vmem:[%s5092_s1 + $0x10] ss:$8 sm:$0x3] }
 0x3ef   : > { %v977_v42 = vadd.f32 %v926_v14, %v839_v41  ;;  %v5326_v21 = vrot.slane %v3958_v9, 6  ;;  %v1171_v2 = vrot.slane %v1134_v43, 7  ;;  %v5158_v3 = vrot.slane %v3987_v15, 7 }
 0x3f0   : > { %5325 = vst [vmem:[#allocation28_spill] sm:$0xff] %v4006_v4  ;;  %v476_v52 = vadd.f32 %v428_v30, %v334_v57  ;;  %v478_v29 = vadd.f32 %v432_v46, %v336_v34  ;;  %v552_v51 = vsel %vm546_vm2, %v550_v53, %v551_v49  ;;  %v674_v0 = vrot.slane %v635_v60, 3  ;;  %v856_v34 = vld [vmem:[#allocation2 + $0x58] sm:$0xfe]  ;;  %v4032_v60 = vld [vmem:[#allocation2 + $0x70] sm:$0xff] }
 0x3f1   : > { %v1050_v24 = vsel %vm1046_vm6, %v1047_v10, %v5326_v21  ;;  %v675_v63 = vrot.slane %v637_v12, 3  ;;  %v4020_v41 = vrot.slane %v3889_v27, %v3891_v54  ;;  %v5327_v59 = vrot.slane %v3981_v31, 2  ;;  %v1241_v53 = vld [vmem:[#allocation2 + $0x20] sm:$0xf0] }
 0x3f2   : > { %v757_v21 = vmul.f32 %v4006_v4, %v3917_v16  ;;  %v4030_v57 = vmul.f32 %v3941_v19, %v4006_v4  ;;  %v4036_v27 = vrot.slane %v4015_v37, %v3814_v25  ;;  %v1099_v30 = vadd.f32 %v1047_v10, %v975_v44 }
 0x3f3   : > { %v556_v43 = vsel %vm546_vm2, %v551_v49, %v5327_v59  ;;  %v1101_v46 = vadd.f32 %v1050_v24, %v977_v42  ;;  %v1174_v49 = vsel %vm1170_vm7, %v1171_v2, %v5158_v3  ;;  %v600_v12 = vadd.f32 %v552_v51, %v476_v52  ;;  %v4056_v24 = vld [vmem:[#allocation2 + $0x8] sm:$0xff] }
 0x3f4   : > { %5328 = vst [vmem:[#allocation29_spill] sm:$0xff] %v4036_v27  ;;  %v602_v16 = vadd.f32 %v556_v43, %v478_v29  ;;  %v676_v59 = vsel %vm670_vm3, %v674_v0, %v675_v63  ;;  %v887_v14 = vmul.f32 %v4020_v41, %v856_v34  ;;  %v4045_v38 = vmul.f32 %v4020_v41, %v4032_v60  ;;  %v994_v0 = vld [vmem:[#allocation2 + $0x58] sm:$0xfc]  ;;  %v371_v43 = vld [vmem:[#allocation2 + $0x60] sm:$0x1f] }
 0x3f5   : > { %v5329_v25 = vrot.slane %v4002_v5, 3  ;;  %v790_v44 = vrot.slane %v757_v21, 4  ;;  %v4053_v52 = vrot.slane %v3915_v62, %v3891_v54  ;;  %v1258_v29 = vmul.f32 %v4036_v27, %v1241_v53  ;;  %v4064_v21 = vld [vmem:[#allocation2 + $0x78] sm:$0xff] }
 0x3f6   : > { %v4060_v51 = vmul.f32 %v4056_v24, %v3820_v23  ;;  %v1223_v34 = vadd.f32 %v1171_v2, %v1099_v30  ;;  %v1225_v3 = vadd.f32 %v1174_v49, %v1101_v46  ;;  %v4068_v62 = vmul.f32 %v4064_v21, %v3910_v39 }
 0x3f7   : > { %v680_v42 = vsel %vm670_vm3, %v675_v63, %v5329_v25  ;;  %v1260_v63 = vmul.f32 %v4036_v27, %v3907_v36  ;;  %v4071_v53 = vmul.f32 %v3910_v39, %v372_v47  ;;  %v724_v25 = vadd.f32 %v676_v59, %v600_v12 }
 0x3f8   : > { %v726_v10 = vadd.f32 %v680_v42, %v602_v16  ;;  %v4075_v1 = vrot.slane %v3936_v17, %v3891_v54  ;;  %v5331_v2 = vrot.slane %v4030_v57, 4  ;;  %v924_v36 = vrot.slane %v887_v14, 5 }
 0x3f9   : > { %5330 = vst [vmem:[#allocation30_spill] sm:$0xff] %v4071_v53  ;;  %v5165_v46 = vrot.slane %v4045_v38, 5  ;;  %v1011_v49 = vmul.f32 %v4053_v52, %v994_v0  ;;  %v4083_v27 = vmul.f32 %v3820_v23, %v371_v43  ;;  %v4087_v47 = vmul.f32 %v4053_v52, %v4032_v60 }
 0x3fa   : > { %v794_v30 = vsel %vm788_vm4, %v790_v44, %v5331_v2  ;;  %v433_v17 = vrot.slane %v4060_v51, 1  ;;  %v4092_v12 = vmul.f32 %v4056_v24, %v3842_v6  ;;  %v4094_v16 = vadd.f32 %v1258_v29, %v1223_v34 }
 0x3fb   : > { %5332 = vst [vmem:[#allocation31_spill] sm:$0xff] %v4083_v27  ;;  %v4096_v14 = vadd.f32 %v1260_v63, %v1225_v3  ;;  %v5167_v59 = vrot.slane %v4068_v62, 1  ;;  %v4101_v42 = vmul.f32 %v4064_v21, %v3949_v33  ;;  %v838_v0 = vadd.f32 %v790_v44, %v724_v25 }
 0x3fc   : > { %5333 = vst [vmem:[#allocation32_spill] sm:$0xff] %v4094_v16  ;;  %v840_v43 = vadd.f32 %v794_v30, %v726_v10  ;;  %v4104_v2 = vmul.f32 %v4075_v1, %v1118_v18  ;;  %v337_v51 = vmul.f32 %v3829_v20, %v3851_v45  ;;  %v928_v29 = vsel %vm922_vm5, %v924_v36, %v5165_v46 }
 0x3fd   : > { %5334 = vst [vmem:[#allocation33_spill] sm:$0xff] %v4096_v14  ;;  %v1048_v3 = vrot.slane %v1011_v49, 6  ;;  %v4113_v34 = vmul.f32 %v4075_v1, %v4032_v60  ;;  %v4117_v63 = vmul.f32 %v4056_v24, %v3858_v50  ;;  %v5335_v18 = vrot.slane %v3833_v58, 1 }
 0x3fe   : > { %v557_v20 = vrot.slane %v4092_v12, 2  ;;  %v338_v25 = vmul.f32 %v3941_v19, %v3966_v32  ;;  %v5336_v30 = vrot.slane %v3945_v22, 1  ;;  %v4134_v44 = vmul.f32 %v4064_v21, %v3974_v61 }
 0x3ff   : > { %v434_v10 = vsel %vm422_vm1, %v5335_v18, %v433_v17  ;;  %v4138_v58 = vmul.f32 %v3742_v28, %v3820_v23  ;;  %v976_v12 = vadd.f32 %v924_v36, %v838_v0  ;;  %v978_v18 = vadd.f32 %v928_v29, %v840_v43 }
 0x400   : > { %v436_v49 = vsel %vm422_vm1, %v5336_v30, %v5167_v59  ;;  %v4143_v27 = vrot.slane %v4015_v37, %v3891_v54  ;;  %v1242_v30 = vld [vmem:[#allocation2 + $0x58] sm:$0xf0]  ;;  %v479_v59 = vadd.f32 %v434_v10, %v337_v51  ;;  %v681_v46 = vrot.slane %v4117_v63, 3  ;;  %v4157_v54 = vld [vmem:[#allocation2 + $0x8] sm:$0xff] }
 0x401   : > { %v4149_v53 = vmul.f32 %v4056_v24, %v3884_v48  ;;  %v5337_v14 = vrot.slane %v4087_v47, 6  ;;  %v5338_v0 = vrot.slane %v3862_v55, 2  ;;  %v480_v37 = vadd.f32 %v436_v49, %v338_v25 }
 0x402   : > { %v4161_v51 = vmul.f32 %v4064_v21, %v4006_v4  ;;  %v5339_v29 = vrot.slane %v4101_v42, 2  ;;  %v5340_v63 = vrot.slane %v3981_v31, 2  ;;  %v1100_v25 = vadd.f32 %v1048_v3, %v976_v12 }
 0x403   : > { %v1052_v36 = vsel %vm1046_vm6, %v1048_v3, %v5337_v14  ;;  %v558_v43 = vsel %vm546_vm2, %v5338_v0, %v557_v20  ;;  %v4169_v14 = vld [vmem:[#allocation2 + $0x78] sm:$0xff]  ;;  %v4174_v0 = vmul.f32 %v3742_v28, %v3842_v6  ;;  %v4177_v49 = vmul.f32 %v4143_v27, %v1242_v30 }
 0x404   : > { %v560_v10 = vsel %vm546_vm2, %v5340_v63, %v5339_v29  ;;  %v4181_v22 = vmul.f32 %v4143_v27, %v4032_v60  ;;  %v4185_v31 = vmul.f32 %v3749_v11, %v3910_v39  ;;  %v603_v29 = vadd.f32 %v558_v43, %v479_v59 }
 0x405   : > { %v5342_v63 = vrot.slane %v3880_v8, 3  ;;  %v795_v19 = vrot.slane %v4149_v53, 4  ;;  %v4193_v3 = vmul.f32 %v3896_v13, %v4157_v54  ;;  %v604_v12 = vadd.f32 %v560_v10, %v480_v37 }
 0x406   : > { %5341 = vst [vmem:[#allocation34_spill] sm:$0xff] %v4185_v31  ;;  %v4198_v60 = vmul.f32 %v4020_v41, %v4169_v14  ;;  %v339_v59 = vmul.f32 %v4056_v24, %v3851_v45  ;;  %v5343_v8 = vrot.slane %v4134_v44, 3  ;;  %v5344_v43 = vrot.slane %v4002_v5, 3 }
 0x407   : > { %v682_v55 = vsel %vm670_vm3, %v5342_v63, %v681_v46  ;;  %v5345_v63 = vrot.slane %v4138_v58, 1  ;;  %v4213_v10 = vmul.f32 %v3742_v28, %v3858_v50  ;;  %v1102_v30 = vadd.f32 %v1052_v36, %v978_v18 }
 0x408   : > { %v684_v53 = vsel %vm670_vm3, %v5344_v43, %v5343_v8  ;;  %v4217_v24 = vmul.f32 %v3931_v7, %v4157_v54  ;;  %v4222_v5 = vmul.f32 %v3749_v11, %v3949_v33  ;;  %v727_v8 = vadd.f32 %v682_v55, %v603_v29 }
 0x409   : > { %v438_v39 = vsel %vm422_vm1, %v433_v17, %v5345_v63  ;;  %v5347_v17 = vrot.slane %v3905_v35, 4  ;;  %v929_v63 = vrot.slane %v4193_v3, 5  ;;  %v4230_v18 = vmul.f32 %v4053_v52, %v4169_v14 }
 0x40a   : > { %5346 = vst [vmem:[#allocation35_spill] sm:$0xff] %v4222_v5  ;;  %v728_v36 = vadd.f32 %v684_v53, %v604_v12  ;;  %v5348_v37 = vrot.slane %v4161_v51, 4  ;;  %v5349_v16 = vrot.slane %v4030_v57, 4  ;;  %v481_v55 = vadd.f32 %v438_v39, %v339_v59 }
 0x40b   : > { %v796_v43 = vsel %vm788_vm4, %v5347_v17, %v795_v19  ;;  %v5350_v35 = vrot.slane %v4174_v0, 2  ;;  %v4244_v17 = vmul.f32 %v3742_v28, %v3884_v48  ;;  %v340_v12 = vmul.f32 %v4064_v21, %v3966_v32 }
 0x40c   : > { %v798_v50 = vsel %vm788_vm4, %v5349_v16, %v5348_v37  ;;  %v4250_v57 = vmul.f32 %v3962_v56, %v4157_v54  ;;  %v4252_v16 = vld [vmem:[#allocation2 + $0x18] sm:$0xff]  ;;  %v5351_v39 = vrot.slane %v4185_v31, 1  ;;  %v5352_v59 = vrot.slane %v4068_v62, 1 }
 0x40d   : > { %v562_v29 = vsel %vm546_vm2, %v557_v20, %v5350_v35  ;;  %v4262_v37 = vmul.f32 %v3749_v11, %v3974_v61  ;;  %v841_v35 = vadd.f32 %v796_v43, %v727_v8  ;;  %v5353_v21 = vrot.slane %v3923_v40, 5 }
 0x40e   : > { %v440_v20 = vsel %vm422_vm1, %v5352_v59, %v5351_v39  ;;  %v1053_v33 = vrot.slane %v4217_v24, 6  ;;  %v4270_v31 = vmul.f32 %v4075_v1, %v4169_v14  ;;  %v842_v62 = vadd.f32 %v798_v50, %v728_v36 }
 0x40f   : > { %v930_v3 = vsel %vm922_vm5, %v5353_v21, %v929_v63  ;;  %v5354_v39 = vrot.slane %v4198_v60, 5  ;;  %v5355_v59 = vrot.slane %v4045_v38, 5  ;;  %v605_v8 = vadd.f32 %v562_v29, %v481_v55 }
 0x410   : > { %v5356_v40 = vrot.slane %v4213_v10, 3  ;;  %v4284_v21 = vmul.f32 %v3896_v13, %v4252_v16  ;;  %v482_v50 = vadd.f32 %v440_v20, %v340_v12  ;;  %v5357_v36 = vrot.slane %v4113_v34, 7 }
 0x411   : > { %v932_v53 = vsel %vm922_vm5, %v5355_v59, %v5354_v39  ;;  %v5358_v38 = vrot.slane %v4104_v2, 7  ;;  %v5359_v59 = vrot.slane %v4222_v5, 2  ;;  %v5360_v55 = vrot.slane %v4101_v42, 2  ;;  %v4307_v5 = vld [vmem:[#allocation2 + $0x30] sm:$0xff] }
 0x412   : > { %v686_v43 = vsel %vm670_vm3, %v681_v46, %v5356_v40  ;;  %v4299_v40 = vmul.f32 %v3749_v11, %v4006_v4  ;;  %v979_v24 = vadd.f32 %v930_v3, %v841_v35  ;;  %v5362_v61 = vrot.slane %v3958_v9, 6 }
 0x413   : > { %v1176_v39 = vsel %vm1170_vm7, %v5358_v38, %v5357_v36  ;;  %v564_v29 = vsel %vm546_vm2, %v5360_v55, %v5359_v59  ;;  %v5361_v12 = vmov %v5358_v38  ;;  %v1177_v38 = vrot.slane %v4250_v57, 7 }
 0x414   : > { %v1224_v20 = vadd.f32 %v5361_v12, %v1100_v25  ;;  %v1054_v36 = vsel %vm1046_vm6, %v5362_v61, %v1053_v33  ;;  %v980_v42 = vadd.f32 %v932_v53, %v842_v62  ;;  %v5363_v59 = vrot.slane %v4230_v18, 6 }
 0x415   : > { %v5364_v55 = vrot.slane %v4087_v47, 6  ;;  %v729_v4 = vadd.f32 %v686_v43, %v605_v8  ;;  %v4316_v2 = vmul.f32 %v3931_v7, %v4252_v16  ;;  %v1179_v9 = vrot.slane %v4270_v31, 7 }
 0x416   : > { %v5365_v61 = vrot.slane %v4244_v17, 4  ;;  %v5185_v3 = vrot.slane %v4284_v21, 5  ;;  %v606_v57 = vadd.f32 %v564_v29, %v482_v50  ;;  %v5366_v53 = vrot.slane %v4262_v37, 3 }
 0x417   : > { %v1056_v46 = vsel %vm1046_vm6, %v5364_v55, %v5363_v59  ;;  %v5367_v47 = vrot.slane %v4134_v44, 3  ;;  %v5181_v62 = vrot.slane %v4299_v40, 4  ;;  %v4331_v8 = vmul.f32 %v4020_v41, %v4307_v5 }
 0x418   : > { %v800_v25 = vsel %vm788_vm4, %v795_v19, %v5365_v61  ;;  %v4335_v43 = vmul.f32 %v3756_v26, %v3820_v23  ;;  %v1226_v19 = vadd.f32 %v1176_v39, %v1102_v30  ;;  %v1277_v12 = vadd.f32 %v4177_v49, %v1224_v20 }
 0x419   : > { %v688_v35 = vsel %vm670_vm3, %v5367_v47, %v5366_v53  ;;  %v1103_v50 = vadd.f32 %v1054_v36, %v979_v24  ;;  %v5368_v29 = vrot.slane %v3987_v15, 7  ;;  %v1104_v59 = vadd.f32 %v1056_v46, %v980_v42  ;;  %v5371_v42 = vld [vmem:[#allocation29_spill] sm:$0xff] }
 0x41a   : > { %v843_v55 = vadd.f32 %v800_v25, %v729_v4  ;;  %v5183_v61 = vrot.slane %v4316_v2, 6  ;;  %v4344_v53 = vmul.f32 %v3962_v56, %v4252_v16  ;;  %v5369_v47 = vrot.slane %v4113_v34, 7 }
 0x41b   : > { %v1178_v44 = vsel %vm1170_vm7, %v5368_v29, %v1177_v38  ;;  %v934_v15 = vsel %vm922_vm5, %v929_v63, %v5185_v3  ;;  %v730_v49 = vadd.f32 %v688_v35, %v606_v57  ;;  %v4356_v4 = vmul.f32 %v4053_v52, %v4307_v5 }
 0x41c   : > { %v1180_v30 = vsel %vm1170_vm7, %v5369_v47, %v1179_v9  ;;  %v5370_v24 = vrot.slane %v4161_v51, 4  ;;  %v5182_v46 = vrot.slane %v4331_v8, 5  ;;  %v5184_v34 = vrot.slane %v4335_v43, 1 }
 0x41d   : > { %v4367_v20 = vmul.f32 %v3756_v26, %v3842_v6  ;;  %v1279_v63 = vadd.f32 %v4181_v22, %v1226_v19  ;;  %v1227_v36 = vadd.f32 %v1178_v44, %v1103_v50  ;;  %v1262_v25 = vmul.f32 %v5371_v42, %v4157_v54 }
 0x41e   : > { %v802_v39 = vsel %vm788_vm4, %v5370_v24, %v5181_v62  ;;  %v1263_v57 = vmul.f32 %v4143_v27, %v4169_v14  ;;  %v1228_v51 = vadd.f32 %v1180_v30, %v1104_v59  ;;  %v981_v35 = vadd.f32 %v934_v15, %v843_v55  ;;  %v5374_v59 = vld [vmem:[#allocation24_spill] sm:$0xff]  ;;  %v5376_v15 = vld [vmem:[#allocation33_spill] sm:$0xff] }
 0x41f   : > { %v1058_v29 = vsel %vm1046_vm6, %v1053_v33, %v5183_v61  ;;  %v5191_v47 = vrot.slane %v4344_v53, 7  ;;  %v844_v24 = vadd.f32 %v802_v39, %v730_v49  ;;  %v5186_v62 = vrot.slane %v4356_v4, 6  ;;  %v5375_v30 = vld [vmem:[#allocation32_spill] sm:$0xff] }
 0x420   : > { %v4381_v22 = vmul.f32 %v4075_v1, %v4307_v5  ;;  %v341_v54 = vmul.f32 %v3742_v28, %v3851_v45  ;;  %v5372_v14 = vrot.slane %v4198_v60, 5  ;;  %v5373_v33 = vrot.slane %v4138_v58, 1 }
 0x421   : > { %v5187_v44 = vrot.slane %v4367_v20, 2  ;;  %v4398_v55 = vmul.f32 %v3756_v26, %v5374_v59  ;;  %v2277_v28 = vrot.slane %v5375_v30, 4  ;;  %v2278_v49 = vrot.slane %v5376_v15, 4 }
 0x422   : > { %v936_v19 = vsel %vm922_vm5, %v5372_v14, %v5182_v46  ;;  %v442_v50 = vsel %vm422_vm1, %v5373_v33, %v5184_v34  ;;  %v2280_v39 = vrot.slane %v1277_v12, 4  ;;  %v4402_v60 = vadd.f32 %v1262_v25, %v1227_v36  ;;  %v863_v14 = vld [vmem:[#allocation2 + $0x48] sm:$0xff] }
 0x423   : > { %v2281_v46 = vrot.slane %v1279_v63, 4  ;;  %v4404_v61 = vadd.f32 %v1263_v57, %v1228_v51  ;;  %v1105_v58 = vadd.f32 %v1058_v29, %v981_v35  ;;  %v1182_v33 = vsel %vm1170_vm7, %v1177_v38, %v5191_v47  ;;  %v5385_v29 = vld [vmem:[#allocation25_spill] sm:$0xff] }
 0x424   : > { %5377 = vst [vmem:[#allocation36_spill] sm:$0xff] %v4402_v60  ;;  %v982_v34 = vadd.f32 %v936_v19, %v844_v24  ;;  %v5379_v3 = vrot.slane %v4230_v18, 6  ;;  %v5188_v12 = vrot.slane %v4381_v22, 7  ;;  %v483_v36 = vadd.f32 %v442_v50, %v341_v54 }
 0x425   : > { %5378 = vst [vmem:[#allocation38_spill] sm:$0xff] %v4404_v61  ;;  %v5380_v63 = vrot.slane %v4174_v0, 2  ;;  %v5190_v57 = vrot.slane %v4398_v55, 3  ;;  %v4423_v38 = vmul.f32 %v3756_v26, %v3884_v48  ;;  %v4426_v51 = vmul.f32 %v3896_v13, %v863_v14 }
 0x426   : > { %v1060_v30 = vsel %vm1046_vm6, %v5379_v3, %v5186_v62  ;;  %v4431_v24 = vsel %vm788_vm4, %v2277_v28, %v2278_v49  ;;  %v5189_v0 = vrot.slane %v4402_v60, 4  ;;  %v5192_v54 = vrot.slane %v4404_v61, 4  ;;  %v864_v60 = vld [vmem:[#allocation2 + $0x90] sm:$0xff] }
 0x427   : > { %v566_v25 = vsel %vm546_vm2, %v5380_v63, %v5187_v44  ;;  %5383 = vst [vmem:[#allocation37_spill] sm:$0xff] %v4431_v24  ;;  %v1229_v19 = vadd.f32 %v1182_v33, %v1105_v58  ;;  %v1264_v50 = vmul.f32 %v5371_v42, %v4252_v16  ;;  %v4438_v15 = vmul.f32 %v3931_v7, %v863_v14  ;;  %v5386_v44 = vld [vmem:[#allocation11_spill] sm:$0xff] }
 0x428   : > { %v4441_v63 = vsel %vm788_vm4, %v2280_v39, %v2281_v46  ;;  %v1106_v3 = vadd.f32 %v1060_v30, %v982_v34  ;;  %v607_v62 = vadd.f32 %v566_v25, %v483_v36  ;;  %v397_v28 = vmul.f32 %v5386_v44, %v5385_v29  ;;  %v5393_v34 = vld [vmem:[#allocation26_spill] sm:$0xff] }
 0x429   : > { %5384 = vst [vmem:[#allocation24_spill] sm:$0xff] %v4441_v63  ;;  %v1184_v58 = vsel %vm1170_vm7, %v1179_v9, %v5188_v12  ;;  %v5387_v16 = vrot.slane %v4213_v10, 3  ;;  %v4460_v30 = vsel %vm788_vm4, %v2278_v49, %v5189_v0  ;;  %v1265_v31 = vmul.f32 %v4143_v27, %v4307_v5  ;;  %v5389_v9 = vld [vmem:[#allocation13_spill] sm:$0xff]  ;;  %v5390_v10 = vld [vmem:[#allocation15_spill] sm:$0xff] }
 0x42a   : > { %5388 = vst [vmem:[#allocation32_spill] sm:$0xff] %v4460_v30  ;;  %v4466_v36 = vmul.f32 %v5389_v9, %v3820_v23  ;;  %v4470_v25 = vmul.f32 %v5390_v10, %v5385_v29  ;;  %v4477_v12 = vadd.f32 %v1264_v50, %v1229_v19  ;;  %v4481_v0 = vmul.f32 %v3962_v56, %v863_v14 }
 0x42b   : > { %v690_v33 = vsel %vm670_vm3, %v5387_v16, %v5190_v57  ;;  %v4475_v16 = vsel %vm788_vm4, %v2281_v46, %v5192_v54  ;;  %v1230_v5 = vadd.f32 %v1184_v58, %v1106_v3  ;;  %v443_v47 = vrot.slane %v397_v28, 1 }
 0x42c   : > { %5391 = vst [vmem:[#allocation33_spill] sm:$0xff] %v4475_v16  ;;  %5392 = vst [vmem:[#allocation25_spill] sm:$0xff] %v4477_v12  ;;  %v731_v57 = vadd.f32 %v690_v33, %v607_v62  ;;  %v521_v39 = vmul.f32 %v5386_v44, %v5393_v34  ;;  %v5394_v30 = vrot.slane %v4423_v38, 4  ;;  %v5395_v63 = vrot.slane %v4244_v17, 4  ;;  %v5405_v16 = vld [vmem:[#allocation34_spill] sm:$0xff] }
 0x42d   : > { %v5396_v19 = vrot.slane %v4426_v51, 5  ;;  %v5397_v50 = vrot.slane %v4284_v21, 5  ;;  %v4496_v49 = vmul.f32 %v5371_v42, %v863_v14  ;;  %v4500_v62 = vmul.f32 %v5389_v9, %v3842_v6 }
 0x42e   : > { %v804_v46 = vsel %vm788_vm4, %v5395_v63, %v5394_v30  ;;  %v342_v3 = vmul.f32 %v3749_v11, %v3966_v32  ;;  %v445_v17 = vrot.slane %v4466_v36, 1  ;;  %v4508_v28 = vmul.f32 %v5390_v10, %v5393_v34  ;;  %v5402_v30 = vld [vmem:[#allocation27_spill] sm:$0xff]  ;;  %v5403_v11 = vld [vmem:[#allocation28_spill] sm:$0xff] }
 0x42f   : > { %v938_v54 = vsel %vm922_vm5, %v5397_v50, %v5396_v19  ;;  %5398 = vst [vmem:[#allocation11_spill] sm:$0xff] %v4496_v49  ;;  %v5400_v21 = vrot.slane %v4438_v15, 6  ;;  %v5401_v14 = vrot.slane %v4316_v2, 6  ;;  %v5196_v33 = vrot.slane %v4481_v0, 7 }
 0x430   : > { %5399 = vst [vmem:[#allocation13_spill] sm:$0xff] %v4508_v28  ;;  %v645_v19 = vmul.f32 %v5386_v44, %v5402_v30  ;;  %v765_v36 = vmul.f32 %v5386_v44, %v5403_v11  ;;  %v4520_v50 = vadd.f32 %v1265_v31, %v1230_v5  ;;  %v845_v63 = vadd.f32 %v804_v46, %v731_v57  ;;  %v5411_v5 = vld [vmem:[#allocation35_spill] sm:$0xff] }
 0x431   : > { %v1062_v58 = vsel %vm1046_vm6, %v5401_v14, %v5400_v21  ;;  %v5406_v24 = vrot.slane %v5405_v16, 1  ;;  %v567_v61 = vrot.slane %v521_v39, 2  ;;  %v343_v2 = vmul.f32 %v3756_v26, %v3851_v45 }
 0x432   : > { %5404 = vst [vmem:[#allocation15_spill] sm:$0xff] %v4520_v50  ;;  %v569_v21 = vrot.slane %v4500_v62, 2  ;;  %v4530_v14 = vmul.f32 %v5389_v9, %v5374_v59  ;;  %v344_v31 = vmul.f32 %v5386_v44, %v3966_v32  ;;  %v5407_v57 = vrot.slane %v4335_v43, 1 }
 0x433   : > { %v444_v18 = vsel %vm422_vm1, %v5406_v24, %v443_v47  ;;  %v5408_v24 = vrot.slane %v4470_v25, 1  ;;  %v4543_v26 = vmul.f32 %v5390_v10, %v5402_v30  ;;  %v5409_v46 = vrot.slane %v4344_v53, 7 }
 0x434   : > { %v446_v16 = vsel %vm422_vm1, %v5407_v57, %v445_v17  ;;  %v691_v43 = vrot.slane %v645_v19, 3  ;;  %v805_v62 = vrot.slane %v765_v36, 4  ;;  %v5410_v57 = vld [vmem:[#allocation17_spill] sm:$0xff]  ;;  %v5412_v12 = vrot.slane %v5411_v5, 2  ;;  %v4565_v19 = vld [vmem:[#allocation2 + $0x88] sm:$0xff] }
 0x435   : > { %v448_v39 = vsel %vm422_vm1, %v443_v47, %v5408_v24  ;;  %v4550_v44 = vsel %vm1170_vm7, %v5409_v46, %v5196_v33  ;;  %v4554_v50 = vmul.f32 %v5410_v57, %v3820_v23  ;;  %v983_v47 = vadd.f32 %v938_v54, %v845_v63 }
 0x436   : > { %v484_v24 = vadd.f32 %v444_v18, %v342_v3  ;;  %v568_v35 = vsel %vm546_vm2, %v5412_v12, %v567_v61  ;;  %v895_v42 = vmul.f32 %v4020_v41, %v864_v60  ;;  %v485_v49 = vadd.f32 %v446_v16, %v343_v2 }
 0x437   : > { %v693_v53 = vrot.slane %v4530_v14, 3  ;;  %v4563_v46 = vmul.f32 %v5389_v9, %v3884_v48  ;;  %v486_v36 = vadd.f32 %v448_v39, %v344_v31  ;;  %v5413_v23 = vrot.slane %v4367_v20, 2  ;;  %v4584_v20 = vld [vmem:[#allocation2 + $0x50] sm:$0xff] }
 0x438   : > { %v5414_v54 = vrot.slane %v4508_v28, 2  ;;  %v4576_v63 = vmul.f32 %v5390_v10, %v5403_v11  ;;  %v5415_v2 = vrot.slane %v4262_v37, 3  ;;  %v4582_v31 = vmul.f32 %v4053_v52, %v864_v60 }
 0x439   : > { %v570_v18 = vsel %vm546_vm2, %v5413_v23, %v569_v21  ;;  %v1107_v39 = vadd.f32 %v1062_v58, %v983_v47  ;;  %v608_v5 = vadd.f32 %v568_v35, %v484_v24  ;;  %v5416_v23 = vrot.slane %v4299_v40, 4 }
 0x43a   : > { %v572_v12 = vsel %vm546_vm2, %v567_v61, %v5414_v54  ;;  %v692_v14 = vsel %vm670_vm3, %v5415_v2, %v691_v43  ;;  %v4589_v61 = vmul.f32 %v5410_v57, %v3842_v6  ;;  %v4596_v37 = vmul.f32 %v3896_v13, %v4565_v19 }
 0x43b   : > { %v806_v54 = vsel %vm788_vm4, %v5416_v23, %v805_v62  ;;  %v609_v2 = vadd.f32 %v570_v18, %v485_v49  ;;  %v5417_v33 = vrot.slane %v4398_v55, 3  ;;  %v807_v16 = vrot.slane %v4563_v46, 4 }
 0x43c   : > { %v610_v11 = vadd.f32 %v572_v12, %v486_v36  ;;  %v5418_v28 = vrot.slane %v4543_v26, 3  ;;  %v5199_v40 = vrot.slane %v4576_v63, 4  ;;  %v4608_v58 = vmul.f32 %v4020_v41, %v4584_v20 }
 0x43d   : > { %v694_v3 = vsel %vm670_vm3, %v5417_v33, %v693_v53  ;;  %v345_v49 = vmul.f32 %v5389_v9, %v3851_v45  ;;  %v939_v47 = vrot.slane %v895_v42, 5  ;;  %v5419_v55 = vrot.slane %v4554_v50, 1 }
 0x43e   : > { %v696_v35 = vsel %vm670_vm3, %v691_v43, %v5418_v28  ;;  %v5200_v24 = vrot.slane %v4589_v61, 2  ;;  %v4618_v46 = vmul.f32 %v5410_v57, %v5374_v59  ;;  %v732_v28 = vadd.f32 %v692_v14, %v608_v5 }
 0x43f   : > { %v450_v33 = vsel %vm422_vm1, %v445_v17, %v5419_v55  ;;  %v1063_v43 = vrot.slane %v4582_v31, 6  ;;  %v1143_v36 = vmul.f32 %v4075_v1, %v864_v60  ;;  %v941_v18 = vrot.slane %v4596_v37, 5 }
 0x440   : > { %v733_v12 = vadd.f32 %v694_v3, %v609_v2  ;;  %v5420_v42 = vrot.slane %v4423_v38, 4  ;;  %v4628_v17 = vmul.f32 %v3931_v7, %v4565_v19  ;;  %v734_v23 = vadd.f32 %v696_v35, %v610_v11 }
 0x441   : > { %v810_v14 = vsel %vm788_vm4, %v805_v62, %v5199_v40  ;;  %v5201_v31 = vrot.slane %v4608_v58, 5  ;;  %v4636_v5 = vmul.f32 %v4053_v52, %v4584_v20  ;;  %v487_v3 = vadd.f32 %v450_v33, %v345_v49  ;;  %v4655_v33 = vld [vmem:[#allocation2 + $0x10] sm:$0xff] }
 0x442   : > { %v808_v9 = vsel %vm788_vm4, %v5420_v42, %v807_v16  ;;  %v4639_v38 = vmul.f32 %v4143_v27, %v864_v60  ;;  %v574_v37 = vsel %vm546_vm2, %v569_v21, %v5200_v24  ;;  %v5202_v11 = vrot.slane %v4618_v46, 3  ;;  %v5423_v42 = vld [vmem:[#allocation19_spill] sm:$0xff] }
 0x443   : > { %v4647_v2 = vmul.f32 %v5410_v57, %v3884_v48  ;;  %v846_v62 = vadd.f32 %v806_v54, %v732_v28  ;;  %v5421_v35 = vrot.slane %v4331_v8, 5  ;;  %v5422_v49 = vrot.slane %v4426_v51, 5 }
 0x444   : > { %v4659_v21 = vmul.f32 %v5423_v42, %v5385_v29  ;;  %v847_v40 = vadd.f32 %v808_v9, %v733_v12  ;;  %v1065_v24 = vrot.slane %v4628_v17, 6  ;;  %v4664_v57 = vmul.f32 %v3962_v56, %v4565_v19 }
 0x445   : > { %v940_v55 = vsel %vm922_vm5, %v5421_v35, %v939_v47  ;;  %v942_v60 = vsel %vm922_vm5, %v5422_v49, %v941_v18  ;;  %v848_v8 = vadd.f32 %v810_v14, %v734_v23  ;;  %v944_v51 = vsel %vm922_vm5, %v939_v47, %v5201_v31 }
 0x446   : > { %v5203_v54 = vrot.slane %v4636_v5, 6  ;;  %v4672_v28 = vmul.f32 %v4075_v1, %v4584_v20  ;;  %v611_v29 = vadd.f32 %v574_v37, %v487_v3  ;;  %v5424_v12 = vrot.slane %v4356_v4, 6 }
 0x447   : > { %v698_v17 = vsel %vm670_vm3, %v693_v53, %v5202_v11  ;;  %v5205_v23 = vrot.slane %v4647_v2, 4  ;;  %v4683_v47 = vmul.f32 %v3896_v13, %v4655_v33  ;;  %v984_v14 = vadd.f32 %v940_v55, %v846_v62 }
 0x448   : > { %v1064_v9 = vsel %vm1046_vm6, %v5424_v12, %v1063_v43  ;;  %v1187_v35 = vrot.slane %v1143_v36, 7  ;;  %v5204_v49 = vrot.slane %v4659_v21, 1  ;;  %v4688_v3 = vmul.f32 %v5423_v42, %v5393_v34 }
 0x449   : > { %v985_v4 = vadd.f32 %v942_v60, %v847_v40  ;;  %v5426_v37 = vrot.slane %v4438_v15, 6  ;;  %v1189_v53 = vrot.slane %v4664_v57, 7  ;;  %v986_v31 = vadd.f32 %v944_v51, %v848_v8  ;;  %v495_v8 = vld [vmem:[#allocation2 + $0x60] sm:$0x3f] }
 0x44a   : > { %5425 = vst [vmem:[#allocation26_spill] sm:$0xff] %v4688_v3  ;;  %v1068_v11 = vsel %vm1046_vm6, %v1063_v43, %v5203_v54  ;;  %v5208_v36 = vrot.slane %v4672_v28, 7  ;;  %v735_v62 = vadd.f32 %v698_v17, %v611_v29  ;;  %v4700_v55 = vmul.f32 %v3931_v7, %v4655_v33 }
 0x44b   : > { %v1066_v12 = vsel %vm1046_vm6, %v5426_v37, %v1065_v24  ;;  %v1231_v40 = vadd.f32 %v4550_v44, %v1107_v39  ;;  %v812_v15 = vsel %vm788_vm4, %v807_v16, %v5205_v23  ;;  %v5207_v60 = vrot.slane %v4683_v47, 5 }
 0x44c   : > { %v346_v57 = vmul.f32 %v5390_v10, %v3966_v32  ;;  %v5427_v43 = vrot.slane %v4381_v22, 7  ;;  %v5428_v29 = vrot.slane %v4470_v25, 1  ;;  %v5206_v39 = vrot.slane %v4688_v3, 2 }
 0x44d   : > { %v4720_v16 = vmul.f32 %v5423_v42, %v5402_v30  ;;  %v1108_v17 = vadd.f32 %v1064_v9, %v984_v14  ;;  %v1109_v37 = vadd.f32 %v1066_v12, %v985_v4  ;;  %v5429_v10 = vrot.slane %v4481_v0, 7  ;;  %v5430_v42 = vld [vmem:[#allocation11_spill] sm:$0xff] }
 0x44e   : > { %v1188_v51 = vsel %vm1170_vm7, %v5427_v43, %v1187_v35  ;;  %v452_v44 = vsel %vm422_vm1, %v5428_v29, %v5204_v49  ;;  %v1110_v54 = vadd.f32 %v1068_v11, %v986_v31  ;;  %v1192_v43 = vsel %vm1170_vm7, %v1187_v35, %v5208_v36  ;;  %v5431_v11 = vld [vmem:[#allocation29_spill] sm:$0xff] }
 0x44f   : > { %v1190_v22 = vsel %vm1170_vm7, %v5429_v10, %v1189_v53  ;;  %v849_v25 = vadd.f32 %v812_v15, %v735_v62  ;;  %v5210_v29 = vrot.slane %v4700_v55, 6  ;;  %v4731_v49 = vmul.f32 %v3962_v56, %v4655_v33  ;;  %v5432_v35 = vld [vmem:[#allocation13_spill] sm:$0xff]  ;;  %v5434_v15 = vld [vmem:[#allocation28_spill] sm:$0xff]  ;;  %v868_v10 = vld [vmem:[#allocation2 + $0x38] sm:$0xff] }
 0x450   : > { %v4734_v23 = vadd.f32 %v5430_v42, %v1231_v40  ;;  %v946_v0 = vsel %vm922_vm5, %v941_v18, %v5207_v60  ;;  %v488_v9 = vadd.f32 %v452_v44, %v346_v57  ;;  %v4740_v31 = vmul.f32 %v3842_v6, %v495_v8  ;;  %v4750_v40 = vld [vmem:[#allocation2 + $0x38] sm:$0xff]  ;;  %v619_v57 = vld [vmem:[#allocation2 + $0x60] sm:$0x7f] }
 0x451   : > { %v1268_v14 = vmul.f32 %v5431_v11, %v4565_v19  ;;  %v5433_v4 = vrot.slane %v5432_v35, 2  ;;  %v4754_v18 = vmul.f32 %v4750_v40, %v5434_v15  ;;  %v1232_v6 = vadd.f32 %v1188_v51, %v1108_v17  ;;  %v5435_v62 = vld [vmem:[#allocation31_spill] sm:$0xff] }
 0x452   : > { %v1233_v8 = vadd.f32 %v1190_v22, %v1109_v37  ;;  %v1234_v44 = vadd.f32 %v1192_v43, %v1110_v54  ;;  %v1269_v19 = vmul.f32 %v4143_v27, %v4584_v20  ;;  %v987_v42 = vadd.f32 %v946_v0, %v849_v25  ;;  %v5438_v37 = vld [vmem:[#allocation25_spill] sm:$0xff] }
 0x453   : > { %v576_v12 = vsel %vm546_vm2, %v5433_v4, %v5206_v39  ;;  %v1070_v35 = vsel %vm1046_vm6, %v1065_v24, %v5210_v29  ;;  %v5222_v4 = vrot.slane %v4731_v49, 7  ;;  %v2676_v39 = vld [vmem:[#allocation2 + $0x10] sm:$0xff]  ;;  %v5436_v3 = vrot.slane %v5435_v62, 1 }
 0x454   : > { %v347_v60 = vmul.f32 %v2676_v39, %v3851_v45  ;;  %v612_v36 = vadd.f32 %v576_v12, %v488_v9  ;;  %v5437_v51 = vrot.slane %v4554_v50, 1  ;;  %v5215_v20 = vrot.slane %v4740_v31, 2  ;;  %v4782_v50 = vld [vmem:[#allocation2 + $0x60] sm:$0xff] }
 0x455   : > { %v4770_v17 = vmul.f32 %v5374_v59, %v619_v57  ;;  %v2287_v22 = vrot.slane %v5438_v37, 4  ;;  %v5439_v24 = vrot.slane %v4720_v16, 3  ;;  %v5440_v43 = vrot.slane %v4543_v26, 3 }
 0x456   : > { %v454_v54 = vsel %vm422_vm1, %v5437_v51, %v5436_v3  ;;  %v5211_v25 = vrot.slane %v4754_v18, 4  ;;  %v4780_v0 = vmul.f32 %v4020_v41, %v868_v10  ;;  %v5441_v3 = vld [vmem:[#allocation15_spill] sm:$0xff]  ;;  %v1285_v59 = vadd.f32 %v4639_v38, %v1232_v6 }
 0x457   : > { %v700_v39 = vsel %vm670_vm3, %v5440_v43, %v5439_v24  ;;  %v2289_v9 = vrot.slane %v5441_v3, 4  ;;  %v4786_v12 = vadd.f32 %v1268_v14, %v1233_v8  ;;  %v4788_v57 = vadd.f32 %v1269_v19, %v1234_v44  ;;  %v496_v19 = vld [vmem:[#allocation2 + $0x80] sm:$0x3f] }
 0x458   : > { %v2291_v51 = vrot.slane %v4734_v23, 4  ;;  %v1111_v26 = vadd.f32 %v1070_v35, %v987_v42  ;;  %v1194_v37 = vsel %vm1170_vm7, %v1189_v53, %v5222_v4  ;;  %v489_v24 = vadd.f32 %v454_v54, %v347_v60 }
 0x459   : > { %v736_v43 = vadd.f32 %v700_v39, %v612_v36  ;;  %v5442_v29 = vrot.slane %v4589_v61, 2  ;;  %v5212_v38 = vrot.slane %v4770_v17, 3  ;;  %v4802_v14 = vmul.f32 %v3884_v48, %v4782_v50 }
 0x45a   : > { %v5443_v23 = vrot.slane %v4576_v63, 4  ;;  %v5213_v36 = vrot.slane %v4780_v0, 5  ;;  %v4811_v60 = vmul.f32 %v4053_v52, %v868_v10  ;;  %v4814_v61 = vmul.f32 %v4075_v1, %v868_v10 }
 0x45b   : > { %v578_v3 = vsel %vm546_vm2, %v5442_v29, %v5215_v20  ;;  %v5444_v29 = vld [vmem:[#allocation36_spill] sm:$0xff]  ;;  %v2293_v48 = vrot.slane %v1285_v59, 4  ;;  %v5214_v44 = vrot.slane %v4786_v12, 4  ;;  %v5216_v63 = vrot.slane %v4788_v57, 4 }
 0x45c   : > { %v814_v53 = vsel %vm788_vm4, %v5443_v23, %v5211_v25  ;;  %v5445_v6 = vrot.slane %v5444_v29, 4  ;;  %v1235_v42 = vadd.f32 %v1194_v37, %v1111_v26  ;;  %v1270_v35 = vmul.f32 %v5431_v11, %v4655_v33  ;;  %v5446_v23 = vld [vmem:[#allocation38_spill] sm:$0xff] }
 0x45d   : > { %v613_v54 = vadd.f32 %v578_v3, %v489_v24  ;;  %v4827_v39 = vmul.f32 %v3896_v13, %v4782_v50  ;;  %v5447_v29 = vrot.slane %v5446_v23, 4  ;;  %v850_v59 = vadd.f32 %v814_v53, %v736_v43 }
 0x45e   : > { %v4819_v8 = vsel %vm788_vm4, %v5445_v6, %v2287_v22  ;;  %v5448_v25 = vrot.slane %v4618_v46, 3  ;;  %v5217_v37 = vrot.slane %v4802_v14, 4  ;;  %v4841_v33 = vsel %vm788_vm4, %v2287_v22, %v2291_v51 }
 0x45f   : > { %v4832_v6 = vsel %vm788_vm4, %v5447_v29, %v2289_v9  ;;  %v5449_v24 = vrot.slane %v4608_v58, 5  ;;  %v5221_v23 = vrot.slane %v4811_v60, 6  ;;  %v5218_v43 = vrot.slane %v4814_v61, 7 }
 0x460   : > { %v702_v26 = vsel %vm670_vm3, %v5448_v25, %v5212_v38  ;;  %v4851_v53 = vsel %vm788_vm4, %v2289_v9, %v2293_v48  ;;  %v4856_v46 = vsel %vm788_vm4, %v2291_v51, %v5214_v44  ;;  %v4861_v22 = vsel %vm788_vm4, %v2293_v48, %v5216_v63  ;;  %v620_v25 = vld [vmem:[#allocation2 + $0x80] sm:$0x7f] }
 0x461   : > { %v948_v3 = vsel %vm922_vm5, %v5449_v24, %v5213_v36  ;;  %v4864_v58 = vmul.f32 %v5393_v34, %v496_v19  ;;  %v4866_v24 = vadd.f32 %v1270_v35, %v1235_v42  ;;  %v737_v38 = vadd.f32 %v702_v26, %v613_v54  ;;  %v4900_v63 = vld [vmem:[#allocation2 + $0x80] sm:$0xff] }
 0x462   : > { %v5219_v9 = vrot.slane %v4827_v39, 5  ;;  %v4871_v36 = vmul.f32 %v3931_v7, %v4782_v50  ;;  %v988_v44 = vadd.f32 %v948_v3, %v850_v59  ;;  %v1271_v20 = vmul.f32 %v4143_v27, %v868_v10  ;;  %v5453_v3 = vld [vmem:[#allocation30_spill] sm:$0xff] }
 0x463   : > { %v5450_v34 = vrot.slane %v4647_v2, 4  ;;  %v5451_v42 = vrot.slane %v4636_v5, 6  ;;  %v5452_v54 = vrot.slane %v4672_v28, 7  ;;  %v348_v10 = vmul.f32 %v4750_v40, %v3966_v32  ;;  %v319_v28 = vld [vmem:[#allocation2 + $0x60] sm:$0xf] }
 0x464   : > { %v4892_v2 = vmul.f32 %v5402_v30, %v620_v25  ;;  %v5455_v5 = vrot.slane %v4659_v21, 1  ;;  %v5456_v30 = vrot.slane %v4683_v47, 5  ;;  %v320_v21 = vld [vmem:[#allocation2 + $0x80] sm:$0xf]  ;;  %v349_v47 = vmul.f32 %v3851_v45, %v319_v28 }
 0x465   : > { %v816_v48 = vsel %vm788_vm4, %v5450_v34, %v5217_v37  ;;  %v1072_v35 = vsel %vm1046_vm6, %v5451_v42, %v5221_v23  ;;  %v1196_v59 = vsel %vm1170_vm7, %v5452_v54, %v5218_v43  ;;  %v579_v42 = vrot.slane %v4864_v58, 2  ;;  %v5457_v37 = vld [vmem:[#allocation26_spill] sm:$0xff] }
 0x466   : > { %v851_v40 = vadd.f32 %v816_v48, %v737_v38  ;;  %v950_v25 = vsel %vm922_vm5, %v5456_v30, %v5219_v9  ;;  %v4911_v58 = vmul.f32 %v3962_v56, %v4782_v50  ;;  %v703_v38 = vrot.slane %v4892_v2, 3 }
 0x467   : > { %v4916_v48 = vmul.f32 %v5434_v15, %v4900_v63  ;;  %v4930_v15 = vmul.f32 %v4020_v41, %v4900_v63  ;;  %v4934_v45 = vmul.f32 %v4053_v52, %v4900_v63  ;;  %v4939_v28 = vmul.f32 %v4075_v1, %v4900_v63 }
 0x468   : > { %v989_v9 = vadd.f32 %v950_v25, %v851_v40 }
 0x487   : > { %v2180_v29 = vpop.f32.mrf.mxu1 }
 0x488   : > { %v2181_v51 = vadd.f32 1e-12, %v2180_v29  ;;  %v5454_v29 = vrot.slane %v5453_v3, 1 }
 0x489   : > { %v2182_v19 = vpop.f32.mrf.mxu1 }
 0x48a   : > { %2564 = vrsqrt.f32 %v2181_v51  ;;  %v2183_v26 = vadd.f32 1e-12, %v2182_v19  ;;  %v456_v34 = vsel %vm422_vm1, %v5455_v5, %v5454_v29  ;;  %v5220_v51 = vrot.slane %v4871_v36, 6 }
 0x48b   : > { %v2186_v54 = vpop.f32.mrf.mxu1  ;;  %v1112_v29 = vadd.f32 %v1072_v35, %v988_v44  ;;  %v490_v43 = vadd.f32 %v456_v34, %v348_v10  ;;  %v350_v35 = vmul.f32 %v3966_v32, %v320_v21  ;;  %v5459_v10 = vrot.slane %v4700_v55, 6 }
 0x48c   : > { %2566 = vrsqrt.f32 %v2183_v26  ;;  %v2187_v19 = vadd.f32 1e-12, %v2186_v54  ;;  %v5458_v26 = vrot.slane %v5457_v37, 2  ;;  %v5223_v32 = vrot.slane %v4911_v58, 7 }
 0x48d   : > { %v2188_v5 = vpop.f32.mrf.mxu1  ;;  %v1074_v34 = vsel %vm1046_vm6, %v5459_v10, %v5220_v51  ;;  %v1236_v55 = vadd.f32 %v1196_v59, %v1112_v29  ;;  %v817_v21 = vrot.slane %v4916_v48, 4  ;;  %v871_v10 = vld [vmem:[#allocation2 + $0x40] sm:$0x1]  ;;  %v5462_v51 = vrot.slane %v5453_v3, 1 }
 0x48e   : > { %2568 = vrsqrt.f32 %v2187_v19  ;;  %v2189_v30 = vadd.f32 1e-12, %v2188_v5  ;;  %v580_v44 = vsel %vm546_vm2, %v5458_v26, %v579_v42  ;;  %v5460_v19 = vrot.slane %v5435_v62, 1 }
 0x48f   : > { %v2192_v54 = vpop.f32.mrf.mxu1  ;;  %v614_v25 = vadd.f32 %v580_v44, %v490_v43  ;;  %v492_v23 = vadd.f32 %v5462_v51, %v350_v35  ;;  %v1113_v59 = vadd.f32 %v1074_v34, %v989_v9  ;;  %v4953_v43 = vmul.f32 %v5431_v11, %v4782_v50  ;;  %v872_v51 = vld [vmem:[#allocation2 + $0x98] sm:$0x1] }
 0x490   : > { %2570 = vrsqrt.f32 %v2189_v30  ;;  %v2193_v37 = vadd.f32 1e-12, %v2192_v54  ;;  %v491_v5 = vadd.f32 %v5460_v19, %v349_v47  ;;  %v5461_v30 = vrot.slane %v4720_v16, 3 }
 0x491   : > { %v2194_v40 = vpop.f32.mrf.mxu1  ;;  %v951_v62 = vrot.slane %v4930_v15, 5  ;;  %v1075_v29 = vrot.slane %v4934_v45, 6  ;;  %v5463_v16 = vrot.slane %v4731_v49, 7  ;;  %v1199_v3 = vrot.slane %v4939_v28, 7 }
 0x492   : > { %2572 = vrsqrt.f32 %v2193_v37  ;;  %v2195_v26 = vadd.f32 1e-12, %v2194_v40  ;;  %v704_v54 = vsel %vm670_vm3, %v5461_v30, %v703_v38  ;;  %v4963_v35 = vadd.f32 %v1271_v20, %v1236_v55 }
 0x493   : > { %v2198_v4 = vpop.f32.mrf.mxu1  ;;  %v1198_v44 = vsel %vm1170_vm7, %v5463_v16, %v5223_v32  ;;  %v738_v50 = vadd.f32 %v704_v54, %v614_v25  ;;  %v5464_v34 = vrot.slane %v4740_v31, 2  ;;  %v902_v40 = vmul.f32 %v3896_v13, %v871_v10  ;;  %v1119_v10 = vld [vmem:[#allocation2 + $0x40] sm:$0x7] }
 0x494   : > { %2574 = vrsqrt.f32 %v2195_v26  ;;  %v2199_v47 = vadd.f32 1e-12, %v2198_v4  ;;  %v5465_v49 = vrot.slane %v4754_v18, 4  ;;  %v995_v26 = vld [vmem:[#allocation2 + $0x40] sm:$0x3]  ;;  %v616_v30 = vadd.f32 %v579_v42, %v492_v23 }
 0x495   : > { %v2200_v9 = vpop.f32.mrf.mxu1  ;;  %v615_v37 = vadd.f32 %v5464_v34, %v491_v5  ;;  %v4973_v20 = vadd.f32 %v1198_v44, %v1113_v59  ;;  %v5466_v31 = vrot.slane %v4780_v0, 5  ;;  %v5467_v55 = vrot.slane %v4811_v60, 6  ;;  %v5468_v23 = vld [vmem:[#allocation3_spill] sm:$0xff]  ;;  %v996_v59 = vld [vmem:[#allocation2 + $0x98] sm:$0x3] }
 0x496   : > { %2576 = vrsqrt.f32 %v2199_v47  ;;  %v2201_v4 = vadd.f32 1e-12, %v2200_v9  ;;  %v818_v19 = vsel %vm788_vm4, %v5465_v49, %v817_v21  ;;  %v903_v25 = vmul.f32 %v4020_v41, %v872_v51 }
 0x497   : > { %v2565_v16 = vpop.eup %2564  ;;  %v2204_v32 = vpop.f32.mrf.mxu1  ;;  %v952_v13 = vsel %vm922_vm5, %v5466_v31, %v951_v62  ;;  %v1076_v18 = vsel %vm1046_vm6, %v5467_v55, %v1075_v29  ;;  %v5469_v54 = vrot.slane %v4814_v61, 7  ;;  %v852_v60 = vadd.f32 %v818_v19, %v738_v50  ;;  %v5472_v31 = vld [vmem:[#allocation37_spill] sm:$0xff] }
 0x498   : > { %v2243_v42 = vmul.f32 %v2565_v16, %v5468_v23  ;;  %2578 = vrsqrt.f32 %v2201_v4  ;;  %v2205_v5 = vadd.f32 1e-12, %v2204_v32  ;;  %v5470_v9 = vrot.slane %v4770_v17, 3  ;;  %v5471_v32 = vld [vmem:[#allocation4_spill] sm:$0xff]  ;;  %v5474_v19 = vld [vmem:[#allocation5_spill] sm:$0xff] }
 0x499   : > { %v4992_v0 = vsel %vm1170_vm7, %v5469_v54, %v1199_v3  ;;  %v2567_v47 = vpop.eup %2566  ;;  %v2206_v44 = vpop.f32.mrf.mxu1  ;;  %v953_v41 = vrot.slane %v902_v40, 5  ;;  %v1026_v51 = vmul.f32 %v3931_v7, %v995_v26  ;;  %v740_v61 = vadd.f32 %v703_v38, %v616_v30  ;;  %v5473_v40 = vld [vmem:[#allocation24_spill] sm:$0xff]  ;;  %v1120_v54 = vld [vmem:[#allocation2 + $0x98] sm:$0x7] }
 0x49a   : > { %v739_v34 = vadd.f32 %v5470_v9, %v615_v37  ;;  %v2244_v4 = vmul.f32 %v2567_v47, %v5471_v32  ;;  %2580 = vrsqrt.f32 %v2205_v5  ;;  %v2207_v49 = vadd.f32 1e-12, %v2206_v44 }
 0x49b   : > { %v2569_v16 = vpop.eup %2568  ;;  %v2327_v55 = vadd.f32 %v5472_v31, %v2243_v42  ;;  %v2210_v23 = vpop.f32.mrf.mxu1  ;;  %v5003_v50 = vmul.f32 %v3962_v56, %v1119_v10  ;;  %v955_v17 = vrot.slane %v903_v25, 5  ;;  %v1027_v37 = vmul.f32 %v4053_v52, %v996_v59  ;;  %v5477_v59 = vld [vmem:[#allocation6_spill] sm:$0xff] }
 0x49c   : > { %v2328_v7 = vadd.f32 %v5473_v40, %v2244_v4  ;;  %v2245_v26 = vmul.f32 %v2569_v16, %v5474_v19  ;;  %2582 = vrsqrt.f32 %v2207_v49  ;;  %v2211_v5 = vadd.f32 1e-12, %v2210_v23  ;;  %v5480_v16 = vld [vmem:[#allocation7_spill] sm:$0xff] }
 0x49d   : > { %v2571_v47 = vpop.eup %2570  ;;  %v2212_v2 = vpop.f32.mrf.mxu1  ;;  %v990_v56 = vadd.f32 %v952_v13, %v852_v60  ;;  %v5475_v38 = vrot.slane %v4802_v14, 4  ;;  %v5476_v52 = vrot.slane %v4827_v39, 5  ;;  %v1077_v42 = vrot.slane %v1026_v51, 6  ;;  %v5478_v60 = vld [vmem:[#allocation32_spill] sm:$0xff] }
 0x49e   : > { %v2515_v10 = vpack.c.bf16 %v2328_v7, %v2327_v55  ;;  %v2246_v44 = vmul.f32 %v2571_v47, %v5477_v59  ;;  %2584 = vrsqrt.f32 %v2211_v5  ;;  %v854_v9 = vadd.f32 %v817_v21, %v740_v61  ;;  %v1243_v59 = vld [vmem:[#allocation2 + $0x40] sm:$0xf] }
 0x49f   : > { %v853_v30 = vadd.f32 %v5475_v38, %v739_v34  ;;  %v954_v25 = vsel %vm922_vm5, %v5476_v52, %v953_v41  ;;  %v2573_v32 = vpop.eup %2572  ;;  %v2213_v4 = vadd.f32 1e-12, %v2212_v2  ;;  %v2216_v49 = vpop.f32.mrf.mxu1  ;;  %v956_v14 = vsel %vm922_vm5, %v951_v62, %v955_v17  ;;  %v5479_v41 = vld [vmem:[#allocation33_spill] sm:$0xff] }
 0x4a0   : > { %v1079_v13 = vrot.slane %v1027_v37, 6  ;;  %v1151_v39 = vmul.f32 %v4075_v1, %v1120_v54  ;;  %2391 = vst [vmem:[%s5011_s22] sm:$0xff] %v2515_v10  ;;  %v2329_v34 = vadd.f32 %v5478_v60, %v2245_v26  ;;  %v2330_v51 = vadd.f32 %v5479_v41, %v2246_v44  ;;  %v5482_v1 = vld [vmem:[#allocation8_spill] sm:$0xff]  ;;  %v5483_v2 = vld [vmem:[#allocation9_spill] sm:$0xff]  ;;  %v5487_v41 = vld [vmem:[#allocation14_spill] sm:$0xff] }
 0x4a1   : > { %v2247_v31 = vmul.f32 %v2573_v32, %v5480_v16  ;;  %v2217_v55 = vadd.f32 1e-12, %v2216_v49  ;;  %v2575_v48 = vpop.eup %2574  ;;  %2586 = vrsqrt.f32 %v2213_v4  ;;  %v1114_v21 = vadd.f32 %v1076_v18, %v990_v56  ;;  %v2218_v61 = vpop.f32.mrf.mxu1 }
 0x4a2   : > { %v991_v23 = vadd.f32 %v954_v25, %v853_v30  ;;  %v5481_v15 = vrot.slane %v4871_v36, 6  ;;  %v2516_v17 = vpack.c.bf16 %v2330_v51, %v2329_v34  ;;  %v2248_v37 = vmul.f32 %v2575_v48, %v5482_v1 }
 0x4a3   : > { %2588 = vrsqrt.f32 %v2217_v55  ;;  %v992_v40 = vadd.f32 %v956_v14, %v854_v9  ;;  %v2577_v7 = vpop.eup %2576  ;;  %v2219_v19 = vadd.f32 1e-12, %v2218_v61  ;;  %v1201_v26 = vrot.slane %v5003_v50, 7  ;;  %v2222_v5 = vpop.f32.mrf.mxu1 }
 0x4a4   : > { %v1078_v62 = vsel %vm1046_vm6, %v5481_v15, %v1077_v42  ;;  %v1080_v18 = vsel %vm1046_vm6, %v1075_v29, %v1079_v13  ;;  %v1203_v54 = vrot.slane %v1151_v39, 7  ;;  %2392 = vst [vmem:[%s5011_s22 + $0x8] sm:$0xff] %v2516_v17  ;;  %v2331_v36 = vadd.f32 %v4819_v8, %v2247_v31  ;;  %v5484_v42 = vld [vmem:[#allocation10_spill] sm:$0xff]  ;;  %v5486_v13 = vld [vmem:[#allocation12_spill] sm:$0xff] }
 0x4a5   : > { %v2332_v47 = vadd.f32 %v4832_v6, %v2248_v37  ;;  %v2249_v56 = vmul.f32 %v2577_v7, %v5483_v2  ;;  %v2223_v38 = vadd.f32 1e-12, %v2222_v5  ;;  %v2579_v30 = vpop.eup %2578  ;;  %v1238_v52 = vadd.f32 %v4992_v0, %v1114_v21  ;;  %v2224_v25 = vpop.f32.mrf.mxu1  ;;  %v1244_v6 = vld [vmem:[#allocation2 + $0x98] sm:$0xf] }
 0x4a6   : > { %v1273_v50 = vmul.f32 %v4143_v27, %v4900_v63  ;;  %2590 = vrsqrt.f32 %v2219_v19  ;;  %v1115_v45 = vadd.f32 %v1078_v62, %v991_v23  ;;  %v2250_v10 = vmul.f32 %v2579_v30, %v5484_v42  ;;  %v5492_v37 = vld [vmem:[#allocation18_spill] sm:$0xff] }
 0x4a7   : > { %v2517_v29 = vpack.c.bf16 %v2332_v47, %v2331_v36  ;;  %2592 = vrsqrt.f32 %v2223_v38  ;;  %v1116_v8 = vadd.f32 %v1080_v18, %v992_v40  ;;  %v2581_v44 = vpop.eup %2580  ;;  %v2301_v9 = vrot.slane %v4963_v35, 4  ;;  %v5495_v38 = vld [vmem:[#allocation21_spill] sm:$0xff] }
 0x4a8   : > { %v5485_v32 = vrot.slane %v4911_v58, 7  ;;  %v1204_v63 = vsel %vm1170_vm7, %v1199_v3, %v1203_v54  ;;  %v2225_v4 = vadd.f32 1e-12, %v2224_v25  ;;  %v2333_v49 = vadd.f32 %v4841_v33, %v2249_v56 }
 0x4a9   : > { %2393 = vst [vmem:[%s5011_s22 + $0x10] sm:$0xff] %v2517_v29  ;;  %v2334_v14 = vadd.f32 %v4851_v53, %v2250_v10  ;;  %v2251_v39 = vmul.f32 %v2581_v44, %v5486_v13  ;;  %v1290_v35 = vadd.f32 %v4953_v43, %v4973_v20  ;;  %v2583_v60 = vpop.eup %2582  ;;  %v1291_v58 = vadd.f32 %v1273_v50, %v1238_v52  ;;  %v5488_v43 = vld [vmem:[#allocation16_spill] sm:$0xff] }
 0x4aa   : > { %v1202_v0 = vsel %vm1170_vm7, %v5485_v32, %v1201_v26  ;;  %v1274_v34 = vmul.f32 %v5431_v11, %v1243_v59  ;;  %v1275_v28 = vmul.f32 %v4143_v27, %v1244_v6  ;;  %2594 = vrsqrt.f32 %v2225_v4  ;;  %v5497_v59 = vld [vmem:[#allocation23_spill] sm:$0xff] }
 0x4ab   : > { %v2518_v3 = vpack.c.bf16 %v2334_v14, %v2333_v49  ;;  %v2252_v51 = vmul.f32 %v2583_v60, %v5487_v41  ;;  %v1239_v16 = vadd.f32 %v1202_v0, %v1115_v45  ;;  %v1240_v31 = vadd.f32 %v1204_v63, %v1116_v8  ;;  %v2585_v33 = vpop.eup %2584  ;;  %v5496_v45 = vld [vmem:[#allocation22_spill] sm:$0xff] }
 0x4ac   : > { %v2335_v53 = vadd.f32 %v4856_v46, %v2251_v39  ;;  %v2253_v20 = vmul.f32 %v2585_v33, %v5488_v43  ;;  %v5489_v48 = vrot.slane %v4866_v24, 4  ;;  %v5490_v11 = vrot.slane %v4786_v12, 4  ;;  %v5493_v12 = vld [vmem:[#allocation20_spill] sm:$0xff] }
 0x4ad   : > { %2394 = vst [vmem:[%s5011_s22 + $0x18] sm:$0xff] %v2518_v3  ;;  %v2336_v55 = vadd.f32 %v4861_v22, %v2252_v51  ;;  %v5491_v21 = vrot.slane %v4788_v57, 4  ;;  %v2303_v23 = vrot.slane %v1290_v35, 4  ;;  %v2305_v17 = vrot.slane %v1291_v58, 4 }
 0x4ae   : > { %v2300_v27 = vsel %vm788_vm4, %v5490_v11, %v5489_v48  ;;  %v2587_v15 = vpop.eup %2586  ;;  %v1292_v1 = vadd.f32 %v1274_v34, %v1239_v16  ;;  %v1293_v46 = vadd.f32 %v1275_v28, %v1240_v31  ;;  %v5494_v57 = vmov %v5489_v48 }
 0x4af   : > { %v2302_v61 = vsel %vm788_vm4, %v5491_v21, %v2301_v9  ;;  %v2519_v62 = vpack.c.bf16 %v2336_v55, %v2335_v53  ;;  %v2254_v40 = vmul.f32 %v2587_v15, %v5492_v37  ;;  %v2337_v7 = vadd.f32 %v2300_v27, %v2253_v20 }
 0x4b0   : > { %v2589_v22 = vpop.eup %2588  ;;  %v2304_v18 = vsel %vm788_vm4, %v5494_v57, %v2303_v23  ;;  %v2306_v54 = vsel %vm788_vm4, %v2301_v9, %v2305_v17  ;;  %v2307_v36 = vrot.slane %v1292_v1, 4  ;;  %v2309_v47 = vrot.slane %v1293_v46, 4 }
 0x4b1   : > { %2395 = vst [vmem:[%s5011_s22 + $0x20] sm:$0xff] %v2519_v62  ;;  %v2338_v19 = vadd.f32 %v2302_v61, %v2254_v40  ;;  %v2255_v26 = vmul.f32 %v2589_v22, %v5493_v12 }
 0x4b2   : > { %v2308_v24 = vsel %vm788_vm4, %v2303_v23, %v2307_v36  ;;  %v2310_v42 = vsel %vm788_vm4, %v2305_v17, %v2309_v47 }
 0x4b3   : > { %v2591_v5 = vpop.eup %2590  ;;  %v2520_v56 = vpack.c.bf16 %v2338_v19, %v2337_v7  ;;  %v2339_v52 = vadd.f32 %v2304_v18, %v2255_v26 }
 0x4b4   : > { %v2593_v2 = vpop.eup %2592  ;;  %v2256_v30 = vmul.f32 %v2591_v5, %v5495_v38 }
 0x4b5   : > { %2396 = vst [vmem:[%s5011_s22 + $0x28] sm:$0xff] %v2520_v56  ;;  %v2257_v25 = vmul.f32 %v2593_v2, %v5496_v45 }
 0x4b6   : > { %v2340_v50 = vadd.f32 %v2306_v54, %v2256_v30 }
 0x4b7   : > { %v2595_v29 = vpop.eup %2594  ;;  %v2341_v6 = vadd.f32 %v2308_v24, %v2257_v25 }
 0x4b8   : > { %v2521_v10 = vpack.c.bf16 %v2340_v50, %v2339_v52  ;;  %v2258_v8 = vmul.f32 %v2595_v29, %v5497_v59 }
 0x4ba   : > { %2397 = vst [vmem:[%s5011_s22 + $0x30] sm:$0xff] %v2521_v10  ;;  %v2342_v44 = vadd.f32 %v2310_v42, %v2258_v8 }
 0x4bc   : > { %v2522_v9 = vpack.c.bf16 %v2342_v44, %v2341_v6 }
 0x4be   : > { %2398 = vst [vmem:[%s5011_s22 + $0x38] sm:$0xff] %v2522_v9 }
 0x4bf PF: > { %s13_s12 = sadd.s32 1, %s2683_s12  }
 0x4c0   : > { %p10_p4 = scmp.ge.s32.totalorder %s13_s12, 4  }
 0x4c2   :  { %12 = sbr.rel (!%p10_p4) target bundleno = 1 (0x1), region = 70 }

</bundles_post_ra>
